<compile_context>
chip_gen: v6e
topology: v6e:2x2x1
jax: 0.10.0
libtpu: 0.0.40
codegen_flags: <defaults>
</compile_context>

<pallas_src>
import jax
import jax.numpy as jnp
from jax.experimental import pallas as pl
from jax.experimental.pallas import tpu as pltpu

IN_FEATS = 28 * 28   # 784
IN_PAD = 896         # 784 padded up to 7 * 128 (lane aligned)
OUT_PAD = 128        # 10 classes padded up to one lane-width
NUM_CLASSES = 10
TB_MAX = 512         # batch-tile cap (perf feedback: 256 -> 512)
NEG_BIG = -1e30      # pad-class bias; exp underflows to exactly 0


def mlp_kernel(x_ref, w1_ref, b1_ref, w2_ref, b2_ref,
               w3_ref, b3_ref, w4_ref, b4_ref, o_ref):
    # Layer 1: 896 -> 1024, ReLU   (pad rows of w1 are zero -> exact)
    h = jnp.dot(x_ref[...], w1_ref[...], preferred_element_type=jnp.float32)
    h = jnp.maximum(h + b1_ref[...], 0.0).astype(jnp.bfloat16)
    # Layer 2: 1024 -> 512, ReLU
    h = jnp.dot(h, w2_ref[...], preferred_element_type=jnp.float32)
    h = jnp.maximum(h + b2_ref[...], 0.0).astype(jnp.bfloat16)
    # Layer 3: 512 -> 128, ReLU
    h = jnp.dot(h, w3_ref[...], preferred_element_type=jnp.float32)
    h = jnp.maximum(h + b3_ref[...], 0.0).astype(jnp.bfloat16)
    # Layer 4: 128 -> 128 (only first 10 cols are real classes; b4 pad cols
    # are -1e30, so the class-pad mask is already baked into the bias).
    logits = jnp.dot(h, w4_ref[...], preferred_element_type=jnp.float32)
    logits = logits + b4_ref[...]
    # Numerically stable softmax over the class dim (nn.Softmax, dim=1).
    # Exact divide (not approx reciprocal) so rows sum to 1 to f32 precision.
    m = jnp.max(logits, axis=-1, keepdims=True)
    e = jnp.exp(logits - m)
    denom = jnp.sum(e, axis=-1, keepdims=True)
    o_ref[...] = e / denom


def _prepare_params(params):
    """Pad + cast PyTorch-layout params for the kernel.

    Weights are [in_features, out_features] (transposed vs. PyTorch).
    Returns bf16 weights (w1 padded to 896 rows with zeros, w4 padded to
    128 cols with zeros) and f32 biases.  The 118 pad columns of b4 are set
    to -1e30 so the kernel needs no explicit class mask."""
    (w1, b1), (w2, b2), (w3, b3), (w4, b4) = params
    w1p = jnp.zeros((IN_PAD, w1.shape[1]), jnp.float32).at[: w1.shape[0]].set(w1)
    w4p = jnp.zeros((w4.shape[0], OUT_PAD), jnp.float32).at[:, : w4.shape[1]].set(w4)
    b4p = jnp.full((1, OUT_PAD), NEG_BIG, jnp.float32).at[:, : b4.shape[1]].set(b4)
    cast = lambda w: w.astype(jnp.bfloat16)
    return (cast(w1p), b1.astype(jnp.float32),
            cast(w2), b2.astype(jnp.float32),
            cast(w3), b3.astype(jnp.float32),
            cast(w4p), b4p)


def _choose_tiling(B):
    """Round B up to a multiple of 16 (bf16 sublane packing), then split into
    ceil(B16/TB_MAX) near-equal tiles, each a multiple of 16 (minimizes pad
    waste, e.g. B=300 -> one 304-row tile instead of two 256-row tiles)."""
    B16 = max(16, ((B + 15) // 16) * 16)
    n_tiles = pl.cdiv(B16, TB_MAX)
    TB = pl.cdiv(pl.cdiv(B16, 16), n_tiles) * 16
    B_pad = TB * n_tiles
    return B_pad, TB, n_tiles


def nueral_network_forward(x, params):
    """x: (B, 1, 28, 28) float32 NCHW. Returns (B, 10) softmax probabilities."""
    B = x.shape[0]
    B_pad, TB, n_tiles = _choose_tiling(B)

    # nn.Flatten + cast + pad in one fused pad (no zeros().at[].set() pass).
    x_flat = x.reshape(B, IN_FEATS).astype(jnp.bfloat16)
    x_pad = jnp.pad(x_flat, ((0, B_pad - B), (0, IN_PAD - IN_FEATS)))

    w1, b1, w2, b2, w3, b3, w4, b4 = _prepare_params(params)

    const = lambda i: (0, 0)  # weights/biases: DMA once, stay VMEM-resident

    flops = 2 * B_pad * (IN_PAD * 1024 + 1024 * 512 + 512 * 128 + 128 * OUT_PAD)
    bytes_accessed = (
        x_pad.size * 2 + w1.size * 2 + w2.size * 2 + w3.size * 2 + w4.size * 2
        + (b1.size + b2.size + b3.size + b4.size) * 4
        + B_pad * OUT_PAD * 4)

    out = pl.pallas_call(
        mlp_kernel,
        out_shape=jax.ShapeDtypeStruct((B_pad, OUT_PAD), jnp.float32),
        grid_spec=pltpu.PrefetchScalarGridSpec(
            num_scalar_prefetch=0,
            grid=(n_tiles,),
            in_specs=[
                pl.BlockSpec((TB, IN_PAD), lambda i: (i, 0)),   # x tile
                pl.BlockSpec((IN_PAD, 1024), const),            # w1 (padded rows)
                pl.BlockSpec((1, 1024), const),                 # b1
                pl.BlockSpec((1024, 512), const),               # w2
                pl.BlockSpec((1, 512), const),                  # b2
                pl.BlockSpec((512, 128), const),                # w3
                pl.BlockSpec((1, 128), const),                  # b3
                pl.BlockSpec((128, OUT_PAD), const),            # w4 (padded cols)
                pl.BlockSpec((1, OUT_PAD), const),              # b4 (mask baked in)
            ],
            out_specs=pl.BlockSpec((TB, OUT_PAD), lambda i: (i, 0)),
        ),
        compiler_params=pltpu.CompilerParams(
            dimension_semantics=("parallel",)),
        cost_estimate=pl.CostEstimate(
            flops=flops,
            transcendentals=B_pad * OUT_PAD,
            bytes_accessed=bytes_accessed),
    )(x_pad, w1, b1, w2, b2, w3, b3, w4, b4)

    return out[:B, :NUM_CLASSES]


def init_params(key):
    """Deterministic init mimicking PyTorch Linear default (U[-1/sqrt(fan_in), +])."""
    dims = [(IN_FEATS, 1024), (1024, 512), (512, 128), (128, 10)]
    params = []
    for fan_in, fan_out in dims:
        kw, kb, key = jax.random.split(key, 3)
        bound = 1.0 / jnp.sqrt(float(fan_in))
        w = jax.random.uniform(kw, (fan_in, fan_out), jnp.float32, -bound, bound)
        b = jax.random.uniform(kb, (1, fan_out), jnp.float32, -bound, bound)
        params.append((w, b))
    return params


def reference_forward(x, params):
    """Pure-JAX f32 reference of the PyTorch forward (eval mode)."""
    B = x.shape[0]
    h = x.reshape(B, IN_FEATS).astype(jnp.float32)
    (w1, b1), (w2, b2), (w3, b3), (w4, b4) = params
    h = jnp.maximum(h @ w1 + b1, 0.0)
    h = jnp.maximum(h @ w2 + b2, 0.0)
    h = jnp.maximum(h @ w3 + b3, 0.0)
    logits = h @ w4 + b4
    return jax.nn.softmax(logits, axis=-1)


if __name__ == "__main__":
    key = jax.random.PRNGKey(0)
    kx, kp = jax.random.split(key)
    B = 8
    x = jax.random.normal(kx, (B, 1, 28, 28), dtype=jnp.float32)  # NCHW like MNIST
    params = init_params(kp)

    probs = nueral_network_forward(x, params)
    probs = jax.block_until_ready(probs)

    # Sanity: shape, softmax rows sum to 1 (exact divide -> f32 precision),
    # and close to the f32 reference (bf16 weights/activations -> ~1e-2 drift).
    assert probs.shape == (B, NUM_CLASSES)
    assert jnp.allclose(jnp.sum(probs, axis=-1), 1.0, atol=1e-3), \
        float(jnp.max(jnp.abs(jnp.sum(probs, axis=-1) - 1.0)))
    ref = reference_forward(x, params)
    assert jnp.allclose(probs, ref, atol=3e-2), float(jnp.max(jnp.abs(probs - ref)))
    print("KERNEL_OK")
</pallas_src>

<mosaic_0001>
module attributes {stable_mosaic.version = 11 : i64} {
  func.func @mlp_kernel(%arg0: i32, %arg1: memref<16x896xbf16, #tpu.memory_space<vmem>>, %arg2: memref<896x1024xbf16, #tpu.memory_space<vmem>>, %arg3: memref<1x1024xf32, #tpu.memory_space<vmem>>, %arg4: memref<1024x512xbf16, #tpu.memory_space<vmem>>, %arg5: memref<1x512xf32, #tpu.memory_space<vmem>>, %arg6: memref<512x128xbf16, #tpu.memory_space<vmem>>, %arg7: memref<1x128xf32, #tpu.memory_space<vmem>>, %arg8: memref<128x128xbf16, #tpu.memory_space<vmem>>, %arg9: memref<1x128xf32, #tpu.memory_space<vmem>>, %arg10: memref<16x128xf32, #tpu.memory_space<vmem>>) attributes {dimension_semantics = [#tpu.dimension_semantics<parallel>], iteration_bounds = array<i64: 1>, scalar_prefetch = 0 : i64, scratch_operands = 0 : i64, tpu.core_type = #tpu.core_type<tc>, window_params = [{transform_indices = @transform_0, window_bounds = array<i64: 16, 896>}, {pipeline_mode = #tpu.pipeline_mode<synchronous>, transform_indices = @transform_1, window_bounds = array<i64: 896, 1024>}, {pipeline_mode = #tpu.pipeline_mode<synchronous>, transform_indices = @transform_2, window_bounds = array<i64: 1, 1024>}, {pipeline_mode = #tpu.pipeline_mode<synchronous>, transform_indices = @transform_3, window_bounds = array<i64: 1024, 512>}, {pipeline_mode = #tpu.pipeline_mode<synchronous>, transform_indices = @transform_4, window_bounds = array<i64: 1, 512>}, {pipeline_mode = #tpu.pipeline_mode<synchronous>, transform_indices = @transform_5, window_bounds = array<i64: 512, 128>}, {pipeline_mode = #tpu.pipeline_mode<synchronous>, transform_indices = @transform_6, window_bounds = array<i64: 1, 128>}, {pipeline_mode = #tpu.pipeline_mode<synchronous>, transform_indices = @transform_7, window_bounds = array<i64: 128, 128>}, {pipeline_mode = #tpu.pipeline_mode<synchronous>, transform_indices = @transform_8, window_bounds = array<i64: 1, 128>}, {transform_indices = @transform_9, window_bounds = array<i64: 16, 128>}]} {
    %c0 = arith.constant 0 : index
    %c0_0 = arith.constant 0 : index
    %0 = vector.load %arg1[%c0, %c0_0] : memref<16x896xbf16, #tpu.memory_space<vmem>>, vector<16x896xbf16>
    %c0_1 = arith.constant 0 : index
    %c0_2 = arith.constant 0 : index
    %1 = vector.load %arg2[%c0_1, %c0_2] : memref<896x1024xbf16, #tpu.memory_space<vmem>>, vector<896x1024xbf16>
    %cst = arith.constant dense<0.000000e+00> : vector<16x1024xf32>
    %2 = tpu.matmul %0, %1, %cst {dimension_numbers = #tpu.dot_dimension_numbers<[1], [0], [0], [1], [0, 0, 1, 1], [], []>} : vector<16x896xbf16>, vector<896x1024xbf16>, vector<16x1024xf32> -> vector<16x1024xf32>
    %c0_3 = arith.constant 0 : index
    %c0_4 = arith.constant 0 : index
    %3 = vector.load %arg3[%c0_3, %c0_4] : memref<1x1024xf32, #tpu.memory_space<vmem>>, vector<1x1024xf32>
    %4 = vector.broadcast %3 : vector<1x1024xf32> to vector<16x1024xf32>
    %5 = arith.addf %2, %4 : vector<16x1024xf32>
    %cst_5 = arith.constant 0.000000e+00 : f32
    %6 = vector.broadcast %cst_5 : f32 to vector<16x1024xf32>
    %7 = arith.maximumf %5, %6 : vector<16x1024xf32>
    %8 = arith.truncf %7 : vector<16x1024xf32> to vector<16x1024xbf16>
    %c0_6 = arith.constant 0 : index
    %c0_7 = arith.constant 0 : index
    %9 = vector.load %arg4[%c0_6, %c0_7] : memref<1024x512xbf16, #tpu.memory_space<vmem>>, vector<1024x512xbf16>
    %cst_8 = arith.constant dense<0.000000e+00> : vector<16x512xf32>
    %10 = tpu.matmul %8, %9, %cst_8 {dimension_numbers = #tpu.dot_dimension_numbers<[1], [0], [0], [1], [0, 0, 1, 1], [], []>} : vector<16x1024xbf16>, vector<1024x512xbf16>, vector<16x512xf32> -> vector<16x512xf32>
    %c0_9 = arith.constant 0 : index
    %c0_10 = arith.constant 0 : index
    %11 = vector.load %arg5[%c0_9, %c0_10] : memref<1x512xf32, #tpu.memory_space<vmem>>, vector<1x512xf32>
    %12 = vector.broadcast %11 : vector<1x512xf32> to vector<16x512xf32>
    %13 = arith.addf %10, %12 : vector<16x512xf32>
    %cst_11 = arith.constant 0.000000e+00 : f32
    %14 = vector.broadcast %cst_11 : f32 to vector<16x512xf32>
    %15 = arith.maximumf %13, %14 : vector<16x512xf32>
    %16 = arith.truncf %15 : vector<16x512xf32> to vector<16x512xbf16>
    %c0_12 = arith.constant 0 : index
    %c0_13 = arith.constant 0 : index
    %17 = vector.load %arg6[%c0_12, %c0_13] : memref<512x128xbf16, #tpu.memory_space<vmem>>, vector<512x128xbf16>
    %cst_14 = arith.constant dense<0.000000e+00> : vector<16x128xf32>
    %18 = tpu.matmul %16, %17, %cst_14 {dimension_numbers = #tpu.dot_dimension_numbers<[1], [0], [0], [1], [0, 0, 1, 1], [], []>} : vector<16x512xbf16>, vector<512x128xbf16>, vector<16x128xf32> -> vector<16x128xf32>
    %c0_15 = arith.constant 0 : index
    %c0_16 = arith.constant 0 : index
    %19 = vector.load %arg7[%c0_15, %c0_16] : memref<1x128xf32, #tpu.memory_space<vmem>>, vector<1x128xf32>
    %20 = vector.broadcast %19 : vector<1x128xf32> to vector<16x128xf32>
    %21 = arith.addf %18, %20 : vector<16x128xf32>
    %cst_17 = arith.constant 0.000000e+00 : f32
    %22 = vector.broadcast %cst_17 : f32 to vector<16x128xf32>
    %23 = arith.maximumf %21, %22 : vector<16x128xf32>
    %24 = arith.truncf %23 : vector<16x128xf32> to vector<16x128xbf16>
    %c0_18 = arith.constant 0 : index
    %c0_19 = arith.constant 0 : index
    %25 = vector.load %arg8[%c0_18, %c0_19] : memref<128x128xbf16, #tpu.memory_space<vmem>>, vector<128x128xbf16>
    %cst_20 = arith.constant dense<0.000000e+00> : vector<16x128xf32>
    %26 = tpu.matmul %24, %25, %cst_20 {dimension_numbers = #tpu.dot_dimension_numbers<[1], [0], [0], [1], [0, 0, 1, 1], [], []>} : vector<16x128xbf16>, vector<128x128xbf16>, vector<16x128xf32> -> vector<16x128xf32>
    %c0_21 = arith.constant 0 : index
    %c0_22 = arith.constant 0 : index
    %27 = vector.load %arg9[%c0_21, %c0_22] : memref<1x128xf32, #tpu.memory_space<vmem>>, vector<1x128xf32>
    %28 = vector.broadcast %27 : vector<1x128xf32> to vector<16x128xf32>
    %29 = arith.addf %26, %28 : vector<16x128xf32>
    %cst_23 = arith.constant dense<0xFF800000> : vector<16xf32>
    %30 = vector.multi_reduction <maximumf>, %29, %cst_23 [1] : vector<16x128xf32> to vector<16xf32>
    %31 = vector.shape_cast %30 : vector<16xf32> to vector<16x1xf32>
    %32 = vector.broadcast %31 : vector<16x1xf32> to vector<16x128xf32>
    %33 = arith.subf %29, %32 : vector<16x128xf32>
    %34 = math.exp %33 : vector<16x128xf32>
    %cst_24 = arith.constant dense<0.000000e+00> : vector<16xf32>
    %35 = vector.multi_reduction <add>, %34, %cst_24 [1] : vector<16x128xf32> to vector<16xf32>
    %36 = vector.shape_cast %35 : vector<16xf32> to vector<16x1xf32>
    %37 = vector.broadcast %36 : vector<16x1xf32> to vector<16x128xf32>
    %38 = arith.divf %34, %37 : vector<16x128xf32>
    %c0_25 = arith.constant 0 : index
    %c0_26 = arith.constant 0 : index
    %39 = vector.load %arg10[%c0_25, %c0_26] : memref<16x128xf32, #tpu.memory_space<vmem>>, vector<16x128xf32>
    tpu.vector_store %arg10[%c0_25, %c0_26], %38 {strides = array<i32>} : memref<16x128xf32, #tpu.memory_space<vmem>>, vector<16x128xf32>,
    return
  }
  func.func @transform_0(%arg0: i32) -> (i32, i32) {
    %c0_i32 = arith.constant 0 : i32
    %c0_i32_0 = arith.constant 0 : i32
    return %arg0, %c0_i32 : i32, i32
  }
  func.func @transform_1(%arg0: i32) -> (i32, i32) {
    %c0_i32 = arith.constant 0 : i32
    %c0_i32_0 = arith.constant 0 : i32
    %c0_i32_1 = arith.constant 0 : i32
    return %c0_i32, %c0_i32_0 : i32, i32
  }
  func.func @transform_2(%arg0: i32) -> (i32, i32) {
    %c0_i32 = arith.constant 0 : i32
    %c0_i32_0 = arith.constant 0 : i32
    %c0_i32_1 = arith.constant 0 : i32
    return %c0_i32, %c0_i32_0 : i32, i32
  }
  func.func @transform_3(%arg0: i32) -> (i32, i32) {
    %c0_i32 = arith.constant 0 : i32
    %c0_i32_0 = arith.constant 0 : i32
    %c0_i32_1 = arith.constant 0 : i32
    return %c0_i32, %c0_i32_0 : i32, i32
  }
  func.func @transform_4(%arg0: i32) -> (i32, i32) {
    %c0_i32 = arith.constant 0 : i32
    %c0_i32_0 = arith.constant 0 : i32
    %c0_i32_1 = arith.constant 0 : i32
    return %c0_i32, %c0_i32_0 : i32, i32
  }
  func.func @transform_5(%arg0: i32) -> (i32, i32) {
    %c0_i32 = arith.constant 0 : i32
    %c0_i32_0 = arith.constant 0 : i32
    %c0_i32_1 = arith.constant 0 : i32
    return %c0_i32, %c0_i32_0 : i32, i32
  }
  func.func @transform_6(%arg0: i32) -> (i32, i32) {
    %c0_i32 = arith.constant 0 : i32
    %c0_i32_0 = arith.constant 0 : i32
    %c0_i32_1 = arith.constant 0 : i32
    return %c0_i32, %c0_i32_0 : i32, i32
  }
  func.func @transform_7(%arg0: i32) -> (i32, i32) {
    %c0_i32 = arith.constant 0 : i32
    %c0_i32_0 = arith.constant 0 : i32
    %c0_i32_1 = arith.constant 0 : i32
    return %c0_i32, %c0_i32_0 : i32, i32
  }
  func.func @transform_8(%arg0: i32) -> (i32, i32) {
    %c0_i32 = arith.constant 0 : i32
    %c0_i32_0 = arith.constant 0 : i32
    %c0_i32_1 = arith.constant 0 : i32
    return %c0_i32, %c0_i32_0 : i32, i32
  }
  func.func @transform_9(%arg0: i32) -> (i32, i32) {
    %c0_i32 = arith.constant 0 : i32
    %c0_i32_0 = arith.constant 0 : i32
    return %arg0, %c0_i32 : i32, i32
  }
}

</mosaic_0001>

<bundles_post_ra>
// kernel: tpu_custom_call.1
= control target key start
LH: loop header
LB: loop body
LE: loop exit
PB: predicated region body
PF: predicated region fallthrough
CT: control target
= control target key end

     0   :  { %14 = vsyncpa [#allocation3], 0  ;;  %s7868_s0 = inlined_call_operand.hbm [shape: bf16[16,896], index: 0, kind: input, shape index: {}]   ;;  %s7869_s1 = inlined_call_operand.hbm [shape: bf16[896,1024], index: 1, kind: input, shape index: {}]   ;;  %s7870_s2 = inlined_call_operand.hbm [shape: f32[1,1024], index: 2, kind: input, shape index: {}]   ;;  %s7871_s3 = inlined_call_operand.hbm [shape: bf16[1024,512], index: 3, kind: input, shape index: {}]   ;;  %s7872_s4 = inlined_call_operand.hbm [shape: f32[1,512], index: 4, kind: input, shape index: {}]   ;;  %s7873_s5 = inlined_call_operand.hbm [shape: bf16[512,128], index: 5, kind: input, shape index: {}]   ;;  %s7874_s6 = inlined_call_operand.hbm [shape: f32[1,128], index: 6, kind: input, shape index: {}]   ;;  %s7875_s7 = inlined_call_operand.hbm [shape: bf16[128,128], index: 7, kind: input, shape index: {}]   ;;  %s7876_s8 = inlined_call_operand.hbm [shape: f32[1,128], index: 8, kind: input, shape index: {}]   ;;  %s7877_s9 = inlined_call_operand.hbm [shape: f32[16,128], index: 9, kind: output, shape index: {}]  }
   0x1   :  { %15 = vsyncpa [#allocation6], 0 }
   0x2   :  { %16 = vsyncpa [#allocation9], 0 }
   0x3   :  { %17 = vsyncpa [#allocation12], 0 }
   0x4   :  { %18 = vsyncpa [#allocation15], 0 }
   0x5   :  { %19 = vsyncpa [#allocation4], 0  ;;  %s7563_s30 = smov [#allocation5]  }
   0x6   :  { %s37_s10 = sshll.u32 %s7563_s30, 4  ;;  %s38_s10 = int_to_ptr.vmem [resolvable:$true] %s37_s10 }
   0x7   :  { %s7359_s11 = scalar_lea.vmem %s38_s10, 57344  ;;  %p7364_p1 = scmp.lt.s32.totalorder %s38_s10, %s38_s10 }
   0x8   :  { %p7360_p0 = scmp.ne.s32.totalorder %s38_s10, %s7359_s11  ;;  %p7365_p2 = scmp.lt.s32.totalorder %s7359_s11, %s7359_s11 }
   0xa   :  { %p7366_p3 = por %p7365_p2, %p7364_p1 }
   0xc   :  { %p7367_p4 = pnand %p7366_p3, %p7360_p0 }
   0xe   :  { %7370 = shalt.err (!%p7367_p4)
}
   0xf   :  { %s7564_s12 = smov 512   ;;  %s7565_s13 = smov 32  }
  0x10   :  { %43 = dma.hbm_to_vmem [thread:$0]  %s7869_s1, 57344, %s38_s10, [#allocation6], %s7564_s12, %s7564_s12, %s7565_s13  }
  0x11   :  { %s7566_s16 = smov [#allocation8]  }
  0x12   :  { %s59_s17 = sshll.u32 %s7566_s16, 4  ;;  %s60_s17 = int_to_ptr.vmem [resolvable:$true] %s59_s17 }
  0x13   :  { %s7379_s18 = scalar_lea.vmem %s60_s17, 32768  ;;  %p7384_p6 = scmp.lt.s32.totalorder %s60_s17, %s60_s17 }
  0x14   :  { %p7380_p5 = scmp.ne.s32.totalorder %s60_s17, %s7379_s18  ;;  %p7385_p7 = scmp.lt.s32.totalorder %s7379_s18, %s7379_s18 }
  0x16   :  { %p7386_p8 = por %p7385_p7, %p7384_p6 }
  0x18   :  { %p7387_p9 = pnand %p7386_p8, %p7380_p5 }
  0x1a   :  { %7390 = shalt.err (!%p7387_p9)
}
  0x1b   :  { %s7567_s19 = smov 256   ;;  %s7568_s20 = smov 16  }
  0x1c   :  { %65 = dma.hbm_to_vmem [thread:$0]  %s7871_s3, 32768, %s60_s17, [#allocation9], %s7567_s19, %s7567_s19, %s7568_s20  }
  0x1d   :  { %s7569_s23 = smov [#allocation11]  }
  0x1e   :  { %s81_s24 = sshll.u32 %s7569_s23, 4  ;;  %s82_s24 = int_to_ptr.vmem [resolvable:$true] %s81_s24 }
  0x1f   :  { %s7399_s1 = scalar_lea.vmem %s82_s24, 4096  ;;  %p7404_p11 = scmp.lt.s32.totalorder %s82_s24, %s82_s24 }
  0x20   :  { %p7400_p10 = scmp.ne.s32.totalorder %s82_s24, %s7399_s1  ;;  %p7405_p12 = scmp.lt.s32.totalorder %s7399_s1, %s7399_s1 }
  0x22   :  { %p7406_p13 = por %p7405_p12, %p7404_p11 }
  0x24   :  { %p7407_p0 = pnand %p7406_p13, %p7400_p10 }
  0x26   :  { %7410 = shalt.err (!%p7407_p0)
}
  0x27   :  { %s7570_s25 = smov 64   ;;  %s7571_s26 = smov 4  }
  0x28   :  { %87 = dma.hbm_to_vmem [thread:$0]  %s7873_s5, 4096, %s82_s24, [#allocation12], %s7570_s25, %s7570_s25, %s7571_s26  }
  0x29   :  { %s7572_s29 = smov [#allocation14]   ;;  %s7573_s3 = smov [#allocation2]  }
  0x2a   :  { %s103_s30 = sshll.u32 %s7572_s29, 4  ;;  %s25_s10 = sshll.u32 %s7573_s3, 4  ;;  %s104_s30 = int_to_ptr.vmem [resolvable:$true] %s103_s30  ;;  %s26_s10 = int_to_ptr.vmem [resolvable:$true] %s25_s10 }
  0x2b   :  { %s7419_s11 = scalar_lea.vmem %s104_s30, 1024  ;;  %p7424_p2 = scmp.lt.s32.totalorder %s104_s30, %s104_s30 }
  0x2c   :  { %p7420_p1 = scmp.ne.s32.totalorder %s104_s30, %s7419_s11  ;;  %p7425_p3 = scmp.lt.s32.totalorder %s7419_s11, %s7419_s11 }
  0x2e   :  { %p7426_p4 = por %p7425_p3, %p7424_p2 }
  0x30   :  { %p7427_p5 = pnand %p7426_p4, %p7420_p1 }
  0x32   :  { %7430 = shalt.err (!%p7427_p5)
}
  0x33   :  { %109 = dma.hbm_to_vmem [thread:$0]  %s7875_s7, 1024, %s104_s30, [#allocation15], %s7570_s25, %s7570_s25, %s7571_s26  }
  0x34   :  { %s7439_s14 = scalar_lea.vmem %s26_s10, 896  ;;  %p7444_p7 = scmp.lt.s32.totalorder %s26_s10, %s26_s10 }
  0x35   :  { %p7440_p6 = scmp.ne.s32.totalorder %s26_s10, %s7439_s14  ;;  %p7445_p8 = scmp.lt.s32.totalorder %s7439_s14, %s7439_s14 }
  0x37   :  { %p7446_p9 = por %p7445_p8, %p7444_p7 }
  0x39   :  { %p7447_p10 = pnand %p7446_p9, %p7440_p6 }
  0x3b   :  { %7450 = shalt.err (!%p7447_p10)
}
  0x3c   :  { %s7574_s5 = smov 448   ;;  %s7575_s15 = smov 28  }
  0x3d   :  { %31 = dma.hbm_to_vmem [thread:$0]  %s7868_s0, 896, %s26_s10, [#allocation3], %s7574_s5, %s7574_s5, %s7575_s15  }
  0x3e   :  { %s7576_s18 = smov [#allocation7]   ;;  %s7577_s20 = smov [#allocation10]  }
  0x3f   :  { %s50_s19 = sshll.u32 %s7576_s18, 4  ;;  %s72_s21 = sshll.u32 %s7577_s20, 4  ;;  %s51_s19 = int_to_ptr.vmem [resolvable:$true] %s50_s19  ;;  %s73_s21 = int_to_ptr.vmem [resolvable:$true] %s72_s21 }
  0x40   :  { %s7459_s7 = scalar_lea.vmem %s51_s19, 128  ;;  %p7464_p12 = scmp.lt.s32.totalorder %s51_s19, %s51_s19 }
  0x41   :  { %p7460_p11 = scmp.ne.s32.totalorder %s51_s19, %s7459_s7  ;;  %p7465_p13 = scmp.lt.s32.totalorder %s7459_s7, %s7459_s7 }
  0x43   :  { %p7466_p0 = por %p7465_p13, %p7464_p12 }
  0x45   :  { %p7467_p1 = pnand %p7466_p0, %p7460_p11 }
  0x47   :  { %7470 = shalt.err (!%p7467_p1)
}
  0x48   :  { %53 = dma.hbm_to_vmem [thread:$0]  %s7870_s2, 128, %s51_s19, [#allocation6]  }
  0x49   :  { %s7479_s24 = scalar_lea.vmem %s73_s21, 64  ;;  %p7484_p3 = scmp.lt.s32.totalorder %s73_s21, %s73_s21 }
  0x4a   :  { %p7480_p2 = scmp.ne.s32.totalorder %s73_s21, %s7479_s24  ;;  %p7485_p4 = scmp.lt.s32.totalorder %s7479_s24, %s7479_s24 }
  0x4c   :  { %p7486_p5 = por %p7485_p4, %p7484_p3 }
  0x4e   :  { %p7487_p6 = pnand %p7486_p5, %p7480_p2 }
  0x50   :  { %7490 = shalt.err (!%p7487_p6)
}
  0x51   :  { %75 = dma.hbm_to_vmem [thread:$0]  %s7872_s4, 64, %s73_s21, [#allocation9]  }
  0x52   :  { %s7578_s25 = smov [#allocation13]   ;;  %s7579_s27 = smov [#allocation16]  }
  0x53   :  { %s94_s26 = sshll.u32 %s7578_s25, 4  ;;  %s116_s28 = sshll.u32 %s7579_s27, 4  ;;  %s95_s26 = int_to_ptr.vmem [resolvable:$true] %s94_s26  ;;  %s117_s28 = int_to_ptr.vmem [resolvable:$true] %s116_s28 }
  0x54   :  { %s7499_s29 = scalar_lea.vmem %s95_s26, 16  ;;  %s7503_s2 = scalar_lea.vmem %s95_s26, 32 }
  0x55   :  { %p7500_p7 = scmp.ne.s32.totalorder %s95_s26, %s7499_s29  ;;  %p7504_p8 = scmp.lt.s32.totalorder %s95_s26, %s95_s26 }
  0x56   :  { %p7505_p9 = scmp.lt.s32.totalorder %s7503_s2, %s7499_s29 }
  0x58   :  { %p7506_p10 = por %p7505_p9, %p7504_p8 }
  0x5a   :  { %p7507_p11 = pnand %p7506_p10, %p7500_p7 }
  0x5c   :  { %7510 = shalt.err (!%p7507_p11)
}
  0x5d   :  { %97 = dma.hbm_to_vmem [thread:$0]  %s7874_s6, 16, %s95_s26, [#allocation12]  }
  0x5e   :  { %s7519_s10 = scalar_lea.vmem %s117_s28, 16  ;;  %s7523_s4 = scalar_lea.vmem %s117_s28, 32 }
  0x5f   :  { %p7520_p12 = scmp.ne.s32.totalorder %s117_s28, %s7519_s10  ;;  %p7524_p13 = scmp.lt.s32.totalorder %s117_s28, %s117_s28 }
  0x60   :  { %p7525_p0 = scmp.lt.s32.totalorder %s7523_s4, %s7519_s10 }
  0x62   :  { %p7526_p1 = por %p7525_p0, %p7524_p13 }
  0x64   :  { %p7527_p2 = pnand %p7526_p1, %p7520_p12 }
  0x66   :  { %7530 = shalt.err (!%p7527_p2)
}
  0x67   :  { %119 = dma.hbm_to_vmem [thread:$0]  %s7876_s8, 16, %s117_s28, [#allocation15]  }
  0x68   :  { %7551 = dma.done.wait [#allocation3], 896  }
  0x69   :  { %7552 = vsyncadd [#allocation3], 4294966400 }
  0x6a   :  { %7553 = dma.done.wait [#allocation6], 57472  }
  0x6b   :  { %7554 = vsyncadd [#allocation6], 4294909824 }
  0x6c   :  { %7555 = dma.done.wait [#allocation9], 32832  }
  0x6d   :  { %7556 = vsyncadd [#allocation9], 4294934464 }
  0x6e   :  { %7557 = dma.done.wait [#allocation12], 4112  }
  0x6f   :  { %7558 = vsyncadd [#allocation12], 4294963184 }
  0x70   :  { %7559 = dma.done.wait [#allocation15], 1040  }
  0x71   :  { %7560 = vsyncadd [#allocation15], 4294966256  ;;  %v212_v0 = vld [vmem:[#allocation5 + $0x1c0] sm:$0xff]  ;;  %v7663_v56 = vld [vmem:[#allocation2 + $0x4] ss:$28 sps:$4 sm:$0xff]   ;;  %vm7582_vm0 = vmmov 0  }
  0x72   :  { %v216_v1 = vld [vmem:[#allocation5 + $0x1e0] sm:$0xff]  ;;  %v7665_v59 = vld [vmem:[#allocation2 + $0xc] ss:$28 sps:$4 sm:$0xff]   ;;  %2954 = vmatprep.mubr.bf16.mxu0 %v7663_v56  ;;  %s7583_s6 = smov [#allocation17]  }
  0x73   :  { %v340_v2 = vld [vmem:[#allocation5 + $0x5c0] sm:$0xff]  ;;  %v6113_v3 = vcombine.high %v212_v0, %v216_v1  ;;  %v6112_v5 = vcombine.low %v212_v0, %v216_v1  ;;  %2997 = vmatprep.mubr.bf16.mxu1 %v7665_v59  ;;  %s6033_s8 = sshll.u32 %s7583_s6, 4  ;;  %s6034_s8 = int_to_ptr.vmem [resolvable:$true] %s6033_s8 }
  0x74   :  { %v344_v4 = vld [vmem:[#allocation5 + $0x5e0] sm:$0xff]  ;;  %s7531_s13 = scalar_lea.vmem %s6034_s8, 256  ;;  %p7536_p4 = scmp.lt.s32.totalorder %s6034_s8, %s6034_s8 }
  0x75   :  { %v204_v6 = vld [vmem:[#allocation5 + $0x180] sm:$0xff]  ;;  %v6241_v8 = vcombine.high %v340_v2, %v344_v4  ;;  %v6240_v9 = vcombine.low %v340_v2, %v344_v4  ;;  %2922 = vmatprep.subr.bf16.mxu0 %v6113_v3  ;;  %p7532_p3 = scmp.ne.s32.totalorder %s6034_s8, %s7531_s13  ;;  %p7537_p5 = scmp.lt.s32.totalorder %s7531_s13, %s7531_s13 }
  0x76   :  { %v208_v7 = vld [vmem:[#allocation5 + $0x1a0] sm:$0xff]  ;;  %2923 = vmatpush1.bf16.msra.mxu0 %v6112_v5 }
  0x77   :  { %v6105_v10 = vcombine.high %v204_v6, %v208_v7  ;;  %v332_v11 = vld [vmem:[#allocation5 + $0x580] sm:$0xff]  ;;  %2965 = vmatprep.subr.bf16.mxu1 %v6241_v8  ;;  %v6104_v18 = vcombine.low %v204_v6, %v208_v7  ;;  %p7538_p6 = por %p7537_p5, %p7536_p4 }
  0x78   :  { %v336_v12 = vld [vmem:[#allocation5 + $0x5a0] sm:$0xff]  ;;  %2966 = vmatpush1.bf16.msra.mxu1 %v6240_v9 }
  0x79   :  { %v196_v13 = vld [vmem:[#allocation5 + $0x140] sm:$0xff]  ;;  %v6233_v14 = vcombine.high %v332_v11, %v336_v12  ;;  %2924 = vmatprep.subr.bf16.mxu0 %v6105_v10  ;;  %v6232_v19 = vcombine.low %v332_v11, %v336_v12  ;;  %p7539_p7 = pnand %p7538_p6, %p7532_p3 }
  0x7a   :  { %v200_v15 = vld [vmem:[#allocation5 + $0x160] sm:$0xff]  ;;  %2925 = vmatpush1.bf16.msra.mxu0 %v6104_v18 }
  0x7b   :  { %v324_v16 = vld [vmem:[#allocation5 + $0x540] sm:$0xff]  ;;  %v6097_v20 = vcombine.high %v196_v13, %v200_v15  ;;  %2967 = vmatprep.subr.bf16.mxu1 %v6233_v14  ;;  %v6096_v26 = vcombine.low %v196_v13, %v200_v15 }
  0x7c   :  { %v328_v17 = vld [vmem:[#allocation5 + $0x560] sm:$0xff]  ;;  %2968 = vmatpush1.bf16.msra.mxu1 %v6232_v19 }
  0x7d   :  { %v6225_v21 = vcombine.high %v324_v16, %v328_v17  ;;  %v188_v22 = vld [vmem:[#allocation5 + $0x100] sm:$0xff]  ;;  %2926 = vmatprep.subr.bf16.mxu0 %v6097_v20  ;;  %v6224_v27 = vcombine.low %v324_v16, %v328_v17 }
  0x7e   :  { %v192_v23 = vld [vmem:[#allocation5 + $0x120] sm:$0xff]  ;;  %2927 = vmatpush1.bf16.msra.mxu0 %v6096_v26 }
  0x7f   :  { %v316_v24 = vld [vmem:[#allocation5 + $0x500] sm:$0xff]  ;;  %v6089_v28 = vcombine.high %v188_v22, %v192_v23  ;;  %2969 = vmatprep.subr.bf16.mxu1 %v6225_v21  ;;  %v6088_v34 = vcombine.low %v188_v22, %v192_v23 }
  0x80   :  { %v320_v25 = vld [vmem:[#allocation5 + $0x520] sm:$0xff]  ;;  %2970 = vmatpush1.bf16.msra.mxu1 %v6224_v27 }
  0x81   :  { %v6217_v29 = vcombine.high %v316_v24, %v320_v25  ;;  %v180_v30 = vld [vmem:[#allocation5 + $0xc0] sm:$0xff]  ;;  %2928 = vmatprep.subr.bf16.mxu0 %v6089_v28  ;;  %v6216_v35 = vcombine.low %v316_v24, %v320_v25 }
  0x82   :  { %v184_v31 = vld [vmem:[#allocation5 + $0xe0] sm:$0xff]  ;;  %2929 = vmatpush1.bf16.msra.mxu0 %v6088_v34 }
  0x83   :  { %v308_v32 = vld [vmem:[#allocation5 + $0x4c0] sm:$0xff]  ;;  %v6081_v36 = vcombine.high %v180_v30, %v184_v31  ;;  %2971 = vmatprep.subr.bf16.mxu1 %v6217_v29  ;;  %v6080_v42 = vcombine.low %v180_v30, %v184_v31 }
  0x84   :  { %v312_v33 = vld [vmem:[#allocation5 + $0x4e0] sm:$0xff]  ;;  %2972 = vmatpush1.bf16.msra.mxu1 %v6216_v35 }
  0x85   :  { %v6209_v37 = vcombine.high %v308_v32, %v312_v33  ;;  %v172_v38 = vld [vmem:[#allocation5 + $0x80] sm:$0xff]  ;;  %2930 = vmatprep.subr.bf16.mxu0 %v6081_v36  ;;  %v6208_v43 = vcombine.low %v308_v32, %v312_v33 }
  0x86   :  { %v176_v39 = vld [vmem:[#allocation5 + $0xa0] sm:$0xff]  ;;  %2931 = vmatpush1.bf16.msra.mxu0 %v6080_v42 }
  0x87   :  { %v300_v40 = vld [vmem:[#allocation5 + $0x480] sm:$0xff]  ;;  %v6073_v44 = vcombine.high %v172_v38, %v176_v39  ;;  %2973 = vmatprep.subr.bf16.mxu1 %v6209_v37  ;;  %v6072_v50 = vcombine.low %v172_v38, %v176_v39 }
  0x88   :  { %v304_v41 = vld [vmem:[#allocation5 + $0x4a0] sm:$0xff]  ;;  %2974 = vmatpush1.bf16.msra.mxu1 %v6208_v43 }
  0x89   :  { %v6201_v45 = vcombine.high %v300_v40, %v304_v41  ;;  %v164_v46 = vld [vmem:[#allocation5 + $0x40] sm:$0xff]  ;;  %2932 = vmatprep.subr.bf16.mxu0 %v6073_v44  ;;  %v6200_v52 = vcombine.low %v300_v40, %v304_v41 }
  0x8a   :  { %v168_v47 = vld [vmem:[#allocation5 + $0x60] sm:$0xff]  ;;  %2933 = vmatpush1.bf16.msra.mxu0 %v6072_v50 }
  0x8b   :  { %v292_v48 = vld [vmem:[#allocation5 + $0x440] sm:$0xff]  ;;  %v6065_v53 = vcombine.high %v164_v46, %v168_v47  ;;  %2975 = vmatprep.subr.bf16.mxu1 %v6201_v45  ;;  %v6064_v60 = vcombine.low %v164_v46, %v168_v47 }
  0x8c   :  { %v296_v49 = vld [vmem:[#allocation5 + $0x460] sm:$0xff]  ;;  %2976 = vmatpush1.bf16.msra.mxu1 %v6200_v52 }
  0x8d   :  { %v156_v51 = vld [vmem:[#allocation5] sm:$0xff]  ;;  %v6193_v55 = vcombine.high %v292_v48, %v296_v49  ;;  %2934 = vmatprep.subr.bf16.mxu0 %v6065_v53  ;;  %v6192_v61 = vcombine.low %v292_v48, %v296_v49 }
  0x8e   :  { %v160_v54 = vld [vmem:[#allocation5 + $0x20] sm:$0xff]  ;;  %2935 = vmatpush1.bf16.msra.mxu0 %v6064_v60 }
  0x8f   :  { %v284_v57 = vld [vmem:[#allocation5 + $0x400] sm:$0xff]  ;;  %v6057_v62 = vcombine.high %v156_v51, %v160_v54  ;;  %2977 = vmatprep.subr.bf16.mxu1 %v6193_v55  ;;  %v6056_v4 = vcombine.low %v156_v51, %v160_v54 }
  0x90   :  { %v288_v58 = vld [vmem:[#allocation5 + $0x420] sm:$0xff]  ;;  %2978 = vmatpush1.bf16.msra.mxu1 %v6192_v61 }
  0x91   :  { %v6185_v63 = vcombine.high %v284_v57, %v288_v58  ;;  %v276_v0 = vld [vmem:[#allocation5 + $0x3c0] sm:$0xff]  ;;  %2936 = vmatprep.subr.bf16.mxu0 %v6057_v62  ;;  %v6184_v5 = vcombine.low %v284_v57, %v288_v58 }
  0x92   :  { %v280_v1 = vld [vmem:[#allocation5 + $0x3e0] sm:$0xff]  ;;  %2937 = vmatpush1.bf16.msra.mxu0 %v6056_v4 }
  0x93   :  { %v404_v2 = vld [vmem:[#allocation5 + $0x7c0] sm:$0xff]  ;;  %v6177_v6 = vcombine.high %v276_v0, %v280_v1  ;;  %2979 = vmatprep.subr.bf16.mxu1 %v6185_v63  ;;  %v6176_v12 = vcombine.low %v276_v0, %v280_v1 }
  0x94   :  { %v408_v3 = vld [vmem:[#allocation5 + $0x7e0] sm:$0xff]  ;;  %2980 = vmatpush1.bf16.msra.mxu1 %v6184_v5 }
  0x95   :  { %v6305_v7 = vcombine.high %v404_v2, %v408_v3  ;;  %v268_v8 = vld [vmem:[#allocation5 + $0x380] sm:$0xff]  ;;  %2938 = vmatprep.subr.bf16.mxu0 %v6177_v6  ;;  %v6304_v13 = vcombine.low %v404_v2, %v408_v3 }
  0x96   :  { %v272_v9 = vld [vmem:[#allocation5 + $0x3a0] sm:$0xff]  ;;  %2939 = vmatpush2.bf16.msra.mxu0 %v6176_v12 }
  0x97   :  { %v396_v10 = vld [vmem:[#allocation5 + $0x780] sm:$0xff]  ;;  %v6169_v14 = vcombine.high %v268_v8, %v272_v9  ;;  %2981 = vmatprep.subr.bf16.mxu1 %v6305_v7  ;;  %v6168_v20 = vcombine.low %v268_v8, %v272_v9 }
  0x98   :  { %v400_v11 = vld [vmem:[#allocation5 + $0x7a0] sm:$0xff]  ;;  %2982 = vmatpush2.bf16.msra.mxu1 %v6304_v13 }
  0x99   :  { %v6297_v15 = vcombine.high %v396_v10, %v400_v11  ;;  %v260_v16 = vld [vmem:[#allocation5 + $0x340] sm:$0xff]  ;;  %2940 = vmatprep.subr.bf16.mxu0 %v6169_v14  ;;  %v6296_v21 = vcombine.low %v396_v10, %v400_v11 }
  0x9a   :  { %v264_v17 = vld [vmem:[#allocation5 + $0x360] sm:$0xff]  ;;  %2941 = vmatpush2.bf16.msra.mxu0 %v6168_v20 }
  0x9b   :  { %v388_v18 = vld [vmem:[#allocation5 + $0x740] sm:$0xff]  ;;  %v6161_v22 = vcombine.high %v260_v16, %v264_v17  ;;  %2983 = vmatprep.subr.bf16.mxu1 %v6297_v15  ;;  %v6160_v28 = vcombine.low %v260_v16, %v264_v17  ;;  %v6903_v15 = vld [vmem:[#allocation2 + $0x8] ss:$28 sps:$4 sm:$0xff]  }
  0x9c   :  { %v392_v19 = vld [vmem:[#allocation5 + $0x760] sm:$0xff]  ;;  %2984 = vmatpush2.bf16.msra.mxu1 %v6296_v21 }
  0x9d   :  { %v6289_v23 = vcombine.high %v388_v18, %v392_v19  ;;  %v252_v24 = vld [vmem:[#allocation5 + $0x300] sm:$0xff]  ;;  %2942 = vmatprep.subr.bf16.mxu0 %v6161_v22  ;;  %v6288_v29 = vcombine.low %v388_v18, %v392_v19 }
  0x9e   :  { %v256_v25 = vld [vmem:[#allocation5 + $0x320] sm:$0xff]  ;;  %2943 = vmatpush2.bf16.msra.mxu0 %v6160_v28 }
  0x9f   :  { %v380_v26 = vld [vmem:[#allocation5 + $0x700] sm:$0xff]  ;;  %v6153_v30 = vcombine.high %v252_v24, %v256_v25  ;;  %2985 = vmatprep.subr.bf16.mxu1 %v6289_v23  ;;  %v6152_v36 = vcombine.low %v252_v24, %v256_v25  ;;  %v7672_v24 = vld [vmem:[#allocation2 + $0x14] ss:$28 sps:$4 sm:$0xff]  }
  0xa0   :  { %v384_v27 = vld [vmem:[#allocation5 + $0x720] sm:$0xff]  ;;  %2986 = vmatpush2.bf16.msra.mxu1 %v6288_v29 }
  0xa1   :  { %v6281_v31 = vcombine.high %v380_v26, %v384_v27  ;;  %v244_v32 = vld [vmem:[#allocation5 + $0x2c0] sm:$0xff]  ;;  %2944 = vmatprep.subr.bf16.mxu0 %v6153_v30  ;;  %v6280_v37 = vcombine.low %v380_v26, %v384_v27 }
  0xa2   :  { %v248_v33 = vld [vmem:[#allocation5 + $0x2e0] sm:$0xff]  ;;  %2945 = vmatpush2.bf16.msra.mxu0 %v6152_v36 }
  0xa3   :  { %v372_v34 = vld [vmem:[#allocation5 + $0x6c0] sm:$0xff]  ;;  %v6145_v38 = vcombine.high %v244_v32, %v248_v33  ;;  %2987 = vmatprep.subr.bf16.mxu1 %v6281_v31  ;;  %v6144_v44 = vcombine.low %v244_v32, %v248_v33  ;;  %v7580_v31 = vmov 0  }
  0xa4   :  { %v376_v35 = vld [vmem:[#allocation5 + $0x6e0] sm:$0xff]  ;;  %2988 = vmatpush2.bf16.msra.mxu1 %v6280_v37 }
  0xa5   :  { %v236_v39 = vld [vmem:[#allocation5 + $0x280] sm:$0xff]  ;;  %v6273_v40 = vcombine.high %v372_v34, %v376_v35  ;;  %2946 = vmatprep.subr.bf16.mxu0 %v6145_v38  ;;  %v6272_v45 = vcombine.low %v372_v34, %v376_v35 }
  0xa6   :  { %v240_v41 = vld [vmem:[#allocation5 + $0x2a0] sm:$0xff]  ;;  %2947 = vmatpush2.bf16.msra.mxu0 %v6144_v44 }
  0xa7   :  { %v364_v42 = vld [vmem:[#allocation5 + $0x680] sm:$0xff]  ;;  %v6137_v46 = vcombine.high %v236_v39, %v240_v41  ;;  %2989 = vmatprep.subr.bf16.mxu1 %v6273_v40  ;;  %v6136_v52 = vcombine.low %v236_v39, %v240_v41 }
  0xa8   :  { %v368_v43 = vld [vmem:[#allocation5 + $0x6a0] sm:$0xff]  ;;  %2990 = vmatpush2.bf16.msra.mxu1 %v6272_v45 }
  0xa9   :  { %v6265_v47 = vcombine.high %v364_v42, %v368_v43  ;;  %v228_v48 = vld [vmem:[#allocation5 + $0x240] sm:$0xff]  ;;  %2948 = vmatprep.subr.bf16.mxu0 %v6137_v46  ;;  %v6264_v53 = vcombine.low %v364_v42, %v368_v43 }
  0xaa   :  { %v232_v49 = vld [vmem:[#allocation5 + $0x260] sm:$0xff]  ;;  %2949 = vmatpush2.bf16.msra.mxu0 %v6136_v52 }
  0xab   :  { %v356_v50 = vld [vmem:[#allocation5 + $0x640] sm:$0xff]  ;;  %v6129_v54 = vcombine.high %v228_v48, %v232_v49  ;;  %2991 = vmatprep.subr.bf16.mxu1 %v6265_v47  ;;  %v6128_v62 = vcombine.low %v228_v48, %v232_v49 }
  0xac   :  { %v360_v51 = vld [vmem:[#allocation5 + $0x660] sm:$0xff]  ;;  %2992 = vmatpush2.bf16.msra.mxu1 %v6264_v53 }
  0xad   :  { %v6257_v55 = vcombine.high %v356_v50, %v360_v51  ;;  %v220_v57 = vld [vmem:[#allocation5 + $0x200] sm:$0xff]  ;;  %2950 = vmatprep.subr.bf16.mxu0 %v6129_v54  ;;  %v6256_v63 = vcombine.low %v356_v50, %v360_v51 }
  0xae   :  { %v224_v58 = vld [vmem:[#allocation5 + $0x220] sm:$0xff]  ;;  %2951 = vmatpush2.bf16.msra.mxu0 %v6128_v62 }
  0xaf   :  { %v348_v60 = vld [vmem:[#allocation5 + $0x600] sm:$0xff]  ;;  %v6121_v0 = vcombine.high %v220_v57, %v224_v58  ;;  %2993 = vmatprep.subr.bf16.mxu1 %v6257_v55  ;;  %v6120_v6 = vcombine.low %v220_v57, %v224_v58 }
  0xb0   :  { %v352_v61 = vld [vmem:[#allocation5 + $0x620] sm:$0xff]  ;;  %2994 = vmatpush2.bf16.msra.mxu1 %v6256_v63 }
  0xb1   :  { %v6249_v1 = vcombine.high %v348_v60, %v352_v61  ;;  %v468_v2 = vld [vmem:[#allocation5 + $0x9c0] sm:$0xff]  ;;  %2952 = vmatprep.subr.bf16.mxu0 %v6121_v0  ;;  %v6248_v7 = vcombine.low %v348_v60, %v352_v61 }
  0xb2   :  { %v472_v3 = vld [vmem:[#allocation5 + $0x9e0] sm:$0xff]  ;;  %2953 = vmatpush2.bf16.msra.mxu0 %v6120_v6 }
  0xb3   :  { %v596_v4 = vld [vmem:[#allocation5 + $0xdc0] sm:$0xff]  ;;  %v6369_v8 = vcombine.high %v468_v2, %v472_v3  ;;  %2995 = vmatprep.subr.bf16.mxu1 %v6249_v1  ;;  %v6368_v16 = vcombine.low %v468_v2, %v472_v3 }
  0xb4   :  { %v600_v5 = vld [vmem:[#allocation5 + $0xde0] sm:$0xff]  ;;  %2996 = vmatpush2.bf16.msra.mxu1 %v6248_v7 }
  0xb5   :  { %v6497_v9 = vcombine.high %v596_v4, %v600_v5  ;;  %v460_v10 = vld [vmem:[#allocation5 + $0x980] sm:$0xff]  ;;  %3008 = vmatprep.subr.bf16.mxu0 %v6369_v8  ;;  %v6496_v17 = vcombine.low %v596_v4, %v600_v5 }
  0xb6   :  { %v464_v11 = vld [vmem:[#allocation5 + $0x9a0] sm:$0xff] }
  0xb7   :  { %v7669_v12 = vld [vmem:[#allocation2] ss:$28 sps:$4 sm:$0xff]   ;;  %v6361_v18 = vcombine.high %v460_v10, %v464_v11  ;;  %3051 = vmatprep.subr.bf16.mxu1 %v6497_v9  ;;  %2998 = vmatmul.mubr.bf16.vlgmr.msra.gmra.mxu1 %v6903_v15  ;;  %v6360_v25 = vcombine.low %v460_v10, %v464_v11 }
  0xb8   :  { %v588_v13 = vld [vmem:[#allocation5 + $0xd80] sm:$0xff]  ;;  %2955 = vmatmul.mubr.bf16.vlgmr.msra.gmra.mxu0 %v7669_v12  ;;  %3052 = vmatpush1.bf16.msra.mxu1 %v6496_v17  ;;  %v213_v9 = vld [vmem:[#allocation5 + $0x1c8] sm:$0xff] }
  0xb9   :  { %v592_v14 = vld [vmem:[#allocation5 + $0xda0] sm:$0xff]  ;;  %3009 = vmatpush1.bf16.msra.mxu0 %v6368_v16  ;;  %3083 = vmatprep.mubr.bf16.mxu1 %v7580_v31  ;;  %v217_v11 = vld [vmem:[#allocation5 + $0x1e8] sm:$0xff] }
  0xba   :  { %v6489_v19 = vcombine.high %v588_v13, %v592_v14  ;;  %v452_v20 = vld [vmem:[#allocation5 + $0x940] sm:$0xff]  ;;  %3010 = vmatprep.subr.bf16.mxu0 %v6361_v18  ;;  %v6488_v26 = vcombine.low %v588_v13, %v592_v14  ;;  %3040 = vmatprep.mubr.bf16.mxu0 %v7672_v24  ;;  %v205_v18 = vld [vmem:[#allocation5 + $0x188] sm:$0xff] }
  0xbb   :  { %v456_v21 = vld [vmem:[#allocation5 + $0x960] sm:$0xff] }
  0xbc   :  { %v580_v22 = vld [vmem:[#allocation5 + $0xd40] sm:$0xff]  ;;  %v6353_v27 = vcombine.high %v452_v20, %v456_v21  ;;  %3053 = vmatprep.subr.bf16.mxu1 %v6489_v19  ;;  %v6352_v34 = vcombine.low %v452_v20, %v456_v21  ;;  %v6115_v20 = vcombine.high %v213_v9, %v217_v11  ;;  %v209_v21 = vld [vmem:[#allocation5 + $0x1a8] sm:$0xff] }
  0xbd   :  { %v584_v23 = vld [vmem:[#allocation5 + $0xd60] sm:$0xff]  ;;  %3011 = vmatpush1.bf16.msra.mxu0 %v6360_v25  ;;  %3054 = vmatpush1.bf16.msra.mxu1 %v6488_v26 }
  0xbe   :  { %v6481_v28 = vcombine.high %v580_v22, %v584_v23  ;;  %v444_v29 = vld [vmem:[#allocation5 + $0x900] sm:$0xff]  ;;  %3012 = vmatprep.subr.bf16.mxu0 %v6353_v27  ;;  %v6480_v35 = vcombine.low %v580_v22, %v584_v23  ;;  %v6114_v23 = vcombine.low %v213_v9, %v217_v11 }
  0xbf   :  { %v448_v30 = vld [vmem:[#allocation5 + $0x920] sm:$0xff] }
  0xc0   :  { %v572_v32 = vld [vmem:[#allocation5 + $0xd00] sm:$0xff]  ;;  %v6345_v36 = vcombine.high %v444_v29, %v448_v30  ;;  %3055 = vmatprep.subr.bf16.mxu1 %v6481_v28  ;;  %v6344_v42 = vcombine.low %v444_v29, %v448_v30  ;;  %v197_v28 = vld [vmem:[#allocation5 + $0x148] sm:$0xff]  ;;  %v6107_v29 = vcombine.high %v205_v18, %v209_v21 }
  0xc1   :  { %v576_v33 = vld [vmem:[#allocation5 + $0xd20] sm:$0xff]  ;;  %3013 = vmatpush1.bf16.msra.mxu0 %v6352_v34  ;;  %3056 = vmatpush1.bf16.msra.mxu1 %v6480_v35  ;;  %v201_v30 = vld [vmem:[#allocation5 + $0x168] sm:$0xff] }
  0xc2   :  { %v436_v37 = vld [vmem:[#allocation5 + $0x8c0] sm:$0xff]  ;;  %v6473_v40 = vcombine.high %v572_v32, %v576_v33  ;;  %3014 = vmatprep.subr.bf16.mxu0 %v6345_v36  ;;  %v6472_v43 = vcombine.low %v572_v32, %v576_v33  ;;  %v6106_v33 = vcombine.low %v205_v18, %v209_v21 }
  0xc3   :  { %v440_v38 = vld [vmem:[#allocation5 + $0x8e0] sm:$0xff] }
  0xc4   :  { %v564_v39 = vld [vmem:[#allocation5 + $0xcc0] sm:$0xff]  ;;  %v6337_v44 = vcombine.high %v436_v37, %v440_v38  ;;  %3057 = vmatprep.subr.bf16.mxu1 %v6473_v40  ;;  %v6336_v50 = vcombine.low %v436_v37, %v440_v38  ;;  %v189_v37 = vld [vmem:[#allocation5 + $0x108] sm:$0xff]  ;;  %v6099_v38 = vcombine.high %v197_v28, %v201_v30 }
  0xc5   :  { %v568_v41 = vld [vmem:[#allocation5 + $0xce0] sm:$0xff]  ;;  %3015 = vmatpush1.bf16.msra.mxu0 %v6344_v42  ;;  %3058 = vmatpush1.bf16.msra.mxu1 %v6472_v43 }
  0xc6   :  { %v428_v45 = vld [vmem:[#allocation5 + $0x880] sm:$0xff]  ;;  %v6465_v48 = vcombine.high %v564_v39, %v568_v41  ;;  %3016 = vmatprep.subr.bf16.mxu0 %v6337_v44  ;;  %v6464_v51 = vcombine.low %v564_v39, %v568_v41  ;;  %v193_v39 = vld [vmem:[#allocation5 + $0x128] sm:$0xff]  ;;  %v6098_v41 = vcombine.low %v197_v28, %v201_v30 }
  0xc7   :  { %v432_v46 = vld [vmem:[#allocation5 + $0x8a0] sm:$0xff] }
  0xc8   :  { %v556_v47 = vld [vmem:[#allocation5 + $0xc80] sm:$0xff]  ;;  %v6329_v52 = vcombine.high %v428_v45, %v432_v46  ;;  %3059 = vmatprep.subr.bf16.mxu1 %v6465_v48  ;;  %v6328_v60 = vcombine.low %v428_v45, %v432_v46  ;;  %v181_v45 = vld [vmem:[#allocation5 + $0xc8] sm:$0xff]  ;;  %v6091_v46 = vcombine.high %v189_v37, %v193_v39 }
  0xc9   :  { %v560_v49 = vld [vmem:[#allocation5 + $0xca0] sm:$0xff]  ;;  %3017 = vmatpush1.bf16.msra.mxu0 %v6336_v50  ;;  %3060 = vmatpush1.bf16.msra.mxu1 %v6464_v51 }
  0xca   :  { %v420_v53 = vld [vmem:[#allocation5 + $0x840] sm:$0xff]  ;;  %v6457_v57 = vcombine.high %v556_v47, %v560_v49  ;;  %3018 = vmatprep.subr.bf16.mxu0 %v6329_v52  ;;  %v6456_v61 = vcombine.low %v556_v47, %v560_v49  ;;  %v185_v47 = vld [vmem:[#allocation5 + $0xe8] sm:$0xff]  ;;  %v6090_v49 = vcombine.low %v189_v37, %v193_v39 }
  0xcb   :  { %v424_v54 = vld [vmem:[#allocation5 + $0x860] sm:$0xff]  ;;  %v173_v52 = vld [vmem:[#allocation5 + $0x88] sm:$0xff] }
  0xcc   :  { %v548_v55 = vld [vmem:[#allocation5 + $0xc40] sm:$0xff]  ;;  %v6321_v62 = vcombine.high %v420_v53, %v424_v54  ;;  %3061 = vmatprep.subr.bf16.mxu1 %v6457_v57  ;;  %v6320_v4 = vcombine.low %v420_v53, %v424_v54  ;;  %v6083_v53 = vcombine.high %v181_v45, %v185_v47  ;;  %v177_v54 = vld [vmem:[#allocation5 + $0xa8] sm:$0xff]  ;;  %v6082_v57 = vcombine.low %v181_v45, %v185_v47 }
  0xcd   :  { %v552_v58 = vld [vmem:[#allocation5 + $0xc60] sm:$0xff]  ;;  %3019 = vmatpush1.bf16.msra.mxu0 %v6328_v60  ;;  %3062 = vmatpush1.bf16.msra.mxu1 %v6456_v61 }
  0xce   :  { %v412_v63 = vld [vmem:[#allocation5 + $0x800] sm:$0xff]  ;;  %v6449_v2 = vcombine.high %v548_v55, %v552_v58  ;;  %3020 = vmatprep.subr.bf16.mxu0 %v6321_v62  ;;  %v6448_v5 = vcombine.low %v548_v55, %v552_v58  ;;  %v165_v62 = vld [vmem:[#allocation5 + $0x48] sm:$0xff] }
  0xcf   :  { %v416_v0 = vld [vmem:[#allocation5 + $0x820] sm:$0xff] }
  0xd0   :  { %v540_v1 = vld [vmem:[#allocation5 + $0xc00] sm:$0xff]  ;;  %v6313_v6 = vcombine.high %v412_v63, %v416_v0  ;;  %3063 = vmatprep.subr.bf16.mxu1 %v6449_v2  ;;  %v6312_v13 = vcombine.low %v412_v63, %v416_v0  ;;  %v6075_v63 = vcombine.high %v173_v52, %v177_v54  ;;  %v169_v0 = vld [vmem:[#allocation5 + $0x68] sm:$0xff]  ;;  %v6074_v2 = vcombine.low %v173_v52, %v177_v54 }
  0xd1   :  { %v544_v3 = vld [vmem:[#allocation5 + $0xc20] sm:$0xff]  ;;  %3021 = vmatpush1.bf16.msra.mxu0 %v6320_v4  ;;  %3064 = vmatpush1.bf16.msra.mxu1 %v6448_v5  ;;  %v237_v54 = vld [vmem:[#allocation5 + $0x288] sm:$0xff] }
  0xd2   :  { %v532_v7 = vld [vmem:[#allocation5 + $0xbc0] sm:$0xff]  ;;  %v6441_v10 = vcombine.high %v540_v1, %v544_v3  ;;  %3022 = vmatprep.subr.bf16.mxu0 %v6313_v6  ;;  %v6440_v14 = vcombine.low %v540_v1, %v544_v3  ;;  %v157_v6 = vld [vmem:[#allocation5 + $0x8] sm:$0xff] }
  0xd3   :  { %v536_v8 = vld [vmem:[#allocation5 + $0xbe0] sm:$0xff] }
  0xd4   :  { %v6433_v15 = vcombine.high %v532_v7, %v536_v8  ;;  %v524_v16 = vld [vmem:[#allocation5 + $0xb80] sm:$0xff]  ;;  %3065 = vmatprep.subr.bf16.mxu1 %v6441_v10  ;;  %v6432_v22 = vcombine.low %v532_v7, %v536_v8  ;;  %v6067_v7 = vcombine.high %v165_v62, %v169_v0  ;;  %v161_v8 = vld [vmem:[#allocation5 + $0x28] sm:$0xff]  ;;  %v6066_v10 = vcombine.low %v165_v62, %v169_v0 }
  0xd5   :  { %v528_v17 = vld [vmem:[#allocation5 + $0xba0] sm:$0xff]  ;;  %3023 = vmatpush1.bf16.msra.mxu0 %v6312_v13  ;;  %3066 = vmatpush1.bf16.msra.mxu1 %v6440_v14  ;;  %v277_v13 = vld [vmem:[#allocation5 + $0x3c8] sm:$0xff] }
  0xd6   :  { %v6904_v19 = vld [vmem:[#allocation2 + $0x18] ss:$28 sps:$4 sm:$0xff]   ;;  %3024 = vmatprep.subr.bf16.mxu0 %v6433_v15  ;;  %v6425_v25 = vcombine.high %v524_v16, %v528_v17  ;;  %3094 = vmatprep.subr.bf16.mxu1 %v6115_v20  ;;  %v6424_v32 = vcombine.low %v524_v16, %v528_v17  ;;  %v281_v14 = vld [vmem:[#allocation5 + $0x3e8] sm:$0xff]  ;;  %v6059_v16 = vcombine.high %v157_v6, %v161_v8  ;;  %v6907_v20 = vld [vmem:[#allocation2 + $0x10] ss:$28 sps:$4 sm:$0xff]  }
  0xd7   :  { %v516_v26 = vld [vmem:[#allocation5 + $0xb40] sm:$0xff]  ;;  %v341_v15 = vld [vmem:[#allocation5 + $0x5c8] sm:$0xff] }
  0xd8   :  { %v520_v27 = vld [vmem:[#allocation5 + $0xb60] sm:$0xff]  ;;  %3084 = vmatmul.mubr.bf16.vlgmr.msra.gmra.mxu1 %v6904_v19  ;;  %v345_v17 = vld [vmem:[#allocation5 + $0x5e8] sm:$0xff]  ;;  %v6058_v19 = vcombine.low %v157_v6, %v161_v8 }
  0xd9   :  { %3025 = vmatpush2.bf16.msra.mxu0 %v6432_v22  ;;  %3095 = vmatpush1.bf16.msra.mxu1 %v6114_v23  ;;  %v6417_v34 = vcombine.high %v516_v26, %v520_v27  ;;  %v508_v35 = vld [vmem:[#allocation5 + $0xb00] sm:$0xff]  ;;  %v6416_v40 = vcombine.low %v516_v26, %v520_v27  ;;  %v6243_v21 = vcombine.high %v341_v15, %v345_v17  ;;  %v269_v22 = vld [vmem:[#allocation5 + $0x388] sm:$0xff] }
  0xda   :  { %3026 = vmatprep.subr.bf16.mxu0 %v6425_v25  ;;  %v512_v36 = vld [vmem:[#allocation5 + $0xb20] sm:$0xff]  ;;  %3096 = vmatprep.subr.bf16.mxu1 %v6107_v29  ;;  %v273_v23 = vld [vmem:[#allocation5 + $0x3a8] sm:$0xff]  ;;  %v6179_v26 = vcombine.high %v277_v13, %v281_v14  ;;  %v6242_v28 = vcombine.low %v341_v15, %v345_v17  ;;  %v6178_v29 = vcombine.low %v277_v13, %v281_v14 }
  0xdb   :  { %3126 = vmatprep.mubr.bf16.mxu1 %v7663_v56  ;;  %v6409_v42 = vcombine.high %v508_v35, %v512_v36  ;;  %v500_v43 = vld [vmem:[#allocation5 + $0xac0] sm:$0xff]  ;;  %v6408_v48 = vcombine.low %v508_v35, %v512_v36  ;;  %v333_v25 = vld [vmem:[#allocation5 + $0x588] sm:$0xff] }
  0xdc   :  { %v504_v44 = vld [vmem:[#allocation5 + $0xae0] sm:$0xff]  ;;  %v337_v27 = vld [vmem:[#allocation5 + $0x5a8] sm:$0xff] }
  0xdd   :  { %3027 = vmatpush2.bf16.msra.mxu0 %v6424_v32  ;;  %3097 = vmatpush1.bf16.msra.mxu1 %v6106_v33  ;;  %v6401_v50 = vcombine.high %v500_v43, %v504_v44  ;;  %v492_v51 = vld [vmem:[#allocation5 + $0xa80] sm:$0xff]  ;;  %v6400_v55 = vcombine.low %v500_v43, %v504_v44  ;;  %v6235_v30 = vcombine.high %v333_v25, %v337_v27  ;;  %v261_v32 = vld [vmem:[#allocation5 + $0x348] sm:$0xff] }
  0xde   :  { %3028 = vmatprep.subr.bf16.mxu0 %v6417_v34  ;;  %3098 = vmatprep.subr.bf16.mxu1 %v6099_v38  ;;  %v496_v56 = vld [vmem:[#allocation5 + $0xaa0] sm:$0xff]  ;;  %v265_v33 = vld [vmem:[#allocation5 + $0x368] sm:$0xff]  ;;  %v6171_v34 = vcombine.high %v269_v22, %v273_v23  ;;  %v6234_v37 = vcombine.low %v333_v25, %v337_v27  ;;  %v6170_v38 = vcombine.low %v269_v22, %v273_v23 }
  0xdf   :  { %v6393_v58 = vcombine.high %v492_v51, %v496_v56  ;;  %v484_v60 = vld [vmem:[#allocation5 + $0xa40] sm:$0xff]  ;;  %v6392_v1 = vcombine.low %v492_v51, %v496_v56  ;;  %v325_v35 = vld [vmem:[#allocation5 + $0x548] sm:$0xff]  ;;  %v6163_v43 = vcombine.high %v261_v32, %v265_v33 }
  0xe0   :  { %v488_v61 = vld [vmem:[#allocation5 + $0xa60] sm:$0xff]  ;;  %v329_v36 = vld [vmem:[#allocation5 + $0x568] sm:$0xff] }
  0xe1   :  { %3029 = vmatpush2.bf16.msra.mxu0 %v6416_v40  ;;  %3099 = vmatpush1.bf16.msra.mxu1 %v6098_v41  ;;  %v6385_v3 = vcombine.high %v484_v60, %v488_v61  ;;  %v476_v4 = vld [vmem:[#allocation5 + $0xa00] sm:$0xff]  ;;  %v6384_v9 = vcombine.low %v484_v60, %v488_v61  ;;  %v6227_v39 = vcombine.high %v325_v35, %v329_v36  ;;  %v253_v40 = vld [vmem:[#allocation5 + $0x308] sm:$0xff] }
  0xe2   :  { %3030 = vmatprep.subr.bf16.mxu0 %v6409_v42  ;;  %3100 = vmatprep.subr.bf16.mxu1 %v6091_v46  ;;  %v480_v5 = vld [vmem:[#allocation5 + $0xa20] sm:$0xff]  ;;  %v257_v41 = vld [vmem:[#allocation5 + $0x328] sm:$0xff]  ;;  %v6226_v45 = vcombine.low %v325_v35, %v329_v36  ;;  %v6162_v46 = vcombine.low %v261_v32, %v265_v33 }
  0xe3   :  { %v6377_v11 = vcombine.high %v476_v4, %v480_v5  ;;  %v6376_v18 = vcombine.low %v476_v4, %v480_v5  ;;  %v317_v42 = vld [vmem:[#allocation5 + $0x508] sm:$0xff]  ;;  %v6154_v52 = vcombine.low %v253_v40, %v257_v41 }
  0xe4   :  { %v321_v44 = vld [vmem:[#allocation5 + $0x528] sm:$0xff] }
  0xe5   :  { %3031 = vmatpush2.bf16.msra.mxu0 %v6408_v48  ;;  %3101 = vmatpush1.bf16.msra.mxu1 %v6090_v49  ;;  %v6219_v47 = vcombine.high %v317_v42, %v321_v44  ;;  %v245_v48 = vld [vmem:[#allocation5 + $0x2c8] sm:$0xff]  ;;  %v6218_v56 = vcombine.low %v317_v42, %v321_v44 }
  0xe6   :  { %3032 = vmatprep.subr.bf16.mxu0 %v6401_v50  ;;  %3102 = vmatprep.subr.bf16.mxu1 %v6083_v53  ;;  %v249_v49 = vld [vmem:[#allocation5 + $0x2e8] sm:$0xff] }
  0xe7   :  { %v309_v50 = vld [vmem:[#allocation5 + $0x4c8] sm:$0xff]  ;;  %v6146_v62 = vcombine.low %v245_v48, %v249_v49 }
  0xe8   :  { %v313_v51 = vld [vmem:[#allocation5 + $0x4e8] sm:$0xff] }
  0xe9   :  { %3033 = vmatpush2.bf16.msra.mxu0 %v6400_v55  ;;  %3103 = vmatpush1.bf16.msra.mxu1 %v6082_v57  ;;  %v6211_v53 = vcombine.high %v309_v50, %v313_v51  ;;  %v241_v55 = vld [vmem:[#allocation5 + $0x2a8] sm:$0xff]  ;;  %v6210_v61 = vcombine.low %v309_v50, %v313_v51 }
  0xea   :  { %3034 = vmatprep.subr.bf16.mxu0 %v6393_v58  ;;  %3104 = vmatprep.subr.bf16.mxu1 %v6075_v63  ;;  %v301_v57 = vld [vmem:[#allocation5 + $0x488] sm:$0xff]  ;;  %v6147_v58 = vcombine.high %v245_v48, %v249_v49  ;;  %v6138_v6 = vcombine.low %v237_v54, %v241_v55 }
  0xeb   :  { %v305_v60 = vld [vmem:[#allocation5 + $0x4a8] sm:$0xff] }
  0xec   :  { %v6203_v63 = vcombine.high %v301_v57, %v305_v60  ;;  %v229_v0 = vld [vmem:[#allocation5 + $0x248] sm:$0xff]  ;;  %v6202_v5 = vcombine.low %v301_v57, %v305_v60 }
  0xed   :  { %3035 = vmatpush2.bf16.msra.mxu0 %v6392_v1  ;;  %3105 = vmatpush1.bf16.msra.mxu1 %v6074_v2  ;;  %v233_v1 = vld [vmem:[#allocation5 + $0x268] sm:$0xff] }
  0xee   :  { %3036 = vmatprep.subr.bf16.mxu0 %v6385_v3  ;;  %3106 = vmatprep.subr.bf16.mxu1 %v6067_v7  ;;  %v293_v2 = vld [vmem:[#allocation5 + $0x448] sm:$0xff]  ;;  %v6139_v3 = vcombine.high %v237_v54, %v241_v55  ;;  %v6130_v15 = vcombine.low %v229_v0, %v233_v1 }
  0xef   :  { %v297_v4 = vld [vmem:[#allocation5 + $0x468] sm:$0xff] }
  0xf0   :  { %v6195_v7 = vcombine.high %v293_v2, %v297_v4  ;;  %v221_v8 = vld [vmem:[#allocation5 + $0x208] sm:$0xff]  ;;  %v6194_v14 = vcombine.low %v293_v2, %v297_v4 }
  0xf1   :  { %3037 = vmatpush2.bf16.msra.mxu0 %v6384_v9  ;;  %3107 = vmatpush1.bf16.msra.mxu1 %v6066_v10  ;;  %v225_v9 = vld [vmem:[#allocation5 + $0x228] sm:$0xff] }
  0xf2   :  { %3038 = vmatprep.subr.bf16.mxu0 %v6377_v11  ;;  %3108 = vmatprep.subr.bf16.mxu1 %v6059_v16  ;;  %v285_v10 = vld [vmem:[#allocation5 + $0x408] sm:$0xff]  ;;  %v6131_v11 = vcombine.high %v229_v0, %v233_v1  ;;  %v6122_v23 = vcombine.low %v221_v8, %v225_v9 }
  0xf3   :  { %v289_v13 = vld [vmem:[#allocation5 + $0x428] sm:$0xff] }
  0xf4   :  { %v6187_v16 = vcombine.high %v285_v10, %v289_v13  ;;  %v405_v17 = vld [vmem:[#allocation5 + $0x7c8] sm:$0xff]  ;;  %v6186_v22 = vcombine.low %v285_v10, %v289_v13 }
  0xf5   :  { %3039 = vmatpush2.bf16.msra.mxu0 %v6376_v18  ;;  %3109 = vmatpush1.bf16.msra.mxu1 %v6058_v19  ;;  %v409_v18 = vld [vmem:[#allocation5 + $0x7e8] sm:$0xff] }
  0xf6   :  { %3137 = vmatprep.subr.bf16.mxu0 %v6243_v21  ;;  %3110 = vmatprep.subr.bf16.mxu1 %v6179_v26  ;;  %v469_v19 = vld [vmem:[#allocation5 + $0x9c8] sm:$0xff]  ;;  %v6307_v25 = vcombine.high %v405_v17, %v409_v18  ;;  %v6306_v32 = vcombine.low %v405_v17, %v409_v18 }
  0xf7   :  { %v473_v21 = vld [vmem:[#allocation5 + $0x9e8] sm:$0xff] }
  0xf8   :  { %3041 = vmatmul.mubr.bf16.vlgmr.msra.gmra.mxu0 %v6907_v20  ;;  %v6123_v20 = vcombine.high %v221_v8, %v225_v9  ;;  %v397_v26 = vld [vmem:[#allocation5 + $0x788] sm:$0xff]  ;;  %v6370_v33 = vcombine.low %v469_v19, %v473_v21 }
  0xf9   :  { %3138 = vmatpush1.bf16.msra.mxu0 %v6242_v28  ;;  %3169 = vmatprep.mubr.bf16.mxu0 %v7665_v59  ;;  %v6155_v59 = vcombine.high %v253_v40, %v257_v41  ;;  %v401_v27 = vld [vmem:[#allocation5 + $0x7a8] sm:$0xff] }
  0xfa   :  { %3111 = vmatpush2.bf16.msra.mxu1 %v6178_v29  ;;  %3139 = vmatprep.subr.bf16.mxu0 %v6235_v30  ;;  %v461_v28 = vld [vmem:[#allocation5 + $0x988] sm:$0xff]  ;;  %v6371_v29 = vcombine.high %v469_v19, %v473_v21  ;;  %v6298_v40 = vcombine.low %v397_v26, %v401_v27 }
  0xfb   :  { %3112 = vmatprep.subr.bf16.mxu1 %v6171_v34  ;;  %v465_v30 = vld [vmem:[#allocation5 + $0x9a8] sm:$0xff]  ;;  %v6299_v34 = vcombine.high %v397_v26, %v401_v27 }
  0xfc   :  { %v389_v35 = vld [vmem:[#allocation5 + $0x748] sm:$0xff]  ;;  %v6362_v41 = vcombine.low %v461_v28, %v465_v30 }
  0xfd   :  { %3140 = vmatpush1.bf16.msra.mxu0 %v6234_v37  ;;  %v393_v36 = vld [vmem:[#allocation5 + $0x768] sm:$0xff] }
  0xfe   :  { %3113 = vmatpush2.bf16.msra.mxu1 %v6170_v38  ;;  %3141 = vmatprep.subr.bf16.mxu0 %v6227_v39  ;;  %v453_v37 = vld [vmem:[#allocation5 + $0x948] sm:$0xff]  ;;  %v6363_v38 = vcombine.high %v461_v28, %v465_v30  ;;  %v6291_v42 = vcombine.high %v389_v35, %v393_v36  ;;  %v6290_v48 = vcombine.low %v389_v35, %v393_v36 }
  0xff   :  { %3114 = vmatprep.subr.bf16.mxu1 %v6163_v43  ;;  %v457_v39 = vld [vmem:[#allocation5 + $0x968] sm:$0xff] }
 0x100   :  { %v381_v43 = vld [vmem:[#allocation5 + $0x708] sm:$0xff]  ;;  %v6354_v49 = vcombine.low %v453_v37, %v457_v39 }
 0x101   :  { %3142 = vmatpush1.bf16.msra.mxu0 %v6226_v45  ;;  %v385_v44 = vld [vmem:[#allocation5 + $0x728] sm:$0xff] }
 0x102   :  { %3115 = vmatpush2.bf16.msra.mxu1 %v6162_v46  ;;  %3143 = vmatprep.subr.bf16.mxu0 %v6219_v47  ;;  %v445_v45 = vld [vmem:[#allocation5 + $0x908] sm:$0xff]  ;;  %v6355_v46 = vcombine.high %v453_v37, %v457_v39 }
 0x103   :  { %3116 = vmatprep.subr.bf16.mxu1 %v6155_v59  ;;  %v449_v47 = vld [vmem:[#allocation5 + $0x928] sm:$0xff] }
 0x104   :  { %v373_v50 = vld [vmem:[#allocation5 + $0x6c8] sm:$0xff]  ;;  %v6346_v54 = vcombine.low %v445_v45, %v449_v47 }
 0x105   :  { %3144 = vmatpush1.bf16.msra.mxu0 %v6218_v56  ;;  %v377_v59 = vld [vmem:[#allocation5 + $0x6e8] sm:$0xff]  ;;  %v6347_v56 = vcombine.high %v445_v45, %v449_v47 }
 0x106   :  { %3117 = vmatpush2.bf16.msra.mxu1 %v6154_v52  ;;  %3145 = vmatprep.subr.bf16.mxu0 %v6211_v53  ;;  %v437_v51 = vld [vmem:[#allocation5 + $0x8c8] sm:$0xff]  ;;  %v6282_v53 = vcombine.low %v381_v43, %v385_v44  ;;  %v6275_v55 = vcombine.high %v373_v50, %v377_v59 }
 0x107   :  { %3118 = vmatprep.subr.bf16.mxu1 %v6147_v58  ;;  %v441_v52 = vld [vmem:[#allocation5 + $0x8e8] sm:$0xff] }
 0x108   :  { %v365_v57 = vld [vmem:[#allocation5 + $0x688] sm:$0xff]  ;;  %v6339_v60 = vcombine.high %v437_v51, %v441_v52 }
 0x109   :  { %3146 = vmatpush1.bf16.msra.mxu0 %v6210_v61  ;;  %v429_v58 = vld [vmem:[#allocation5 + $0x888] sm:$0xff] }
 0x10a   :  { %3119 = vmatpush2.bf16.msra.mxu1 %v6146_v62  ;;  %3147 = vmatprep.subr.bf16.mxu0 %v6203_v63  ;;  %v433_v61 = vld [vmem:[#allocation5 + $0x8a8] sm:$0xff]  ;;  %v6274_v62 = vcombine.low %v373_v50, %v377_v59  ;;  %v6338_v63 = vcombine.low %v437_v51, %v441_v52 }
 0x10b   :  { %3120 = vmatprep.subr.bf16.mxu1 %v6139_v3  ;;  %v357_v1 = vld [vmem:[#allocation5 + $0x648] sm:$0xff]  ;;  %v6331_v4 = vcombine.high %v429_v58, %v433_v61 }
 0x10c   :  { %v361_v2 = vld [vmem:[#allocation5 + $0x668] sm:$0xff] }
 0x10d   :  { %3148 = vmatpush1.bf16.msra.mxu0 %v6202_v5  ;;  %v421_v3 = vld [vmem:[#allocation5 + $0x848] sm:$0xff]  ;;  %v6259_v8 = vcombine.high %v357_v1, %v361_v2 }
 0x10e   :  { %3121 = vmatpush2.bf16.msra.mxu1 %v6138_v6  ;;  %3149 = vmatprep.subr.bf16.mxu0 %v6195_v7  ;;  %v425_v5 = vld [vmem:[#allocation5 + $0x868] sm:$0xff]  ;;  %v6330_v7 = vcombine.low %v429_v58, %v433_v61 }
 0x10f   :  { %3122 = vmatprep.subr.bf16.mxu1 %v6131_v11  ;;  %v349_v9 = vld [vmem:[#allocation5 + $0x608] sm:$0xff]  ;;  %v6323_v13 = vcombine.high %v421_v3, %v425_v5 }
 0x110   :  { %v353_v10 = vld [vmem:[#allocation5 + $0x628] sm:$0xff] }
 0x111   :  { %3150 = vmatpush1.bf16.msra.mxu0 %v6194_v14  ;;  %v413_v11 = vld [vmem:[#allocation5 + $0x808] sm:$0xff]  ;;  %v6251_v17 = vcombine.high %v349_v9, %v353_v10 }
 0x112   :  { %3123 = vmatpush2.bf16.msra.mxu1 %v6130_v15  ;;  %3151 = vmatprep.subr.bf16.mxu0 %v6187_v16  ;;  %v417_v14 = vld [vmem:[#allocation5 + $0x828] sm:$0xff]  ;;  %v6258_v15 = vcombine.low %v357_v1, %v361_v2  ;;  %v6322_v16 = vcombine.low %v421_v3, %v425_v5 }
 0x113   :  { %3124 = vmatprep.subr.bf16.mxu1 %v6123_v20  ;;  %v533_v18 = vld [vmem:[#allocation5 + $0xbc8] sm:$0xff]  ;;  %v6315_v21 = vcombine.high %v413_v11, %v417_v14 }
 0x114   :  { %v537_v19 = vld [vmem:[#allocation5 + $0xbe8] sm:$0xff] }
 0x115   :  { %3152 = vmatpush1.bf16.msra.mxu0 %v6186_v22  ;;  %v597_v20 = vld [vmem:[#allocation5 + $0xdc8] sm:$0xff]  ;;  %v6435_v30 = vcombine.high %v533_v18, %v537_v19 }
 0x116   :  { %3125 = vmatpush2.bf16.msra.mxu1 %v6122_v23  ;;  %3153 = vmatprep.subr.bf16.mxu0 %v6307_v25  ;;  %v601_v22 = vld [vmem:[#allocation5 + $0xde8] sm:$0xff]  ;;  %v6250_v23 = vcombine.low %v349_v9, %v353_v10  ;;  %v6314_v25 = vcombine.low %v413_v11, %v417_v14 }
 0x117   :  { %3180 = vmatprep.subr.bf16.mxu1 %v6371_v29  ;;  %v6499_v26 = vcombine.high %v597_v20, %v601_v22  ;;  %v525_v27 = vld [vmem:[#allocation5 + $0xb88] sm:$0xff] }
 0x118   :  { %v529_v28 = vld [vmem:[#allocation5 + $0xba8] sm:$0xff] }
 0x119   :  { %3127 = vmatmul.mubr.bf16.vlgmr.msra.gmra.mxu1 %v7669_v12  ;;  %3154 = vmatpush2.bf16.msra.mxu0 %v6306_v32  ;;  %v6283_v12 = vcombine.high %v381_v43, %v385_v44  ;;  %v589_v29 = vld [vmem:[#allocation5 + $0xd88] sm:$0xff]  ;;  %v6427_v39 = vcombine.high %v525_v27, %v529_v28  ;;  %v6426_v43 = vcombine.low %v525_v27, %v529_v28 }
 0x11a   :  { %3181 = vmatpush1.bf16.msra.mxu1 %v6370_v33  ;;  %3155 = vmatprep.subr.bf16.mxu0 %v6299_v34  ;;  %v593_v32 = vld [vmem:[#allocation5 + $0xda8] sm:$0xff]  ;;  %v6498_v33 = vcombine.low %v597_v20, %v601_v22  ;;  %v6434_v34 = vcombine.low %v533_v18, %v537_v19  ;;  %v214_v20 = vld [vmem:[#allocation5 + $0x1d0] sm:$0xff] }
 0x11b   :  { %3182 = vmatprep.subr.bf16.mxu1 %v6363_v38  ;;  %3212 = vmatprep.mubr.bf16.mxu1 %v7672_v24  ;;  %v369_v24 = vld [vmem:[#allocation5 + $0x6a8] sm:$0xff]  ;;  %v6491_v35 = vcombine.high %v589_v29, %v593_v32  ;;  %v342_v22 = vld [vmem:[#allocation5 + $0x5d0] sm:$0xff] }
 0x11c   :  { %v6267_v0 = vcombine.high %v365_v57, %v369_v24  ;;  %v6266_v6 = vcombine.low %v365_v57, %v369_v24  ;;  %v517_v36 = vld [vmem:[#allocation5 + $0xb48] sm:$0xff] }
 0x11d   :  { %3156 = vmatpush2.bf16.msra.mxu0 %v6298_v40  ;;  %v521_v37 = vld [vmem:[#allocation5 + $0xb68] sm:$0xff] }
 0x11e   :  { %3183 = vmatpush1.bf16.msra.mxu1 %v6362_v41  ;;  %3157 = vmatprep.subr.bf16.mxu0 %v6291_v42  ;;  %v581_v38 = vld [vmem:[#allocation5 + $0xd48] sm:$0xff]  ;;  %v6490_v42 = vcombine.low %v589_v29, %v593_v32  ;;  %v6418_v50 = vcombine.low %v517_v36, %v521_v37  ;;  %v206_v29 = vld [vmem:[#allocation5 + $0x190] sm:$0xff] }
 0x11f   :  { %3184 = vmatprep.subr.bf16.mxu1 %v6355_v46  ;;  %v585_v40 = vld [vmem:[#allocation5 + $0xd68] sm:$0xff]  ;;  %v334_v32 = vld [vmem:[#allocation5 + $0x590] sm:$0xff] }
 0x120   :  { %v7680_v41 = vld [vmem:[#allocation2 + $0x8] ss:$28 sps:$4 sm:$0xff]   ;;  %v6483_v44 = vcombine.high %v581_v38, %v585_v40 }
 0x121   :  { %3158 = vmatpush2.bf16.msra.mxu0 %v6290_v48  ;;  %v509_v45 = vld [vmem:[#allocation5 + $0xb08] sm:$0xff]  ;;  %v6419_v48 = vcombine.high %v517_v36, %v521_v37 }
 0x122   :  { %3185 = vmatpush1.bf16.msra.mxu1 %v6354_v49  ;;  %3159 = vmatprep.subr.bf16.mxu0 %v6283_v12  ;;  %v513_v46 = vld [vmem:[#allocation5 + $0xb28] sm:$0xff]  ;;  %v6482_v12 = vcombine.low %v581_v38, %v585_v40  ;;  %v198_v38 = vld [vmem:[#allocation5 + $0x150] sm:$0xff] }
 0x123   :  { %3186 = vmatprep.subr.bf16.mxu1 %v6347_v56  ;;  %v573_v47 = vld [vmem:[#allocation5 + $0xd08] sm:$0xff]  ;;  %v6410_v57 = vcombine.low %v509_v45, %v513_v46  ;;  %v326_v40 = vld [vmem:[#allocation5 + $0x550] sm:$0xff] }
 0x124   :  { %v577_v49 = vld [vmem:[#allocation5 + $0xd28] sm:$0xff] }
 0x125   :  { %3160 = vmatpush2.bf16.msra.mxu0 %v6282_v53  ;;  %v6475_v59 = vcombine.high %v573_v47, %v577_v49  ;;  %v501_v51 = vld [vmem:[#allocation5 + $0xac8] sm:$0xff]  ;;  %v6411_v53 = vcombine.high %v509_v45, %v513_v46  ;;  %v7687_v45 = vld [vmem:[#allocation2 + $0x10] ss:$28 sps:$4 sm:$0xff]  }
 0x126   :  { %3187 = vmatpush1.bf16.msra.mxu1 %v6346_v54  ;;  %3161 = vmatprep.subr.bf16.mxu0 %v6275_v55  ;;  %v505_v56 = vld [vmem:[#allocation5 + $0xae8] sm:$0xff]  ;;  %v6474_v55 = vcombine.low %v573_v47, %v577_v49  ;;  %v190_v49 = vld [vmem:[#allocation5 + $0x110] sm:$0xff] }
 0x127   :  { %3188 = vmatprep.subr.bf16.mxu1 %v6339_v60  ;;  %v565_v52 = vld [vmem:[#allocation5 + $0xcc8] sm:$0xff]  ;;  %v6402_v1 = vcombine.low %v501_v51, %v505_v56 }
 0x128   :  { %v569_v54 = vld [vmem:[#allocation5 + $0xce8] sm:$0xff] }
 0x129   :  { %3162 = vmatpush2.bf16.msra.mxu0 %v6274_v62  ;;  %v6467_v24 = vcombine.high %v565_v52, %v569_v54  ;;  %v493_v58 = vld [vmem:[#allocation5 + $0xa88] sm:$0xff]  ;;  %v6403_v62 = vcombine.high %v501_v51, %v505_v56  ;;  %v322_v51 = vld [vmem:[#allocation5 + $0x530] sm:$0xff] }
 0x12a   :  { %3189 = vmatpush1.bf16.msra.mxu1 %v6338_v63  ;;  %3163 = vmatprep.subr.bf16.mxu0 %v6267_v0  ;;  %v497_v60 = vld [vmem:[#allocation5 + $0xaa8] sm:$0xff]  ;;  %v6466_v0 = vcombine.low %v565_v52, %v569_v54  ;;  %v7693_v52 = vld [vmem:[#allocation2 + $0xc] ss:$28 sps:$4 sm:$0xff]  }
 0x12b   :  { %3190 = vmatprep.subr.bf16.mxu1 %v6331_v4  ;;  %v557_v61 = vld [vmem:[#allocation5 + $0xc88] sm:$0xff]  ;;  %v6394_v9 = vcombine.low %v493_v58, %v497_v60 }
 0x12c   :  { %v561_v63 = vld [vmem:[#allocation5 + $0xca8] sm:$0xff] }
 0x12d   :  { %3164 = vmatpush2.bf16.msra.mxu0 %v6266_v6  ;;  %v6459_v2 = vcombine.high %v557_v61, %v561_v63  ;;  %v485_v3 = vld [vmem:[#allocation5 + $0xa48] sm:$0xff]  ;;  %v6395_v6 = vcombine.high %v493_v58, %v497_v60  ;;  %v310_v58 = vld [vmem:[#allocation5 + $0x4d0] sm:$0xff] }
 0x12e   :  { %3191 = vmatpush1.bf16.msra.mxu1 %v6330_v7  ;;  %3165 = vmatprep.subr.bf16.mxu0 %v6259_v8  ;;  %v489_v4 = vld [vmem:[#allocation5 + $0xa68] sm:$0xff]  ;;  %v6458_v8 = vcombine.low %v557_v61, %v561_v63  ;;  %v314_v61 = vld [vmem:[#allocation5 + $0x4f0] sm:$0xff] }
 0x12f   :  { %3192 = vmatprep.subr.bf16.mxu1 %v6323_v13  ;;  %v549_v5 = vld [vmem:[#allocation5 + $0xc48] sm:$0xff]  ;;  %v6386_v18 = vcombine.low %v485_v3, %v489_v4 }
 0x130   :  { %v553_v7 = vld [vmem:[#allocation5 + $0xc68] sm:$0xff] }
 0x131   :  { %3166 = vmatpush2.bf16.msra.mxu0 %v6258_v15  ;;  %v6451_v10 = vcombine.high %v549_v5, %v553_v7  ;;  %v477_v11 = vld [vmem:[#allocation5 + $0xa08] sm:$0xff]  ;;  %v6387_v15 = vcombine.high %v485_v3, %v489_v4  ;;  %v302_v3 = vld [vmem:[#allocation5 + $0x490] sm:$0xff]  ;;  %v6213_v4 = vcombine.high %v310_v58, %v314_v61 }
 0x132   :  { %3193 = vmatpush1.bf16.msra.mxu1 %v6322_v16  ;;  %3167 = vmatprep.subr.bf16.mxu0 %v6251_v17  ;;  %v481_v13 = vld [vmem:[#allocation5 + $0xa28] sm:$0xff]  ;;  %v6450_v17 = vcombine.low %v549_v5, %v553_v7  ;;  %v306_v5 = vld [vmem:[#allocation5 + $0x4b0] sm:$0xff]  ;;  %v6212_v7 = vcombine.low %v310_v58, %v314_v61 }
 0x133   :  { %3194 = vmatprep.subr.bf16.mxu1 %v6315_v21  ;;  %v541_v14 = vld [vmem:[#allocation5 + $0xc08] sm:$0xff]  ;;  %v218_v21 = vld [vmem:[#allocation5 + $0x1f0] sm:$0xff]  ;;  %v6378_v27 = vcombine.low %v477_v11, %v481_v13 }
 0x134   :  { %v545_v16 = vld [vmem:[#allocation5 + $0xc28] sm:$0xff]  ;;  %v6117_v28 = vcombine.high %v214_v20, %v218_v21 }
 0x135   :  { %3168 = vmatpush2.bf16.msra.mxu0 %v6250_v23  ;;  %v6443_v19 = vcombine.high %v541_v14, %v545_v16  ;;  %v6379_v23 = vcombine.high %v477_v11, %v481_v13  ;;  %v7690_v56 = vld [vmem:[#allocation2 + $0x4] ss:$28 sps:$4 sm:$0xff]   ;;  %v170_v11 = vld [vmem:[#allocation5 + $0x70] sm:$0xff] }
 0x136   :  { %3195 = vmatpush1.bf16.msra.mxu1 %v6314_v25  ;;  %3223 = vmatprep.subr.bf16.mxu0 %v6499_v26  ;;  %v346_v25 = vld [vmem:[#allocation5 + $0x5f0] sm:$0xff]  ;;  %v6442_v26 = vcombine.low %v541_v14, %v545_v16  ;;  %v606_v16 = vlaneseq }
 0x137   :  { %3196 = vmatprep.subr.bf16.mxu1 %v6435_v30  ;;  %v210_v30 = vld [vmem:[#allocation5 + $0x1b0] sm:$0xff]  ;;  %v6244_v36 = vcombine.low %v342_v22, %v346_v25 }
 0x138   :  { %3170 = vmatmul.mubr.bf16.vlgmr.msra.gmra.mxu0 %v7680_v41  ;;  %v6109_v37 = vcombine.high %v206_v29, %v210_v30  ;;  %v6108_v46 = vcombine.low %v206_v29, %v210_v30  ;;  %v294_v13 = vld [vmem:[#allocation5 + $0x450] sm:$0xff] }
 0x139   :  { %3224 = vmatpush1.bf16.msra.mxu0 %v6498_v33  ;;  %3255 = vmatprep.mubr.bf16.mxu0 %v7580_v31  ;;  %v6245_v33 = vcombine.high %v342_v22, %v346_v25  ;;  %v298_v14 = vld [vmem:[#allocation5 + $0x470] sm:$0xff] }
 0x13a   :  { %3197 = vmatpush2.bf16.msra.mxu1 %v6434_v34  ;;  %3225 = vmatprep.subr.bf16.mxu0 %v6491_v35  ;;  %v338_v34 = vld [vmem:[#allocation5 + $0x5b0] sm:$0xff]  ;;  %v6116_v35 = vcombine.low %v214_v20, %v218_v21 }
 0x13b   :  { %3198 = vmatprep.subr.bf16.mxu1 %v6427_v39  ;;  %v202_v39 = vld [vmem:[#allocation5 + $0x170] sm:$0xff]  ;;  %v6236_v47 = vcombine.low %v334_v32, %v338_v34 }
 0x13c   :  { %v158_v20 = vld [vmem:[#allocation5 + $0x10] sm:$0xff] }
 0x13d   :  { %3226 = vmatpush1.bf16.msra.mxu0 %v6490_v42  ;;  %v6237_v42 = vcombine.high %v334_v32, %v338_v34  ;;  %v162_v21 = vld [vmem:[#allocation5 + $0x30] sm:$0xff] }
 0x13e   :  { %3199 = vmatpush2.bf16.msra.mxu1 %v6426_v43  ;;  %3227 = vmatprep.subr.bf16.mxu0 %v6483_v44  ;;  %v330_v43 = vld [vmem:[#allocation5 + $0x570] sm:$0xff]  ;;  %v7684_v44 = vld [vmem:[#allocation2 + $0x18] ss:$28 sps:$4 sm:$0xff]  }
 0x13f   :  { %3200 = vmatprep.subr.bf16.mxu1 %v6419_v48  ;;  %v6101_v48 = vcombine.high %v198_v38, %v202_v39  ;;  %v6228_v54 = vcombine.low %v326_v40, %v330_v43  ;;  %v286_v22 = vld [vmem:[#allocation5 + $0x410] sm:$0xff] }
 0x140   :  { %v278_v30 = vld [vmem:[#allocation5 + $0x3d0] sm:$0xff] }
 0x141   :  { %3228 = vmatpush1.bf16.msra.mxu0 %v6482_v12  ;;  %v194_v12 = vld [vmem:[#allocation5 + $0x130] sm:$0xff] }
 0x142   :  { %3201 = vmatpush2.bf16.msra.mxu1 %v6418_v50  ;;  %3229 = vmatprep.subr.bf16.mxu0 %v6475_v59  ;;  %v318_v50 = vld [vmem:[#allocation5 + $0x510] sm:$0xff]  ;;  %v6229_v59 = vcombine.high %v326_v40, %v330_v43 }
 0x143   :  { %3202 = vmatprep.subr.bf16.mxu1 %v6411_v53  ;;  %v6100_v53 = vcombine.low %v198_v38, %v202_v39  ;;  %v6221_v60 = vcombine.high %v318_v50, %v322_v51  ;;  %v6220_v63 = vcombine.low %v318_v50, %v322_v51  ;;  %v282_v32 = vld [vmem:[#allocation5 + $0x3f0] sm:$0xff]  ;;  %v7699_v38 = vld [vmem:[#allocation7] sm:$0xff] }
 0x144   :  { %v410_v34 = vld [vmem:[#allocation5 + $0x7f0] sm:$0xff]  ;;  %v6181_v39 = vcombine.high %v278_v30, %v282_v32 }
 0x145   :  { %3230 = vmatpush1.bf16.msra.mxu0 %v6474_v55  ;;  %v6093_v55 = vcombine.high %v190_v49, %v194_v12  ;;  %v274_v43 = vld [vmem:[#allocation5 + $0x3b0] sm:$0xff] }
 0x146   :  { %3203 = vmatpush2.bf16.msra.mxu1 %v6410_v57  ;;  %3231 = vmatprep.subr.bf16.mxu0 %v6467_v24  ;;  %v182_v57 = vld [vmem:[#allocation5 + $0xd0] sm:$0xff] }
 0x147   :  { %3204 = vmatprep.subr.bf16.mxu1 %v6403_v62  ;;  %v186_v24 = vld [vmem:[#allocation5 + $0xf0] sm:$0xff]  ;;  %v6092_v62 = vcombine.low %v190_v49, %v194_v12  ;;  %v6180_v49 = vcombine.low %v278_v30, %v282_v32 }
 0x148   :  { %v262_v51 = vld [vmem:[#allocation5 + $0x350] sm:$0xff] }
 0x149   :  { %3232 = vmatpush1.bf16.msra.mxu0 %v6466_v0  ;;  %v6085_v0 = vcombine.high %v182_v57, %v186_v24 }
 0x14a   :  { %3205 = vmatpush2.bf16.msra.mxu1 %v6402_v1  ;;  %3233 = vmatprep.subr.bf16.mxu0 %v6459_v2  ;;  %v174_v1 = vld [vmem:[#allocation5 + $0x90] sm:$0xff] }
 0x14b   :  { %3206 = vmatprep.subr.bf16.mxu1 %v6395_v6  ;;  %v178_v2 = vld [vmem:[#allocation5 + $0xb0] sm:$0xff]  ;;  %v6084_v6 = vcombine.low %v182_v57, %v186_v24 }
 0x14c   :  { %v394_v57 = vld [vmem:[#allocation5 + $0x770] sm:$0xff] }
 0x14d   :  { %3234 = vmatpush1.bf16.msra.mxu0 %v6458_v8  ;;  %v6077_v8 = vcombine.high %v174_v1, %v178_v2 }
 0x14e   :  { %3207 = vmatpush2.bf16.msra.mxu1 %v6394_v9  ;;  %3235 = vmatprep.subr.bf16.mxu0 %v6451_v10  ;;  %v6205_v9 = vcombine.high %v302_v3, %v306_v5  ;;  %v166_v10 = vld [vmem:[#allocation5 + $0x50] sm:$0xff] }
 0x14f   :  { %3208 = vmatprep.subr.bf16.mxu1 %v6387_v15  ;;  %v6076_v15 = vcombine.low %v174_v1, %v178_v2  ;;  %v6068_v25 = vcombine.low %v166_v10, %v170_v11 }
 0x151   :  { %3236 = vmatpush1.bf16.msra.mxu0 %v6450_v17  ;;  %v6204_v17 = vcombine.low %v302_v3, %v306_v5  ;;  %v254_v3 = vld [vmem:[#allocation5 + $0x310] sm:$0xff] }
 0x152   :  { %3209 = vmatpush2.bf16.msra.mxu1 %v6386_v18  ;;  %3237 = vmatprep.subr.bf16.mxu0 %v6443_v19  ;;  %v6069_v18 = vcombine.high %v166_v10, %v170_v11  ;;  %v6197_v19 = vcombine.high %v294_v13, %v298_v14 }
 0x153   :  { %3210 = vmatprep.subr.bf16.mxu1 %v6379_v23  ;;  %v290_v23 = vld [vmem:[#allocation5 + $0x430] sm:$0xff] }
 0x154   :  { %v6189_v29 = vcombine.high %v286_v22, %v290_v23 }
 0x155   :  { %3238 = vmatpush1.bf16.msra.mxu0 %v6442_v26  ;;  %v7696_v26 = vshrl.u32 %v606_v16, 7  ;;  %v246_v16 = vld [vmem:[#allocation5 + $0x2d0] sm:$0xff] }
 0x156   :  { %3211 = vmatpush2.bf16.msra.mxu1 %v6378_v27  ;;  %3266 = vmatprep.subr.bf16.mxu0 %v6117_v28  ;;  %v6196_v27 = vcombine.low %v294_v13, %v298_v14  ;;  %v6061_v28 = vcombine.high %v158_v20, %v162_v21 }
 0x157   :  { %3309 = vmatprep.subr.bf16.mxu1 %v6245_v33  ;;  %v406_v33 = vld [vmem:[#allocation5 + $0x7d0] sm:$0xff] }
 0x158   :  { %3256 = vmatmul.mubr.bf16.vlgmr.msra.gmra.mxu0 %v7684_v44  ;;  %v6309_v40 = vcombine.high %v406_v33, %v410_v34  ;;  %v6308_v12 = vcombine.low %v406_v33, %v410_v34 }
 0x159   :  { %3213 = vmatmul.mubr.bf16.vlgmr.msra.gmra.mxu1 %v7687_v45  ;;  %3267 = vmatpush1.bf16.msra.mxu0 %v6116_v35  ;;  %v6060_v35 = vcombine.low %v158_v20, %v162_v21 }
 0x15a   :  { %3310 = vmatpush1.bf16.msra.mxu1 %v6244_v36  ;;  %3268 = vmatprep.subr.bf16.mxu0 %v6109_v37  ;;  %v608_v36 = vsub.s32 0, %v7696_v26  ;;  %v6188_v37 = vcombine.low %v286_v22, %v290_v23 }
 0x15b   :  { %3311 = vmatprep.subr.bf16.mxu1 %v6237_v42  ;;  %3298 = vmatprep.mubr.bf16.mxu0 %v7690_v56  ;;  %v270_v42 = vld [vmem:[#allocation5 + $0x390] sm:$0xff] }
 0x15c   :  { %3341 = vmatprep.mubr.bf16.mxu1 %v7693_v52  ;;  %v6173_v50 = vcombine.high %v270_v42, %v274_v43 }
 0x15d   :  { %3269 = vmatpush1.bf16.msra.mxu0 %v6108_v46  ;;  %v398_v46 = vld [vmem:[#allocation5 + $0x790] sm:$0xff] }
 0x15e   :  { %3312 = vmatpush1.bf16.msra.mxu1 %v6236_v47  ;;  %3270 = vmatprep.subr.bf16.mxu0 %v6101_v48  ;;  %v402_v47 = vld [vmem:[#allocation5 + $0x7b0] sm:$0xff]  ;;  %v609_v48 = vrot.slane %v7699_v38, %v608_v36 }
 0x15f   :  { %3313 = vmatprep.subr.bf16.mxu1 %v6229_v59  ;;  %v6301_v59 = vcombine.high %v398_v46, %v402_v47 }
 0x161   :  { %3271 = vmatpush1.bf16.msra.mxu0 %v6100_v53  ;;  %v266_v53 = vld [vmem:[#allocation5 + $0x370] sm:$0xff] }
 0x162   :  { %3314 = vmatpush1.bf16.msra.mxu1 %v6228_v54  ;;  %3272 = vmatprep.subr.bf16.mxu0 %v6093_v55  ;;  %v390_v55 = vld [vmem:[#allocation5 + $0x750] sm:$0xff] }
 0x163   :  { %3315 = vmatprep.subr.bf16.mxu1 %v6221_v60  ;;  %v6172_v60 = vcombine.low %v270_v42, %v274_v43  ;;  %v6293_v2 = vcombine.high %v390_v55, %v394_v57  ;;  %v6292_v11 = vcombine.low %v390_v55, %v394_v57  ;;  %v470_v55 = vld [vmem:[#allocation5 + $0x9d0] sm:$0xff] }
 0x164   :  { %v474_v57 = vld [vmem:[#allocation5 + $0x9f0] sm:$0xff] }
 0x165   :  { %3273 = vmatpush1.bf16.msra.mxu0 %v6092_v62  ;;  %v6300_v62 = vcombine.low %v398_v46, %v402_v47 }
 0x166   :  { %3316 = vmatpush1.bf16.msra.mxu1 %v6220_v63  ;;  %3274 = vmatprep.subr.bf16.mxu0 %v6085_v0  ;;  %v6165_v63 = vcombine.high %v262_v51, %v266_v53 }
 0x167   :  { %3317 = vmatprep.subr.bf16.mxu1 %v6213_v4  ;;  %v258_v4 = vld [vmem:[#allocation5 + $0x330] sm:$0xff] }
 0x168   :  { %v6157_v13 = vcombine.high %v254_v3, %v258_v4  ;;  %v6156_v20 = vcombine.low %v254_v3, %v258_v4  ;;  %v462_v3 = vld [vmem:[#allocation5 + $0x990] sm:$0xff] }
 0x169   :  { %3275 = vmatpush1.bf16.msra.mxu0 %v6084_v6  ;;  %v382_v6 = vld [vmem:[#allocation5 + $0x710] sm:$0xff] }
 0x16a   :  { %3318 = vmatpush1.bf16.msra.mxu1 %v6212_v7  ;;  %3276 = vmatprep.subr.bf16.mxu0 %v6077_v8  ;;  %v386_v7 = vld [vmem:[#allocation5 + $0x730] sm:$0xff] }
 0x16b   :  { %3319 = vmatprep.subr.bf16.mxu1 %v6205_v9  ;;  %v6164_v9 = vcombine.low %v262_v51, %v266_v53  ;;  %v6284_v21 = vcombine.low %v382_v6, %v386_v7  ;;  %v466_v4 = vld [vmem:[#allocation5 + $0x9b0] sm:$0xff] }
 0x16d   :  { %3277 = vmatpush1.bf16.msra.mxu0 %v6076_v15  ;;  %v6285_v15 = vcombine.high %v382_v6, %v386_v7  ;;  %v594_v6 = vld [vmem:[#allocation5 + $0xdb0] sm:$0xff]  ;;  %v6372_v7 = vcombine.low %v470_v55, %v474_v57 }
 0x16e   :  { %3320 = vmatpush1.bf16.msra.mxu1 %v6204_v17  ;;  %3278 = vmatprep.subr.bf16.mxu0 %v6069_v18  ;;  %v250_v17 = vld [vmem:[#allocation5 + $0x2f0] sm:$0xff] }
 0x16f   :  { %3321 = vmatprep.subr.bf16.mxu1 %v6197_v19  ;;  %v374_v18 = vld [vmem:[#allocation5 + $0x6d0] sm:$0xff]  ;;  %v6149_v22 = vcombine.high %v246_v16, %v250_v17  ;;  %v6148_v30 = vcombine.low %v246_v16, %v250_v17 }
 0x170   :  { %v378_v19 = vld [vmem:[#allocation5 + $0x6f0] sm:$0xff] }
 0x171   :  { %3279 = vmatpush1.bf16.msra.mxu0 %v6068_v25  ;;  %v6277_v23 = vcombine.high %v374_v18, %v378_v19  ;;  %v238_v25 = vld [vmem:[#allocation5 + $0x290] sm:$0xff]  ;;  %v6276_v32 = vcombine.low %v374_v18, %v378_v19  ;;  %v6364_v18 = vcombine.low %v462_v3, %v466_v4 }
 0x172   :  { %3322 = vmatpush1.bf16.msra.mxu1 %v6196_v27  ;;  %3280 = vmatprep.subr.bf16.mxu0 %v6061_v28  ;;  %v242_v27 = vld [vmem:[#allocation5 + $0x2b0] sm:$0xff] }
 0x173   :  { %3323 = vmatprep.subr.bf16.mxu1 %v6189_v29  ;;  %v366_v28 = vld [vmem:[#allocation5 + $0x690] sm:$0xff]  ;;  %v6141_v33 = vcombine.high %v238_v25, %v242_v27  ;;  %v6140_v42 = vcombine.low %v238_v25, %v242_v27 }
 0x174   :  { %v370_v29 = vld [vmem:[#allocation5 + $0x6b0] sm:$0xff] }
 0x175   :  { %3281 = vmatpush1.bf16.msra.mxu0 %v6060_v35  ;;  %v6269_v34 = vcombine.high %v366_v28, %v370_v29  ;;  %v230_v35 = vld [vmem:[#allocation5 + $0x250] sm:$0xff]  ;;  %v6268_v43 = vcombine.low %v366_v28, %v370_v29  ;;  %v7717_v28 = vld [vmem:[#allocation2 + $0x14] ss:$28 sps:$4 sm:$0xff]  }
 0x176   :  { %3324 = vmatpush1.bf16.msra.mxu1 %v6188_v37  ;;  %3282 = vmatprep.subr.bf16.mxu0 %v6181_v39  ;;  %v234_v37 = vld [vmem:[#allocation5 + $0x270] sm:$0xff] }
 0x177   :  { %3325 = vmatprep.subr.bf16.mxu1 %v6309_v40  ;;  %v2999_v58 = vpop.f32.mrf.mxu1  ;;  %v358_v39 = vld [vmem:[#allocation5 + $0x650] sm:$0xff]  ;;  %v6133_v46 = vcombine.high %v230_v35, %v234_v37 }
 0x178   :  { %v2956_v54 = vpop.f32.mrf.mxu0  ;;  %v362_v40 = vld [vmem:[#allocation5 + $0x670] sm:$0xff] }
 0x179   :  { %v2957_v24 = vadd.f32 %v2956_v54, %v609_v48  ;;  %3283 = vmatpush2.bf16.msra.mxu0 %v6180_v49  ;;  %v7708_v1 = vpop.f32.mrf.mxu1  ;;  %v6261_v47 = vcombine.high %v358_v39, %v362_v40  ;;  %v226_v49 = vld [vmem:[#allocation5 + $0x230] sm:$0xff]  ;;  %v6260_v51 = vcombine.low %v358_v39, %v362_v40 }
 0x17a   :  { %3326 = vmatpush2.bf16.msra.mxu1 %v6308_v12  ;;  %v7704_v61 = vpop.f32.mrf.mxu0  ;;  %3284 = vmatprep.subr.bf16.mxu0 %v6173_v50  ;;  %v350_v12 = vld [vmem:[#allocation5 + $0x610] sm:$0xff] }
 0x17b   :  { %v7706_v0 = vadd.f32 %v2999_v58, %v2957_v24  ;;  %3327 = vmatprep.subr.bf16.mxu1 %v6301_v59  ;;  %v3003_v10 = vpop.f32.mrf.mxu1  ;;  %v354_v50 = vld [vmem:[#allocation5 + $0x630] sm:$0xff]  ;;  %v6132_v59 = vcombine.low %v230_v35, %v234_v37 }
 0x17c   :  { %v2960_v5 = vpop.f32.mrf.mxu0  ;;  %v6253_v54 = vcombine.high %v350_v12, %v354_v50  ;;  %v598_v24 = vld [vmem:[#allocation5 + $0xdd0] sm:$0xff] }
 0x17d   :  { %v2961_v8 = vadd.f32 %v2960_v5, %v609_v48  ;;  %3285 = vmatpush2.bf16.msra.mxu0 %v6172_v60  ;;  %v222_v48 = vld [vmem:[#allocation5 + $0x210] sm:$0xff] }
 0x17e   :  { %3328 = vmatpush2.bf16.msra.mxu1 %v6300_v62  ;;  %3286 = vmatprep.subr.bf16.mxu0 %v6165_v63  ;;  %v6125_v53 = vcombine.high %v222_v48, %v226_v49  ;;  %v602_v58 = vld [vmem:[#allocation5 + $0xdf0] sm:$0xff]  ;;  %v6124_v60 = vcombine.low %v222_v48, %v226_v49  ;;  %v6252_v62 = vcombine.low %v350_v12, %v354_v50 }
 0x17f   :  { %v7710_v14 = vadd.f32 %v3003_v10, %v2961_v8  ;;  %3329 = vmatprep.subr.bf16.mxu1 %v6293_v2  ;;  %v6373_v63 = vcombine.high %v470_v55, %v474_v57  ;;  %v6501_v2 = vcombine.high %v598_v24, %v602_v58  ;;  %v590_v5 = vld [vmem:[#allocation5 + $0xd90] sm:$0xff]  ;;  %v6500_v8 = vcombine.low %v598_v24, %v602_v58 }
 0x180   :  { %v6493_v10 = vcombine.high %v590_v5, %v594_v6  ;;  %v582_v16 = vld [vmem:[#allocation5 + $0xd50] sm:$0xff]  ;;  %v6492_v19 = vcombine.low %v590_v5, %v594_v6 }
 0x181   :  { %3287 = vmatpush2.bf16.msra.mxu0 %v6164_v9  ;;  %v6365_v9 = vcombine.high %v462_v3, %v466_v4  ;;  %v586_v17 = vld [vmem:[#allocation5 + $0xd70] sm:$0xff] }
 0x182   :  { %3330 = vmatpush2.bf16.msra.mxu1 %v6292_v11  ;;  %3288 = vmatprep.subr.bf16.mxu0 %v6157_v13  ;;  %v454_v11 = vld [vmem:[#allocation5 + $0x950] sm:$0xff]  ;;  %v6484_v29 = vcombine.low %v582_v16, %v586_v17 }
 0x183   :  { %3331 = vmatprep.subr.bf16.mxu1 %v6285_v15  ;;  %v458_v13 = vld [vmem:[#allocation5 + $0x970] sm:$0xff]  ;;  %v7712_v15 = vld [vmem:[#allocation2] ss:$28 sps:$4 sm:$0xff]  }
 0x184   :  { %v574_v25 = vld [vmem:[#allocation5 + $0xd10] sm:$0xff] }
 0x185   :  { %3289 = vmatpush2.bf16.msra.mxu0 %v6156_v20  ;;  %v6357_v20 = vcombine.high %v454_v11, %v458_v13  ;;  %v578_v27 = vld [vmem:[#allocation5 + $0xd30] sm:$0xff] }
 0x186   :  { %3332 = vmatpush2.bf16.msra.mxu1 %v6284_v21  ;;  %3290 = vmatprep.subr.bf16.mxu0 %v6149_v22  ;;  %v6485_v21 = vcombine.high %v582_v16, %v586_v17  ;;  %v446_v22 = vld [vmem:[#allocation5 + $0x910] sm:$0xff]  ;;  %v6476_v40 = vcombine.low %v574_v25, %v578_v27 }
 0x187   :  { %3333 = vmatprep.subr.bf16.mxu1 %v6277_v23  ;;  %v450_v23 = vld [vmem:[#allocation5 + $0x930] sm:$0xff] }
 0x188   :  { %v566_v35 = vld [vmem:[#allocation5 + $0xcd0] sm:$0xff]  ;;  %v6348_v39 = vcombine.low %v446_v22, %v450_v23 }
 0x189   :  { %3291 = vmatpush2.bf16.msra.mxu0 %v6148_v30  ;;  %v6349_v30 = vcombine.high %v446_v22, %v450_v23  ;;  %v570_v37 = vld [vmem:[#allocation5 + $0xcf0] sm:$0xff]  ;;  %v7720_v22 = vpop.f32.mrf.mxu1  ;;  %v207_v23 = vld [vmem:[#allocation5 + $0x198] sm:$0xff] }
 0x18a   :  { %3334 = vmatpush2.bf16.msra.mxu1 %v6276_v32  ;;  %3292 = vmatprep.subr.bf16.mxu0 %v6141_v33  ;;  %v6477_v32 = vcombine.high %v574_v25, %v578_v27  ;;  %v438_v33 = vld [vmem:[#allocation5 + $0x8d0] sm:$0xff]  ;;  %v6468_v50 = vcombine.low %v566_v35, %v570_v37  ;;  %v211_v25 = vld [vmem:[#allocation5 + $0x1b8] sm:$0xff] }
 0x18b   :  { %3335 = vmatprep.subr.bf16.mxu1 %v6269_v34  ;;  %v442_v34 = vld [vmem:[#allocation5 + $0x8f0] sm:$0xff] }
 0x18c   :  { %v558_v48 = vld [vmem:[#allocation5 + $0xc90] sm:$0xff]  ;;  %v6340_v12 = vcombine.low %v438_v33, %v442_v34 }
 0x18d   :  { %3293 = vmatpush2.bf16.msra.mxu0 %v6140_v42  ;;  %v6341_v42 = vcombine.high %v438_v33, %v442_v34  ;;  %v562_v49 = vld [vmem:[#allocation5 + $0xcb0] sm:$0xff]  ;;  %v6111_v33 = vcombine.high %v207_v23, %v211_v25 }
 0x18e   :  { %3336 = vmatpush2.bf16.msra.mxu1 %v6268_v43  ;;  %3294 = vmatprep.subr.bf16.mxu0 %v6133_v46  ;;  %v6469_v43 = vcombine.high %v566_v35, %v570_v37  ;;  %v430_v46 = vld [vmem:[#allocation5 + $0x890] sm:$0xff]  ;;  %v6460_v58 = vcombine.low %v558_v48, %v562_v49 }
 0x18f   :  { %3337 = vmatprep.subr.bf16.mxu1 %v6261_v47  ;;  %v434_v47 = vld [vmem:[#allocation5 + $0x8b0] sm:$0xff] }
 0x190   :  { %v550_v55 = vld [vmem:[#allocation5 + $0xc50] sm:$0xff]  ;;  %v6332_v24 = vcombine.low %v430_v46, %v434_v47 }
 0x191   :  { %3295 = vmatpush2.bf16.msra.mxu0 %v6132_v59  ;;  %v6333_v59 = vcombine.high %v430_v46, %v434_v47  ;;  %v554_v57 = vld [vmem:[#allocation5 + $0xc70] sm:$0xff] }
 0x192   :  { %3338 = vmatpush2.bf16.msra.mxu1 %v6260_v51  ;;  %3296 = vmatprep.subr.bf16.mxu0 %v6125_v53  ;;  %v6461_v51 = vcombine.high %v558_v48, %v562_v49  ;;  %v422_v53 = vld [vmem:[#allocation5 + $0x850] sm:$0xff]  ;;  %v6452_v6 = vcombine.low %v550_v55, %v554_v57  ;;  %v6110_v48 = vcombine.low %v207_v23, %v211_v25  ;;  %v167_v25 = vld [vmem:[#allocation5 + $0x58] sm:$0xff] }
 0x193   :  { %3339 = vmatprep.subr.bf16.mxu1 %v6253_v54  ;;  %v426_v54 = vld [vmem:[#allocation5 + $0x870] sm:$0xff] }
 0x194   :  { %v542_v3 = vld [vmem:[#allocation5 + $0xc10] sm:$0xff]  ;;  %v6324_v5 = vcombine.low %v422_v53, %v426_v54 }
 0x195   :  { %3297 = vmatpush2.bf16.msra.mxu0 %v6124_v60  ;;  %v6325_v60 = vcombine.high %v422_v53, %v426_v54  ;;  %v546_v4 = vld [vmem:[#allocation5 + $0xc30] sm:$0xff]  ;;  %v191_v53 = vld [vmem:[#allocation5 + $0x118] sm:$0xff] }
 0x196   :  { %3340 = vmatpush2.bf16.msra.mxu1 %v6252_v62  ;;  %3352 = vmatprep.subr.bf16.mxu0 %v6373_v63  ;;  %v6453_v62 = vcombine.high %v550_v55, %v554_v57  ;;  %v414_v63 = vld [vmem:[#allocation5 + $0x810] sm:$0xff]  ;;  %v6444_v17 = vcombine.low %v542_v3, %v546_v4 }
 0x197   :  { %3395 = vmatprep.subr.bf16.mxu1 %v6501_v2  ;;  %v418_v2 = vld [vmem:[#allocation5 + $0x830] sm:$0xff] }
 0x198   :  { %3299 = vmatmul.mubr.bf16.vlgmr.msra.gmra.mxu0 %v7712_v15  ;;  %v6316_v16 = vcombine.low %v414_v63, %v418_v2  ;;  %v518_v34 = vld [vmem:[#allocation5 + $0xb50] sm:$0xff] }
 0x199   :  { %3342 = vmatmul.mubr.bf16.vlgmr.msra.gmra.mxu1 %v7680_v41  ;;  %3353 = vmatpush1.bf16.msra.mxu0 %v6372_v7  ;;  %v6356_v41 = vcombine.low %v454_v11, %v458_v13  ;;  %v6317_v7 = vcombine.high %v414_v63, %v418_v2  ;;  %v215_v11 = vld [vmem:[#allocation5 + $0x1d8] sm:$0xff]  ;;  %v522_v35 = vld [vmem:[#allocation5 + $0xb70] sm:$0xff] }
 0x19a   :  { %3396 = vmatpush1.bf16.msra.mxu1 %v6500_v8  ;;  %3354 = vmatprep.subr.bf16.mxu0 %v6365_v9  ;;  %v6445_v8 = vcombine.high %v542_v3, %v546_v4  ;;  %v534_v9 = vld [vmem:[#allocation5 + $0xbd0] sm:$0xff]  ;;  %v219_v13 = vld [vmem:[#allocation5 + $0x1f8] sm:$0xff]  ;;  %v6421_v49 = vcombine.high %v518_v34, %v522_v35  ;;  %v6420_v55 = vcombine.low %v518_v34, %v522_v35 }
 0x19b   :  { %3397 = vmatprep.subr.bf16.mxu1 %v6493_v10  ;;  %3427 = vmatprep.mubr.bf16.mxu1 %v7580_v31  ;;  %v538_v10 = vld [vmem:[#allocation5 + $0xbf0] sm:$0xff]  ;;  %v183_v3 = vld [vmem:[#allocation5 + $0xd8] sm:$0xff] }
 0x19c   :  { %3384 = vmatprep.mubr.bf16.mxu0 %v7717_v28  ;;  %v6436_v27 = vcombine.low %v534_v9, %v538_v10  ;;  %v502_v63 = vld [vmem:[#allocation5 + $0xad0] sm:$0xff]  ;;  %v187_v4 = vld [vmem:[#allocation5 + $0xf8] sm:$0xff] }
 0x19d   :  { %3355 = vmatpush1.bf16.msra.mxu0 %v6364_v18  ;;  %v6437_v18 = vcombine.high %v534_v9, %v538_v10  ;;  %v506_v2 = vld [vmem:[#allocation5 + $0xaf0] sm:$0xff]  ;;  %v6087_v9 = vcombine.high %v183_v3, %v187_v4 }
 0x19e   :  { %3398 = vmatpush1.bf16.msra.mxu1 %v6492_v19  ;;  %3356 = vmatprep.subr.bf16.mxu0 %v6357_v20  ;;  %v6119_v19 = vcombine.high %v215_v11, %v219_v13  ;;  %v526_v20 = vld [vmem:[#allocation5 + $0xb90] sm:$0xff] }
 0x19f   :  { %3399 = vmatprep.subr.bf16.mxu1 %v6485_v21  ;;  %v530_v21 = vld [vmem:[#allocation5 + $0xbb0] sm:$0xff] }
 0x1a0   :  { %v494_v10 = vld [vmem:[#allocation5 + $0xa90] sm:$0xff] }
 0x1a1   :  { %3357 = vmatpush1.bf16.msra.mxu0 %v6356_v41  ;;  %v7722_v41 = vpop.f32.mrf.mxu0  ;;  %v490_v23 = vld [vmem:[#allocation5 + $0xa70] sm:$0xff] }
 0x1a2   :  { %3400 = vmatpush1.bf16.msra.mxu1 %v6484_v29  ;;  %3358 = vmatprep.subr.bf16.mxu0 %v6349_v30  ;;  %v3085_v29 = vpop.f32.mrf.mxu1  ;;  %v6118_v30 = vcombine.low %v215_v11, %v219_v13  ;;  %v498_v11 = vld [vmem:[#allocation5 + $0xab0] sm:$0xff]  ;;  %v175_v13 = vld [vmem:[#allocation5 + $0x98] sm:$0xff] }
 0x1a3   :  { %3401 = vmatprep.subr.bf16.mxu1 %v6477_v32  ;;  %v6429_v32 = vcombine.high %v526_v20, %v530_v21  ;;  %v478_v34 = vld [vmem:[#allocation5 + $0xa10] sm:$0xff] }
 0x1a4   :  { %v7726_v46 = vpop.f32.mrf.mxu1  ;;  %v482_v35 = vld [vmem:[#allocation5 + $0xa30] sm:$0xff] }
 0x1a5   :  { %3359 = vmatpush1.bf16.msra.mxu0 %v6348_v39  ;;  %v199_v39 = vld [vmem:[#allocation5 + $0x158] sm:$0xff] }
 0x1a6   :  { %3402 = vmatpush1.bf16.msra.mxu1 %v6476_v40  ;;  %3360 = vmatprep.subr.bf16.mxu0 %v6341_v42  ;;  %v203_v40 = vld [vmem:[#allocation5 + $0x178] sm:$0xff]  ;;  %v3089_v57 = vpop.f32.mrf.mxu1 }
 0x1a7   :  { %3403 = vmatprep.subr.bf16.mxu1 %v6469_v43  ;;  %v6428_v43 = vcombine.low %v526_v20, %v530_v21  ;;  %v486_v21 = vld [vmem:[#allocation5 + $0xa50] sm:$0xff] }
 0x1a9   :  { %3361 = vmatpush1.bf16.msra.mxu0 %v6340_v12 }
 0x1aa   :  { %3404 = vmatpush1.bf16.msra.mxu1 %v6468_v50  ;;  %3362 = vmatprep.subr.bf16.mxu0 %v6333_v59  ;;  %v6103_v50 = vcombine.high %v199_v39, %v203_v40  ;;  %v510_v59 = vld [vmem:[#allocation5 + $0xb10] sm:$0xff] }
 0x1ab   :  { %3405 = vmatprep.subr.bf16.mxu1 %v6461_v51  ;;  %v514_v51 = vld [vmem:[#allocation5 + $0xb30] sm:$0xff] }
 0x1ad   :  { %3363 = vmatpush1.bf16.msra.mxu0 %v6332_v24  ;;  %v6102_v24 = vcombine.low %v199_v39, %v203_v40  ;;  %v163_v39 = vld [vmem:[#allocation5 + $0x38] sm:$0xff]  ;;  %v6388_v40 = vcombine.low %v486_v21, %v490_v23 }
 0x1ae   :  { %3406 = vmatpush1.bf16.msra.mxu1 %v6460_v58  ;;  %3364 = vmatprep.subr.bf16.mxu0 %v6325_v60  ;;  %v6413_v58 = vcombine.high %v510_v59, %v514_v51 }
 0x1af   :  { %3407 = vmatprep.subr.bf16.mxu1 %v6453_v62 }
 0x1b1   :  { %3365 = vmatpush1.bf16.msra.mxu0 %v6324_v5 }
 0x1b2   :  { %3408 = vmatpush1.bf16.msra.mxu1 %v6452_v6  ;;  %3366 = vmatprep.subr.bf16.mxu0 %v6317_v7  ;;  %v6412_v6 = vcombine.low %v510_v59, %v514_v51  ;;  %v6405_v7 = vcombine.high %v502_v63, %v506_v2  ;;  %v283_v59 = vld [vmem:[#allocation5 + $0x3f8] sm:$0xff]  ;;  %v6380_v51 = vcombine.low %v478_v34, %v482_v35 }
 0x1b3   :  { %3409 = vmatprep.subr.bf16.mxu1 %v6445_v8 }
 0x1b5   :  { %3367 = vmatpush1.bf16.msra.mxu0 %v6316_v16  ;;  %v179_v16 = vld [vmem:[#allocation5 + $0xb8] sm:$0xff] }
 0x1b6   :  { %3410 = vmatpush1.bf16.msra.mxu1 %v6444_v17  ;;  %3368 = vmatprep.subr.bf16.mxu0 %v6437_v18  ;;  %v6404_v17 = vcombine.low %v502_v63, %v506_v2  ;;  %v6086_v18 = vcombine.low %v183_v3, %v187_v4  ;;  %v6079_v20 = vcombine.high %v175_v13, %v179_v16  ;;  %v327_v2 = vld [vmem:[#allocation5 + $0x558] sm:$0xff] }
 0x1b7   :  { %3438 = vmatprep.subr.bf16.mxu1 %v6119_v19  ;;  %v6397_v19 = vcombine.high %v494_v10, %v498_v11  ;;  %v331_v3 = vld [vmem:[#allocation5 + $0x578] sm:$0xff] }
 0x1b8   :  { %v3042_v37 = vpop.f32.mrf.mxu0  ;;  %v263_v4 = vld [vmem:[#allocation5 + $0x358] sm:$0xff] }
 0x1b9   :  { %v3043_v42 = vadd.f32 %v3042_v37, %v7706_v0  ;;  %3428 = vmatmul.mubr.bf16.vlgmr.msra.gmra.mxu1 %v7684_v44  ;;  %3369 = vmatpush2.bf16.msra.mxu0 %v6436_v27  ;;  %v195_v44 = vld [vmem:[#allocation5 + $0x138] sm:$0xff] }
 0x1ba   :  { %3439 = vmatpush1.bf16.msra.mxu1 %v6118_v30  ;;  %v7728_v47 = vpop.f32.mrf.mxu0  ;;  %3370 = vmatprep.subr.bf16.mxu0 %v6429_v32  ;;  %v6095_v62 = vcombine.high %v191_v53, %v195_v44  ;;  %v171_v27 = vld [vmem:[#allocation5 + $0x78] sm:$0xff]  ;;  %v6078_v30 = vcombine.low %v175_v13, %v179_v16  ;;  %v6389_v32 = vcombine.high %v486_v21, %v490_v23 }
 0x1bb   :  { %v3086_v12 = vadd.f32 %v3085_v29, %v3043_v42  ;;  %3440 = vmatprep.subr.bf16.mxu1 %v6111_v33  ;;  %3470 = vmatprep.mubr.bf16.mxu1 %v7690_v56  ;;  %v6396_v29 = vcombine.low %v494_v10, %v498_v11  ;;  %v6071_v33 = vcombine.high %v167_v25, %v171_v27  ;;  %v159_v37 = vld [vmem:[#allocation5 + $0x18] sm:$0xff] }
 0x1bc   :  { %v3046_v0 = vpop.f32.mrf.mxu0  ;;  %v6070_v42 = vcombine.low %v167_v25, %v171_v27  ;;  %v323_v10 = vld [vmem:[#allocation5 + $0x538] sm:$0xff]  ;;  %v6230_v16 = vcombine.low %v327_v2, %v331_v3 }
 0x1bd   :  { %v3047_v54 = vadd.f32 %v3046_v0, %v7710_v14  ;;  %3371 = vmatpush2.bf16.msra.mxu0 %v6428_v43  ;;  %v3610_v56 = vmax.f32 %v3086_v12, 0.0  ;;  %v6094_v14 = vcombine.low %v191_v53, %v195_v44  ;;  %v6381_v43 = vcombine.high %v478_v34, %v482_v35  ;;  %v347_v12 = vld [vmem:[#allocation5 + $0x5f8] sm:$0xff] }
 0x1be   :  { %3441 = vmatpush1.bf16.msra.mxu1 %v6110_v48  ;;  %3372 = vmatprep.subr.bf16.mxu0 %v6421_v49  ;;  %v6063_v48 = vcombine.high %v159_v37, %v163_v39  ;;  %v343_v49 = vld [vmem:[#allocation5 + $0x5d8] sm:$0xff]  ;;  %v6062_v0 = vcombine.low %v159_v37, %v163_v39 }
 0x1bf   :  { %v3090_v60 = vadd.f32 %v3089_v57, %v3047_v54  ;;  %3442 = vmatprep.subr.bf16.mxu1 %v6103_v50  ;;  %v279_v50 = vld [vmem:[#allocation5 + $0x3d8] sm:$0xff]  ;;  %v6247_v53 = vcombine.high %v343_v49, %v347_v12 }
 0x1c0   :  { %v6183_v44 = vcombine.high %v279_v50, %v283_v59  ;;  %v335_v54 = vld [vmem:[#allocation5 + $0x598] sm:$0xff] }
 0x1c1   :  { %v3618_v5 = vmax.f32 %v3090_v60, 0.0  ;;  %3373 = vmatpush2.bf16.msra.mxu0 %v6420_v55  ;;  %v339_v55 = vld [vmem:[#allocation5 + $0x5b8] sm:$0xff]  ;;  %v6182_v60 = vcombine.low %v279_v50, %v283_v59 }
 0x1c2   :  { %3443 = vmatpush1.bf16.msra.mxu1 %v6102_v24  ;;  %3374 = vmatprep.subr.bf16.mxu0 %v6413_v58  ;;  %v271_v57 = vld [vmem:[#allocation5 + $0x398] sm:$0xff]  ;;  %v6246_v58 = vcombine.low %v343_v49, %v347_v12 }
 0x1c3   :  { %v7732_v8 = vpack.c.bf16 %v3618_v5, %v3610_v56  ;;  %3444 = vmatprep.subr.bf16.mxu1 %v6095_v62  ;;  %v275_v24 = vld [vmem:[#allocation5 + $0x3b8] sm:$0xff]  ;;  %v6239_v62 = vcombine.high %v335_v54, %v339_v55  ;;  %v6238_v5 = vcombine.low %v335_v54, %v339_v55 }
 0x1c4   :  { %v6175_v63 = vcombine.high %v271_v57, %v275_v24  ;;  %v267_v56 = vld [vmem:[#allocation5 + $0x378] sm:$0xff] }
 0x1c5   :  { %3375 = vmatpush2.bf16.msra.mxu0 %v6412_v6  ;;  %v6174_v6 = vcombine.low %v271_v57, %v275_v24  ;;  %v255_v11 = vld [vmem:[#allocation5 + $0x318] sm:$0xff]  ;;  %v7736_v57 = vpop.f32.mrf.mxu1 }
 0x1c6   :  { %3445 = vmatpush1.bf16.msra.mxu1 %v6094_v14  ;;  %3376 = vmatprep.subr.bf16.mxu0 %v6405_v7  ;;  %v6231_v14 = vcombine.high %v327_v2, %v331_v3  ;;  %v6167_v7 = vcombine.high %v263_v4, %v267_v56  ;;  %v259_v13 = vld [vmem:[#allocation5 + $0x338] sm:$0xff] }
 0x1c7   :  { %3446 = vmatprep.subr.bf16.mxu1 %v6087_v9  ;;  %v319_v9 = vld [vmem:[#allocation5 + $0x518] sm:$0xff]  ;;  %v6158_v25 = vcombine.low %v255_v11, %v259_v13 }
 0x1c8   :  { %v251_v21 = vld [vmem:[#allocation5 + $0x2f8] sm:$0xff]  ;;  %v6222_v23 = vcombine.low %v319_v9, %v323_v10 }
 0x1c9   :  { %3377 = vmatpush2.bf16.msra.mxu0 %v6404_v17  ;;  %v6223_v17 = vcombine.high %v319_v9, %v323_v10  ;;  %v243_v34 = vld [vmem:[#allocation5 + $0x2b8] sm:$0xff] }
 0x1ca   :  { %3447 = vmatpush1.bf16.msra.mxu1 %v6086_v18  ;;  %3378 = vmatprep.subr.bf16.mxu0 %v6397_v19  ;;  %v6159_v18 = vcombine.high %v255_v11, %v259_v13  ;;  %v311_v19 = vld [vmem:[#allocation5 + $0x4d8] sm:$0xff] }
 0x1cb   :  { %3448 = vmatprep.subr.bf16.mxu1 %v6079_v20  ;;  %v247_v20 = vld [vmem:[#allocation5 + $0x2d8] sm:$0xff] }
 0x1cc   :  { %v6150_v37 = vcombine.low %v247_v20, %v251_v21  ;;  %v235_v49 = vld [vmem:[#allocation5 + $0x278] sm:$0xff] }
 0x1cd   :  { %3379 = vmatpush2.bf16.msra.mxu0 %v6396_v29  ;;  %v6151_v29 = vcombine.high %v247_v20, %v251_v21  ;;  %v227_v54 = vld [vmem:[#allocation5 + $0x238] sm:$0xff] }
 0x1ce   :  { %3449 = vmatpush1.bf16.msra.mxu1 %v6078_v30  ;;  %3380 = vmatprep.subr.bf16.mxu0 %v6389_v32  ;;  %v303_v30 = vld [vmem:[#allocation5 + $0x498] sm:$0xff] }
 0x1cf   :  { %3450 = vmatprep.subr.bf16.mxu1 %v6071_v33  ;;  %v307_v32 = vld [vmem:[#allocation5 + $0x4b8] sm:$0xff] }
 0x1d0   :  { %v239_v33 = vld [vmem:[#allocation5 + $0x298] sm:$0xff]  ;;  %v6207_v39 = vcombine.high %v303_v30, %v307_v32  ;;  %v6206_v12 = vcombine.low %v303_v30, %v307_v32 }
 0x1d1   :  { %3381 = vmatpush2.bf16.msra.mxu0 %v6388_v40  ;;  %v6143_v40 = vcombine.high %v239_v33, %v243_v34  ;;  %v6142_v50 = vcombine.low %v239_v33, %v243_v34  ;;  %v411_v2 = vld [vmem:[#allocation5 + $0x7f8] sm:$0xff] }
 0x1d2   :  { %3451 = vmatpush1.bf16.msra.mxu1 %v6070_v42  ;;  %3382 = vmatprep.subr.bf16.mxu0 %v6381_v43  ;;  %v295_v42 = vld [vmem:[#allocation5 + $0x458] sm:$0xff] }
 0x1d3   :  { %3452 = vmatprep.subr.bf16.mxu1 %v6063_v48  ;;  %v299_v43 = vld [vmem:[#allocation5 + $0x478] sm:$0xff] }
 0x1d4   :  { %v231_v48 = vld [vmem:[#allocation5 + $0x258] sm:$0xff]  ;;  %v6199_v59 = vcombine.high %v295_v42, %v299_v43  ;;  %v6198_v55 = vcombine.low %v295_v42, %v299_v43 }
 0x1d5   :  { %3383 = vmatpush2.bf16.msra.mxu0 %v6380_v51  ;;  %v6135_v51 = vcombine.high %v231_v48, %v235_v49  ;;  %v6134_v24 = vcombine.low %v231_v48, %v235_v49  ;;  %v399_v10 = vld [vmem:[#allocation5 + $0x798] sm:$0xff] }
 0x1d6   :  { %3453 = vmatpush1.bf16.msra.mxu1 %v6062_v0  ;;  %3481 = vmatprep.subr.bf16.mxu0 %v6247_v53  ;;  %v287_v0 = vld [vmem:[#allocation5 + $0x418] sm:$0xff] }
 0x1d7   :  { %3454 = vmatprep.subr.bf16.mxu1 %v6183_v44  ;;  %v291_v53 = vld [vmem:[#allocation5 + $0x438] sm:$0xff] }
 0x1d8   :  { %3385 = vmatmul.mubr.bf16.vlgmr.msra.gmra.mxu0 %v7687_v45  ;;  %v6166_v45 = vcombine.low %v263_v4, %v267_v56  ;;  %v223_v44 = vld [vmem:[#allocation5 + $0x218] sm:$0xff] }
 0x1d9   :  { %3482 = vmatpush1.bf16.msra.mxu0 %v6246_v58  ;;  %3513 = vmatprep.mubr.bf16.mxu0 %v7693_v52  ;;  %v315_v52 = vld [vmem:[#allocation5 + $0x4f8] sm:$0xff]  ;;  %v6191_v58 = vcombine.high %v287_v0, %v291_v53  ;;  %v3128_v3 = vpop.f32.mrf.mxu1 }
 0x1da   :  { %3455 = vmatpush2.bf16.msra.mxu1 %v6182_v60  ;;  %3483 = vmatprep.subr.bf16.mxu0 %v6239_v62  ;;  %v6215_v27 = vcombine.high %v311_v19, %v315_v52  ;;  %v6214_v35 = vcombine.low %v311_v19, %v315_v52  ;;  %v616_v60 = vsub.s32 2, %v7696_v26  ;;  %v6127_v62 = vcombine.high %v223_v44, %v227_v54  ;;  %v471_v4 = vld [vmem:[#allocation5 + $0x9d8] sm:$0xff] }
 0x1db   :  { %3456 = vmatprep.subr.bf16.mxu1 %v6175_v63  ;;  %v407_v63 = vld [vmem:[#allocation5 + $0x7d8] sm:$0xff]  ;;  %v7742_v13 = vpop.f32.mrf.mxu1 }
 0x1dc   :  { %v475_v56 = vld [vmem:[#allocation5 + $0x9f8] sm:$0xff] }
 0x1dd   :  { %3484 = vmatpush1.bf16.msra.mxu0 %v6238_v5  ;;  %v6190_v5 = vcombine.low %v287_v0, %v291_v53  ;;  %v6375_v9 = vcombine.high %v471_v4, %v475_v56  ;;  %v403_v11 = vld [vmem:[#allocation5 + $0x7b8] sm:$0xff]  ;;  %v6374_v19 = vcombine.low %v471_v4, %v475_v56 }
 0x1de   :  { %3457 = vmatpush2.bf16.msra.mxu1 %v6174_v6  ;;  %3485 = vmatprep.subr.bf16.mxu0 %v6231_v14  ;;  %v6126_v6 = vcombine.low %v223_v44, %v227_v54  ;;  %v6311_v14 = vcombine.high %v407_v63, %v411_v2  ;;  %v6303_v52 = vcombine.high %v399_v10, %v403_v11  ;;  %v459_v30 = vld [vmem:[#allocation5 + $0x978] sm:$0xff] }
 0x1df   :  { %3458 = vmatprep.subr.bf16.mxu1 %v6167_v7  ;;  %v617_v7 = vrot.slane %v7699_v38, %v616_v60  ;;  %v391_v38 = vld [vmem:[#allocation5 + $0x758] sm:$0xff]  ;;  %v6302_v33 = vcombine.low %v399_v10, %v403_v11 }
 0x1e0   :  { %v383_v42 = vld [vmem:[#allocation5 + $0x718] sm:$0xff] }
 0x1e1   :  { %3486 = vmatpush1.bf16.msra.mxu0 %v6230_v16  ;;  %v463_v16 = vld [vmem:[#allocation5 + $0x998] sm:$0xff]  ;;  %v3129_v20 = vadd.f32 %v3128_v3, %v617_v7 }
 0x1e2   :  { %3459 = vmatpush2.bf16.msra.mxu1 %v6166_v45  ;;  %3487 = vmatprep.subr.bf16.mxu0 %v6223_v17  ;;  %v467_v45 = vld [vmem:[#allocation5 + $0x9b8] sm:$0xff]  ;;  %v6310_v17 = vcombine.low %v407_v63, %v411_v2 }
 0x1e3   :  { %3460 = vmatprep.subr.bf16.mxu1 %v6159_v18  ;;  %v7744_v18 = vpop.f32.mrf.mxu0  ;;  %v6367_v21 = vcombine.high %v463_v16, %v467_v45  ;;  %v387_v43 = vld [vmem:[#allocation5 + $0x738] sm:$0xff] }
 0x1e4   :  { %v447_v49 = vld [vmem:[#allocation5 + $0x918] sm:$0xff] }
 0x1e5   :  { %3488 = vmatpush1.bf16.msra.mxu0 %v6222_v23  ;;  %v395_v23 = vld [vmem:[#allocation5 + $0x778] sm:$0xff] }
 0x1e6   :  { %3461 = vmatpush2.bf16.msra.mxu1 %v6158_v25  ;;  %3489 = vmatprep.subr.bf16.mxu0 %v6215_v27  ;;  %v3132_v25 = vpop.f32.mrf.mxu1  ;;  %v375_v53 = vld [vmem:[#allocation5 + $0x6d8] sm:$0xff] }
 0x1e7   :  { %3462 = vmatprep.subr.bf16.mxu1 %v6151_v29  ;;  %v455_v29 = vld [vmem:[#allocation5 + $0x958] sm:$0xff] }
 0x1e8   :  { %v379_v44 = vld [vmem:[#allocation5 + $0x6f8] sm:$0xff] }
 0x1e9   :  { %3490 = vmatpush1.bf16.msra.mxu0 %v6214_v35  ;;  %v6366_v35 = vcombine.low %v463_v16, %v467_v45  ;;  %v439_v54 = vld [vmem:[#allocation5 + $0x8d8] sm:$0xff]  ;;  %v6278_v56 = vcombine.low %v375_v53, %v379_v44 }
 0x1ea   :  { %3463 = vmatpush2.bf16.msra.mxu1 %v6150_v37  ;;  %3491 = vmatprep.subr.bf16.mxu0 %v6207_v39  ;;  %v6295_v37 = vcombine.high %v391_v38, %v395_v23  ;;  %v3133_v39 = vadd.f32 %v3132_v25, %v617_v7  ;;  %v367_v63 = vld [vmem:[#allocation5 + $0x698] sm:$0xff] }
 0x1eb   :  { %3464 = vmatprep.subr.bf16.mxu1 %v6143_v40  ;;  %v6359_v40 = vcombine.high %v455_v29, %v459_v30  ;;  %v371_v2 = vld [vmem:[#allocation5 + $0x6b8] sm:$0xff] }
 0x1ec   :  { %v431_v3 = vld [vmem:[#allocation5 + $0x898] sm:$0xff]  ;;  %v6270_v16 = vcombine.low %v367_v63, %v371_v2 }
 0x1ed   :  { %3492 = vmatpush1.bf16.msra.mxu0 %v6206_v12  ;;  %v451_v12 = vld [vmem:[#allocation5 + $0x938] sm:$0xff] }
 0x1ee   :  { %3465 = vmatpush2.bf16.msra.mxu1 %v6142_v50  ;;  %3493 = vmatprep.subr.bf16.mxu0 %v6199_v59  ;;  %v6358_v59 = vcombine.low %v455_v29, %v459_v30  ;;  %v6351_v0 = vcombine.high %v447_v49, %v451_v12  ;;  %v435_v4 = vld [vmem:[#allocation5 + $0x8b8] sm:$0xff] }
 0x1ef   :  { %3466 = vmatprep.subr.bf16.mxu1 %v6135_v51  ;;  %v6287_v51 = vcombine.high %v383_v42, %v387_v43  ;;  %v359_v7 = vld [vmem:[#allocation5 + $0x658] sm:$0xff]  ;;  %v6334_v45 = vcombine.low %v431_v3, %v435_v4 }
 0x1f0   :  { %v423_v10 = vld [vmem:[#allocation5 + $0x858] sm:$0xff] }
 0x1f1   :  { %3494 = vmatpush1.bf16.msra.mxu0 %v6198_v55  ;;  %v443_v55 = vld [vmem:[#allocation5 + $0x8f8] sm:$0xff] }
 0x1f2   :  { %3467 = vmatpush2.bf16.msra.mxu1 %v6134_v24  ;;  %3495 = vmatprep.subr.bf16.mxu0 %v6191_v58  ;;  %v6286_v24 = vcombine.low %v383_v42, %v387_v43  ;;  %v6279_v58 = vcombine.high %v375_v53, %v379_v44  ;;  %v427_v11 = vld [vmem:[#allocation5 + $0x878] sm:$0xff]  ;;  %v7756_v44 = vpop.f32.mrf.mxu1 }
 0x1f3   :  { %3468 = vmatprep.subr.bf16.mxu1 %v6127_v62  ;;  %v6343_v62 = vcombine.high %v439_v54, %v443_v55  ;;  %v6326_v25 = vcombine.low %v423_v10, %v427_v11  ;;  %v599_v30 = vld [vmem:[#allocation5 + $0xdd8] sm:$0xff] }
 0x1f5   :  { %3496 = vmatpush1.bf16.msra.mxu0 %v6190_v5  ;;  %v6342_v5 = vcombine.low %v439_v54, %v443_v55  ;;  %v583_v55 = vld [vmem:[#allocation5 + $0xd58] sm:$0xff] }
 0x1f6   :  { %3469 = vmatpush2.bf16.msra.mxu1 %v6126_v6  ;;  %3497 = vmatprep.subr.bf16.mxu0 %v6311_v14  ;;  %v6271_v6 = vcombine.high %v367_v63, %v371_v2  ;;  %v6335_v14 = vcombine.high %v431_v3, %v435_v4  ;;  %v523_v63 = vld [vmem:[#allocation5 + $0xb78] sm:$0xff] }
 0x1f7   :  { %3524 = vmatprep.subr.bf16.mxu1 %v6375_v9  ;;  %v363_v9 = vld [vmem:[#allocation5 + $0x678] sm:$0xff] }
 0x1f8   :  { %v3171_v27 = vpop.f32.mrf.mxu0 }
 0x1f9   :  { %v7746_v32 = vadd.f32 %v3171_v27, %v3129_v20  ;;  %3471 = vmatmul.mubr.bf16.vlgmr.msra.gmra.mxu1 %v7712_v15  ;;  %3498 = vmatpush2.bf16.msra.mxu0 %v6310_v17  ;;  %v6294_v15 = vcombine.low %v391_v38, %v395_v23  ;;  %v6263_v17 = vcombine.high %v359_v7, %v363_v9  ;;  %v355_v20 = vld [vmem:[#allocation5 + $0x638] sm:$0xff] }
 0x1fa   :  { %3525 = vmatpush1.bf16.msra.mxu1 %v6374_v19  ;;  %v7749_v34 = vpop.f32.mrf.mxu0  ;;  %3499 = vmatprep.subr.bf16.mxu0 %v6303_v52  ;;  %v6327_v19 = vcombine.high %v423_v10, %v427_v11  ;;  %v351_v52 = vld [vmem:[#allocation5 + $0x618] sm:$0xff]  ;;  %v6262_v23 = vcombine.low %v359_v7, %v363_v9 }
 0x1fb   :  { %3526 = vmatprep.subr.bf16.mxu1 %v6367_v21  ;;  %3556 = vmatprep.mubr.bf16.mxu1 %v7717_v28  ;;  %v6350_v28 = vcombine.low %v447_v49, %v451_v12  ;;  %v415_v21 = vld [vmem:[#allocation5 + $0x818] sm:$0xff]  ;;  %v6255_v27 = vcombine.high %v351_v52, %v355_v20 }
 0x1fc   :  { %v3175_v48 = vpop.f32.mrf.mxu0  ;;  %v419_v38 = vld [vmem:[#allocation5 + $0x838] sm:$0xff] }
 0x1fd   :  { %v7752_v50 = vadd.f32 %v3175_v48, %v3133_v39  ;;  %3500 = vmatpush2.bf16.msra.mxu0 %v6302_v33  ;;  %v6319_v29 = vcombine.high %v415_v21, %v419_v38  ;;  %v603_v33 = vld [vmem:[#allocation5 + $0xdf8] sm:$0xff]  ;;  %v6254_v39 = vcombine.low %v351_v52, %v355_v20 }
 0x1fe   :  { %3527 = vmatpush1.bf16.msra.mxu1 %v6366_v35  ;;  %3501 = vmatprep.subr.bf16.mxu0 %v6295_v37  ;;  %v535_v35 = vld [vmem:[#allocation5 + $0xbd8] sm:$0xff]  ;;  %v6503_v42 = vcombine.high %v599_v30, %v603_v33 }
 0x1ff   :  { %3528 = vmatprep.subr.bf16.mxu1 %v6359_v40  ;;  %v539_v37 = vld [vmem:[#allocation5 + $0xbf8] sm:$0xff]  ;;  %v6318_v40 = vcombine.low %v415_v21, %v419_v38 }
 0x200   :  { %v6439_v43 = vcombine.high %v535_v35, %v539_v37  ;;  %v591_v48 = vld [vmem:[#allocation5 + $0xd98] sm:$0xff] }
 0x201   :  { %3502 = vmatpush2.bf16.msra.mxu0 %v6294_v15  ;;  %v595_v49 = vld [vmem:[#allocation5 + $0xdb8] sm:$0xff] }
 0x202   :  { %3529 = vmatpush1.bf16.msra.mxu1 %v6358_v59  ;;  %3503 = vmatprep.subr.bf16.mxu0 %v6287_v51  ;;  %v527_v12 = vld [vmem:[#allocation5 + $0xb98] sm:$0xff]  ;;  %v6502_v59 = vcombine.low %v599_v30, %v603_v33  ;;  %v7754_v51 = vpop.f32.mrf.mxu0  ;;  %v6495_v53 = vcombine.high %v591_v48, %v595_v49  ;;  %v6494_v3 = vcombine.low %v591_v48, %v595_v49  ;;  %v7767_v49 = vld [vmem:[#allocation7] sm:$0xff] }
 0x203   :  { %3530 = vmatprep.subr.bf16.mxu1 %v6351_v0  ;;  %v531_v15 = vld [vmem:[#allocation5 + $0xbb8] sm:$0xff]  ;;  %v6438_v0 = vcombine.low %v535_v35, %v539_v37 }
 0x204   :  { %v6431_v54 = vcombine.high %v527_v12, %v531_v15  ;;  %v575_v9 = vld [vmem:[#allocation5 + $0xd18] sm:$0xff] }
 0x205   :  { %3504 = vmatpush2.bf16.msra.mxu0 %v6286_v24  ;;  %v587_v24 = vld [vmem:[#allocation5 + $0xd78] sm:$0xff] }
 0x206   :  { %3531 = vmatpush1.bf16.msra.mxu1 %v6350_v28  ;;  %3505 = vmatprep.subr.bf16.mxu0 %v6279_v58  ;;  %v7347_v58 = vld [vmem:[#allocation2 + $0x8] ss:$28 sps:$4 sm:$0xff]   ;;  %v579_v10 = vld [vmem:[#allocation5 + $0xd38] sm:$0xff] }
 0x207   :  { %3532 = vmatprep.subr.bf16.mxu1 %v6343_v62  ;;  %v519_v62 = vld [vmem:[#allocation5 + $0xb58] sm:$0xff]  ;;  %v6479_v52 = vcombine.high %v575_v9, %v579_v10  ;;  %v6478_v33 = vcombine.low %v575_v9, %v579_v10 }
 0x208   :  { %v6423_v7 = vcombine.high %v519_v62, %v523_v63  ;;  %v567_v38 = vld [vmem:[#allocation5 + $0xcd8] sm:$0xff] }
 0x209   :  { %3506 = vmatpush2.bf16.msra.mxu0 %v6278_v56  ;;  %v6430_v56 = vcombine.low %v527_v12, %v531_v15  ;;  %v507_v30 = vld [vmem:[#allocation5 + $0xaf8] sm:$0xff] }
 0x20a   :  { %3533 = vmatpush1.bf16.msra.mxu1 %v6342_v5  ;;  %3507 = vmatprep.subr.bf16.mxu0 %v6271_v6  ;;  %v6487_v5 = vcombine.high %v583_v55, %v587_v24  ;;  %v563_v48 = vld [vmem:[#allocation5 + $0xcb8] sm:$0xff] }
 0x20b   :  { %3534 = vmatprep.subr.bf16.mxu1 %v6335_v14 }
 0x20d   :  { %3508 = vmatpush2.bf16.msra.mxu0 %v6270_v16  ;;  %v511_v16 = vld [vmem:[#allocation5 + $0xb18] sm:$0xff] }
 0x20e   :  { %3535 = vmatpush1.bf16.msra.mxu1 %v6334_v45  ;;  %3509 = vmatprep.subr.bf16.mxu0 %v6263_v17  ;;  %v515_v45 = vld [vmem:[#allocation5 + $0xb38] sm:$0xff] }
 0x20f   :  { %3536 = vmatprep.subr.bf16.mxu1 %v6327_v19  ;;  %v6422_v19 = vcombine.low %v519_v62, %v523_v63  ;;  %v6415_v21 = vcombine.high %v511_v16, %v515_v45  ;;  %v551_v62 = vld [vmem:[#allocation5 + $0xc58] sm:$0xff] }
 0x210   :  { %v555_v63 = vld [vmem:[#allocation5 + $0xc78] sm:$0xff] }
 0x211   :  { %3510 = vmatpush2.bf16.msra.mxu0 %v6262_v23  ;;  %v571_v23 = vld [vmem:[#allocation5 + $0xcf8] sm:$0xff]  ;;  %v6455_v10 = vcombine.high %v551_v62, %v555_v63 }
 0x212   :  { %3537 = vmatpush1.bf16.msra.mxu1 %v6326_v25  ;;  %3511 = vmatprep.subr.bf16.mxu0 %v6255_v27  ;;  %v612_v25 = vsub.s32 1, %v7696_v26 }
 0x213   :  { %3538 = vmatprep.subr.bf16.mxu1 %v6319_v29  ;;  %v503_v29 = vld [vmem:[#allocation5 + $0xad8] sm:$0xff] }
 0x214   :  { %v613_v12 = vrot.slane %v7767_v49, %v612_v25 }
 0x215   :  { %3512 = vmatpush2.bf16.msra.mxu0 %v6254_v39  ;;  %v6471_v39 = vcombine.high %v567_v38, %v571_v23 }
 0x216   :  { %3539 = vmatpush1.bf16.msra.mxu1 %v6318_v40  ;;  %3567 = vmatprep.subr.bf16.mxu0 %v6503_v42  ;;  %v620_v40 = vsub.s32 3, %v7696_v26  ;;  %v6407_v42 = vcombine.high %v503_v29, %v507_v30 }
 0x217   :  { %3540 = vmatprep.subr.bf16.mxu1 %v6439_v43  ;;  %v559_v43 = vld [vmem:[#allocation5 + $0xc98] sm:$0xff] }
 0x218   :  { %v3257_v28 = vpop.f32.mrf.mxu0  ;;  %3514 = vmatmul.mubr.bf16.vlgmr.msra.gmra.mxu0 %v7347_v58 }
 0x219   :  { %v3214_v2 = vpop.f32.mrf.mxu1  ;;  %3568 = vmatpush1.bf16.msra.mxu0 %v6502_v59  ;;  %3599 = vmatprep.mubr.bf16.mxu0 %v7580_v31  ;;  %v6486_v31 = vcombine.low %v583_v55, %v587_v24  ;;  %v495_v59 = vld [vmem:[#allocation5 + $0xa98] sm:$0xff]  ;;  %v6406_v55 = vcombine.low %v503_v29, %v507_v30  ;;  %v6463_v24 = vcombine.high %v559_v43, %v563_v48 }
 0x21a   :  { %v3215_v4 = vadd.f32 %v3214_v2, %v7746_v32  ;;  %3541 = vmatpush2.bf16.msra.mxu1 %v6438_v0  ;;  %3569 = vmatprep.subr.bf16.mxu0 %v6495_v53  ;;  %v7762_v14 = vpop.f32.mrf.mxu0  ;;  %v499_v0 = vld [vmem:[#allocation5 + $0xab8] sm:$0xff]  ;;  %v6470_v53 = vcombine.low %v567_v38, %v571_v23  ;;  %v2959_v2 = vadd.f32 %v7704_v61, %v613_v12 }
 0x21b   :  { %v7760_v6 = vpop.f32.mrf.mxu1  ;;  %3542 = vmatprep.subr.bf16.mxu1 %v6431_v54  ;;  %v2963_v54 = vadd.f32 %v7722_v41, %v613_v12  ;;  %v6399_v58 = vcombine.high %v495_v59, %v499_v0  ;;  %v6462_v41 = vcombine.low %v559_v43, %v563_v48  ;;  %v6398_v9 = vcombine.low %v495_v59, %v499_v0  ;;  %v543_v61 = vld [vmem:[#allocation5 + $0xc18] sm:$0xff] }
 0x21c   :  { %v3258_v11 = vadd.f32 %v3257_v28, %v3215_v4  ;;  %v3261_v20 = vpop.f32.mrf.mxu0  ;;  %v621_v28 = vrot.slane %v7767_v49, %v620_v40  ;;  %v491_v4 = vld [vmem:[#allocation5 + $0xa78] sm:$0xff] }
 0x21d   :  { %v3218_v17 = vpop.f32.mrf.mxu1  ;;  %3570 = vmatpush1.bf16.msra.mxu0 %v6494_v3  ;;  %v487_v3 = vld [vmem:[#allocation5 + $0xa58] sm:$0xff] }
 0x21e   :  { %v3219_v32 = vadd.f32 %v3218_v17, %v7752_v50  ;;  %3543 = vmatpush2.bf16.msra.mxu1 %v6430_v56  ;;  %3571 = vmatprep.subr.bf16.mxu0 %v6487_v5  ;;  %v3612_v35 = vmax.f32 %v3258_v11, 0.0  ;;  %v6414_v50 = vcombine.low %v511_v16, %v515_v45  ;;  %v3135_v56 = vadd.f32 %v7756_v44, %v621_v28  ;;  %v547_v17 = vld [vmem:[#allocation5 + $0xc38] sm:$0xff] }
 0x21f   :  { %3544 = vmatprep.subr.bf16.mxu1 %v6423_v7  ;;  %v3006_v5 = vadd.f32 %v7720_v22, %v2963_v54  ;;  %v3220_v7 = vpop.f32.mrf.mxu1  ;;  %v3131_v11 = vadd.f32 %v7742_v13, %v621_v28  ;;  %v6391_v45 = vcombine.high %v487_v3, %v491_v4  ;;  %v6390_v13 = vcombine.low %v487_v3, %v491_v4  ;;  %v6916_v43 = vld [vmem:[#allocation8 + $0xc4] ss:$16 sps:$4 sm:$0xff]   ;;  %v6914_v0 = vld [vmem:[#allocation8 + $0xc0] ss:$16 sps:$4 sm:$0xff]  }
 0x220   :  { %v3262_v27 = vadd.f32 %v3261_v20, %v3219_v32  ;;  %v3178_v16 = vadd.f32 %v7754_v51, %v3135_v56  ;;  %v479_v32 = vld [vmem:[#allocation5 + $0xa18] sm:$0xff]  ;;  %v6454_v20 = vcombine.low %v551_v62, %v555_v63  ;;  %v6447_v51 = vcombine.high %v543_v61, %v547_v17 }
 0x221   :  { %3572 = vmatpush1.bf16.msra.mxu0 %v6486_v31  ;;  %v3002_v31 = vadd.f32 %v7708_v1, %v2959_v2  ;;  %v3049_v44 = vadd.f32 %v7744_v18, %v3006_v5  ;;  %v3174_v22 = vadd.f32 %v7749_v34, %v3131_v11  ;;  %v3263_v18 = vpop.f32.mrf.mxu0  ;;  %v6446_v29 = vcombine.low %v543_v61, %v547_v17  ;;  %v6919_v12 = vld [vmem:[#allocation8 + $0x2c4] ss:$16 sps:$4 sm:$0xff]   ;;  %v6923_v28 = vld [vmem:[#allocation8 + $0x2a0] ss:$16 sps:$4 sm:$0xff]  }
 0x222   :  { %v3620_v37 = vmax.f32 %v3262_v27, 0.0  ;;  %3545 = vmatpush2.bf16.msra.mxu1 %v6422_v19  ;;  %3573 = vmatprep.subr.bf16.mxu0 %v6479_v52  ;;  %v483_v19 = vld [vmem:[#allocation5 + $0xa38] sm:$0xff]  ;;  %v3221_v52 = vadd.f32 %v3220_v7, %v3178_v16 }
 0x223   :  { %3546 = vmatprep.subr.bf16.mxu1 %v6415_v21  ;;  %v3045_v21 = vadd.f32 %v7728_v47, %v3002_v31  ;;  %v3217_v38 = vadd.f32 %v7760_v6, %v3174_v22  ;;  %v6383_v23 = vcombine.high %v479_v32, %v483_v19  ;;  %v3092_v1 = vadd.f32 %v7736_v57, %v3049_v44  ;;  %v6910_v47 = vld [vmem:[#allocation8 + $0xe4] ss:$16 sps:$4 sm:$0xff]   ;;  %v6911_v57 = vld [vmem:[#allocation8 + $0x2e0] ss:$16 sps:$4 sm:$0xff]  }
 0x224   :  { %v7772_v15 = vpack.c.bf16 %v3620_v37, %v3612_v35  ;;  %v3264_v27 = vadd.f32 %v3263_v18, %v3221_v52  ;;  %v6382_v30 = vcombine.low %v479_v32, %v483_v19  ;;  %v6913_v35 = vld [vmem:[#allocation8 + $0x2e4] ss:$16 sps:$4 sm:$0xff]   ;;  %v6926_v63 = vld [vmem:[#allocation8 + $0x80] ss:$16 sps:$4 sm:$0xff]  }
 0x225   :  { %3574 = vmatpush1.bf16.msra.mxu0 %v6478_v33  ;;  %v3088_v34 = vadd.f32 %v7726_v46, %v3045_v21  ;;  %v3260_v33 = vadd.f32 %v7762_v14, %v3217_v38  ;;  %v3619_v37 = vmax.f32 %v3092_v1, 0.0  ;;  %v7349_v46 = vld [vmem:[#allocation2 + $0x18] ss:$28 sps:$4 sm:$0xff]   ;;  %v7350_v14 = vld [vmem:[#allocation2 + $0x10] ss:$28 sps:$4 sm:$0xff]  }
 0x226   :  { %3547 = vmatpush2.bf16.msra.mxu1 %v6414_v50  ;;  %3575 = vmatprep.subr.bf16.mxu0 %v6471_v39  ;;  %v3621_v6 = vmax.f32 %v3264_v27, 0.0  ;;  %v6908_v50 = vld [vmem:[#allocation8 + $0xe0] ss:$16 sps:$4 sm:$0xff]   ;;  %v6922_v54 = vld [vmem:[#allocation8 + $0xa4] ss:$16 sps:$4 sm:$0xff]  }
 0x227   :  { %3548 = vmatprep.subr.bf16.mxu1 %v6407_v42  ;;  %v3611_v39 = vmax.f32 %v3088_v34, 0.0  ;;  %v3613_v42 = vmax.f32 %v3260_v33, 0.0  ;;  %v6931_v62 = vld [vmem:[#allocation8 + $0x284] ss:$16 sps:$4 sm:$0xff]   ;;  %v6929_v2 = vld [vmem:[#allocation8 + $0x280] ss:$16 sps:$4 sm:$0xff]  }
 0x228   :  { %v6934_v3 = vld [vmem:[#allocation8 + $0x64] ss:$16 sps:$4 sm:$0xff]   ;;  %v6932_v56 = vld [vmem:[#allocation8 + $0x60] ss:$16 sps:$4 sm:$0xff]  }
 0x229   :  { %3576 = vmatpush1.bf16.msra.mxu0 %v6470_v53  ;;  %v7791_v48 = vpack.c.bf16 %v3619_v37, %v3611_v39  ;;  %v7793_v59 = vpack.c.bf16 %v3621_v6, %v3613_v42  ;;  %v6917_v53 = vld [vmem:[#allocation8 + $0x2c0] ss:$16 sps:$4 sm:$0xff]   ;;  %v6937_v4 = vld [vmem:[#allocation8 + $0x264] ss:$16 sps:$4 sm:$0xff]  }
 0x22a   :  { %3549 = vmatpush2.bf16.msra.mxu1 %v6406_v55  ;;  %3577 = vmatprep.subr.bf16.mxu0 %v6463_v24  ;;  %v6925_v55 = vld [vmem:[#allocation8 + $0x2a4] ss:$16 sps:$4 sm:$0xff]   ;;  %v6920_v24 = vld [vmem:[#allocation8 + $0xa0] ss:$16 sps:$4 sm:$0xff]  }
 0x22b   :  { %3550 = vmatprep.subr.bf16.mxu1 %v6399_v58  ;;  %v6928_v58 = vld [vmem:[#allocation8 + $0x84] ss:$16 sps:$4 sm:$0xff]   ;;  %v6947_v61 = vld [vmem:[#allocation8 + $0x220] ss:$16 sps:$4 sm:$0xff]  }
 0x22c   :  { %v6940_v5 = vld [vmem:[#allocation8 + $0x44] ss:$16 sps:$4 sm:$0xff]   ;;  %v6950_v44 = vld [vmem:[#allocation8] ss:$16 sps:$4 sm:$0xff]  }
 0x22d   :  { %3578 = vmatpush1.bf16.msra.mxu0 %v6462_v41  ;;  %v6935_v41 = vld [vmem:[#allocation8 + $0x260] ss:$16 sps:$4 sm:$0xff]   ;;  %v6943_v7 = vld [vmem:[#allocation8 + $0x244] ss:$16 sps:$4 sm:$0xff]  }
 0x22e   :  { %3551 = vmatpush2.bf16.msra.mxu1 %v6398_v9  ;;  %3579 = vmatprep.subr.bf16.mxu0 %v6455_v10  ;;  %v6938_v9 = vld [vmem:[#allocation8 + $0x40] ss:$16 sps:$4 sm:$0xff]   ;;  %v6946_v11 = vld [vmem:[#allocation8 + $0x24] ss:$16 sps:$4 sm:$0xff]  }
 0x22f   :  { %3552 = vmatprep.subr.bf16.mxu1 %v6391_v45  ;;  %v6941_v10 = vld [vmem:[#allocation8 + $0x240] ss:$16 sps:$4 sm:$0xff]   ;;  %v6949_v16 = vld [vmem:[#allocation8 + $0x224] ss:$16 sps:$4 sm:$0xff]  }
 0x230   :  { %v6944_v45 = vld [vmem:[#allocation8 + $0x20] ss:$16 sps:$4 sm:$0xff]   ;;  %v6952_v17 = vld [vmem:[#allocation8 + $0x4] ss:$16 sps:$4 sm:$0xff]  }
 0x231   :  { %3580 = vmatpush1.bf16.msra.mxu0 %v6454_v20  ;;  %v6955_v31 = vld [vmem:[#allocation8 + $0x204] ss:$16 sps:$4 sm:$0xff]   ;;  %v6953_v32 = vld [vmem:[#allocation8 + $0x200] ss:$16 sps:$4 sm:$0xff]  }
 0x232   :  { %3553 = vmatpush2.bf16.msra.mxu1 %v6390_v13  ;;  %3581 = vmatprep.subr.bf16.mxu0 %v6447_v51  ;;  %v6958_v19 = vld [vmem:[#allocation8 + $0x1e4] ss:$16 sps:$4 sm:$0xff]   ;;  %v6956_v52 = vld [vmem:[#allocation8 + $0x1e0] ss:$16 sps:$4 sm:$0xff]  }
 0x233   :  { %3554 = vmatprep.subr.bf16.mxu1 %v6383_v23  ;;  %v6961_v22 = vld [vmem:[#allocation8 + $0x3e4] ss:$16 sps:$4 sm:$0xff]   ;;  %v6959_v20 = vld [vmem:[#allocation8 + $0x3e0] ss:$16 sps:$4 sm:$0xff]  }
 0x234   :  { %v6964_v21 = vld [vmem:[#allocation8 + $0x1c4] ss:$16 sps:$4 sm:$0xff]   ;;  %v6962_v51 = vld [vmem:[#allocation8 + $0x1c0] ss:$16 sps:$4 sm:$0xff]  }
 0x235   :  { %3582 = vmatpush1.bf16.msra.mxu0 %v6446_v29  ;;  %v6967_v13 = vld [vmem:[#allocation8 + $0x3c4] ss:$16 sps:$4 sm:$0xff]   ;;  %v6965_v38 = vld [vmem:[#allocation8 + $0x3c0] ss:$16 sps:$4 sm:$0xff]  }
 0x236   :  { %3555 = vmatpush2.bf16.msra.mxu1 %v6382_v30  ;;  %5192 = vmatprep.subr.bf16.mxu0 %v6910_v47  ;;  %v6970_v23 = vld [vmem:[#allocation8 + $0x1a4] ss:$16 sps:$4 sm:$0xff]   ;;  %v6968_v18 = vld [vmem:[#allocation8 + $0x1a0] ss:$16 sps:$4 sm:$0xff]  }
 0x237   :  { %5235 = vmatprep.subr.bf16.mxu1 %v6913_v35  ;;  %v6973_v1 = vld [vmem:[#allocation8 + $0x3a4] ss:$16 sps:$4 sm:$0xff]   ;;  %v6971_v27 = vld [vmem:[#allocation8 + $0x3a0] ss:$16 sps:$4 sm:$0xff]  }
 0x238   :  { %3600 = vmatmul.mubr.bf16.vlgmr.msra.gmra.mxu0 %v7349_v46  ;;  %v6976_v29 = vld [vmem:[#allocation8 + $0x184] ss:$16 sps:$4 sm:$0xff]   ;;  %v6974_v30 = vld [vmem:[#allocation8 + $0x180] ss:$16 sps:$4 sm:$0xff]  }
 0x239   :  { %3557 = vmatmul.mubr.bf16.vlgmr.msra.gmra.mxu1 %v7350_v14  ;;  %5193 = vmatpush1.bf16.msra.mxu0 %v6908_v50  ;;  %v6979_v34 = vld [vmem:[#allocation8 + $0x384] ss:$16 sps:$4 sm:$0xff]   ;;  %v6977_v47 = vld [vmem:[#allocation8 + $0x380] ss:$16 sps:$4 sm:$0xff]  }
 0x23a   :  { %5224 = vmatprep.mubr.bf16.mxu0 %v7791_v48  ;;  %5236 = vmatpush1.bf16.msra.mxu1 %v6911_v57  ;;  %v6982_v33 = vld [vmem:[#allocation8 + $0x164] ss:$16 sps:$4 sm:$0xff]   ;;  %v6980_v37 = vld [vmem:[#allocation8 + $0x160] ss:$16 sps:$4 sm:$0xff]  }
 0x23b   :  { %5267 = vmatprep.mubr.bf16.mxu1 %v7793_v59  ;;  %5194 = vmatprep.subr.bf16.mxu0 %v6916_v43  ;;  %v6985_v35 = vld [vmem:[#allocation8 + $0x364] ss:$16 sps:$4 sm:$0xff]   ;;  %v6983_v6 = vld [vmem:[#allocation8 + $0x360] ss:$16 sps:$4 sm:$0xff]  }
 0x23c   :  { %5237 = vmatprep.subr.bf16.mxu1 %v6919_v12  ;;  %v6988_v50 = vld [vmem:[#allocation8 + $0x144] ss:$16 sps:$4 sm:$0xff]   ;;  %v6986_v57 = vld [vmem:[#allocation8 + $0x140] ss:$16 sps:$4 sm:$0xff]  }
 0x23d   :  { %5195 = vmatpush1.bf16.msra.mxu0 %v6914_v0  ;;  %v6991_v39 = vld [vmem:[#allocation8 + $0x344] ss:$16 sps:$4 sm:$0xff]   ;;  %v6989_v42 = vld [vmem:[#allocation8 + $0x340] ss:$16 sps:$4 sm:$0xff]  }
 0x23e   :  { %5238 = vmatpush1.bf16.msra.mxu1 %v6917_v53  ;;  %5196 = vmatprep.subr.bf16.mxu0 %v6922_v54  ;;  %v6994_v43 = vld [vmem:[#allocation8 + $0x124] ss:$16 sps:$4 sm:$0xff]   ;;  %v6992_v12 = vld [vmem:[#allocation8 + $0x120] ss:$16 sps:$4 sm:$0xff]  }
 0x23f   :  { %5239 = vmatprep.subr.bf16.mxu1 %v6925_v55  ;;  %v6997_v46 = vld [vmem:[#allocation8 + $0x324] ss:$16 sps:$4 sm:$0xff]   ;;  %v6995_v14 = vld [vmem:[#allocation8 + $0x320] ss:$16 sps:$4 sm:$0xff]  }
 0x240   :  { %v7000_v0 = vld [vmem:[#allocation8 + $0x104] ss:$16 sps:$4 sm:$0xff]   ;;  %v6998_v54 = vld [vmem:[#allocation8 + $0x100] ss:$16 sps:$4 sm:$0xff]  }
 0x241   :  { %5197 = vmatpush1.bf16.msra.mxu0 %v6920_v24  ;;  %v7003_v53 = vld [vmem:[#allocation8 + $0x304] ss:$16 sps:$4 sm:$0xff]   ;;  %v7001_v55 = vld [vmem:[#allocation8 + $0x300] ss:$16 sps:$4 sm:$0xff]  }
 0x242   :  { %5240 = vmatpush1.bf16.msra.mxu1 %v6923_v28  ;;  %5198 = vmatprep.subr.bf16.mxu0 %v6928_v58  ;;  %v7006_v24 = vld [vmem:[#allocation8 + $0x4e4] ss:$16 sps:$4 sm:$0xff]   ;;  %v7004_v58 = vld [vmem:[#allocation8 + $0x4e0] ss:$16 sps:$4 sm:$0xff]  }
 0x243   :  { %5241 = vmatprep.subr.bf16.mxu1 %v6931_v62  ;;  %v7066_v28 = vld [vmem:[#allocation8 + $0x6e4] ss:$16 sps:$4 sm:$0xff]  }
 0x244   :  { %v7009_v62 = vld [vmem:[#allocation8 + $0x4c4] ss:$16 sps:$4 sm:$0xff]  }
 0x245   :  { %5199 = vmatpush1.bf16.msra.mxu0 %v6926_v63  ;;  %v7064_v63 = vld [vmem:[#allocation8 + $0x6e0] ss:$16 sps:$4 sm:$0xff]  }
 0x246   :  { %5242 = vmatpush1.bf16.msra.mxu1 %v6929_v2  ;;  %5200 = vmatprep.subr.bf16.mxu0 %v6934_v3  ;;  %v7072_v2 = vld [vmem:[#allocation8 + $0x6c4] ss:$16 sps:$4 sm:$0xff]   ;;  %v7007_v3 = vld [vmem:[#allocation8 + $0x4c0] ss:$16 sps:$4 sm:$0xff]  }
 0x247   :  { %5243 = vmatprep.subr.bf16.mxu1 %v6937_v4  ;;  %v7012_v4 = vld [vmem:[#allocation8 + $0x4a4] ss:$16 sps:$4 sm:$0xff]  }
 0x249   :  { %5201 = vmatpush1.bf16.msra.mxu0 %v6932_v56  ;;  %v7070_v56 = vld [vmem:[#allocation8 + $0x6c0] ss:$16 sps:$4 sm:$0xff]  }
 0x24a   :  { %5244 = vmatpush1.bf16.msra.mxu1 %v6935_v41  ;;  %5202 = vmatprep.subr.bf16.mxu0 %v6940_v5  ;;  %v7078_v41 = vld [vmem:[#allocation8 + $0x6a4] ss:$16 sps:$4 sm:$0xff]   ;;  %v7010_v5 = vld [vmem:[#allocation8 + $0x4a0] ss:$16 sps:$4 sm:$0xff]  }
 0x24b   :  { %5245 = vmatprep.subr.bf16.mxu1 %v6943_v7  ;;  %v7015_v7 = vld [vmem:[#allocation8 + $0x484] ss:$16 sps:$4 sm:$0xff]  }
 0x24d   :  { %5203 = vmatpush1.bf16.msra.mxu0 %v6938_v9  ;;  %v7076_v9 = vld [vmem:[#allocation8 + $0x6a0] ss:$16 sps:$4 sm:$0xff]  }
 0x24e   :  { %5246 = vmatpush1.bf16.msra.mxu1 %v6941_v10  ;;  %5204 = vmatprep.subr.bf16.mxu0 %v6946_v11  ;;  %v7084_v10 = vld [vmem:[#allocation8 + $0x684] ss:$16 sps:$4 sm:$0xff]   ;;  %v7013_v11 = vld [vmem:[#allocation8 + $0x480] ss:$16 sps:$4 sm:$0xff]  }
 0x24f   :  { %5247 = vmatprep.subr.bf16.mxu1 %v6949_v16  ;;  %v7018_v16 = vld [vmem:[#allocation8 + $0x464] ss:$16 sps:$4 sm:$0xff]  }
 0x251   :  { %5205 = vmatpush1.bf16.msra.mxu0 %v6944_v45  ;;  %v7082_v45 = vld [vmem:[#allocation8 + $0x680] ss:$16 sps:$4 sm:$0xff]  }
 0x252   :  { %5248 = vmatpush1.bf16.msra.mxu1 %v6947_v61  ;;  %5206 = vmatprep.subr.bf16.mxu0 %v6952_v17  ;;  %v7090_v61 = vld [vmem:[#allocation8 + $0x664] ss:$16 sps:$4 sm:$0xff]   ;;  %v7016_v17 = vld [vmem:[#allocation8 + $0x460] ss:$16 sps:$4 sm:$0xff]  }
 0x253   :  { %5249 = vmatprep.subr.bf16.mxu1 %v6955_v31 }
 0x255   :  { %5207 = vmatpush1.bf16.msra.mxu0 %v6950_v44  ;;  %v7021_v44 = vld [vmem:[#allocation8 + $0x444] ss:$16 sps:$4 sm:$0xff]  }
 0x256   :  { %5250 = vmatpush1.bf16.msra.mxu1 %v6953_v32  ;;  %5208 = vmatprep.subr.bf16.mxu0 %v6958_v19  ;;  %v7088_v32 = vld [vmem:[#allocation8 + $0x660] ss:$16 sps:$4 sm:$0xff]   ;;  %v7096_v19 = vld [vmem:[#allocation8 + $0x644] ss:$16 sps:$4 sm:$0xff]  }
 0x257   :  { %5251 = vmatprep.subr.bf16.mxu1 %v6961_v22  ;;  %v7019_v22 = vld [vmem:[#allocation8 + $0x440] ss:$16 sps:$4 sm:$0xff]  }
 0x259   :  { %5209 = vmatpush2.bf16.msra.mxu0 %v6956_v52  ;;  %v7799_v31 = vpop.f32.mrf.mxu1  ;;  %v7801_v52 = vpop.f32.mrf.mxu0 }
 0x25a   :  { %5252 = vmatpush2.bf16.msra.mxu1 %v6959_v20  ;;  %5210 = vmatprep.subr.bf16.mxu0 %v6964_v21  ;;  %v7024_v21 = vld [vmem:[#allocation8 + $0x424] ss:$16 sps:$4 sm:$0xff]  }
 0x25b   :  { %5253 = vmatprep.subr.bf16.mxu1 %v6967_v13  ;;  %v3345_v20 = vpop.f32.mrf.mxu1  ;;  %v7094_v13 = vld [vmem:[#allocation8 + $0x640] ss:$16 sps:$4 sm:$0xff]  }
 0x25d   :  { %5211 = vmatpush2.bf16.msra.mxu0 %v6962_v51  ;;  %v7102_v51 = vld [vmem:[#allocation8 + $0x624] ss:$16 sps:$4 sm:$0xff]  }
 0x25e   :  { %5254 = vmatpush2.bf16.msra.mxu1 %v6965_v38  ;;  %5212 = vmatprep.subr.bf16.mxu0 %v6970_v23  ;;  %v628_v38 = vsub.s32 5, %v7696_v26  ;;  %v7022_v23 = vld [vmem:[#allocation8 + $0x420] ss:$16 sps:$4 sm:$0xff]  }
 0x25f   :  { %5255 = vmatprep.subr.bf16.mxu1 %v6973_v1  ;;  %v3302_v1 = vpop.f32.mrf.mxu0 }
 0x261   :  { %5213 = vmatpush2.bf16.msra.mxu0 %v6968_v18  ;;  %v7804_v18 = vpop.f32.mrf.mxu1 }
 0x262   :  { %5256 = vmatpush2.bf16.msra.mxu1 %v6971_v27  ;;  %5214 = vmatprep.subr.bf16.mxu0 %v6976_v29  ;;  %v7027_v27 = vld [vmem:[#allocation8 + $0x404] ss:$16 sps:$4 sm:$0xff]   ;;  %v7100_v29 = vld [vmem:[#allocation8 + $0x620] ss:$16 sps:$4 sm:$0xff]  }
 0x263   :  { %5257 = vmatprep.subr.bf16.mxu1 %v6979_v34  ;;  %v7108_v34 = vld [vmem:[#allocation8 + $0x604] ss:$16 sps:$4 sm:$0xff]  }
 0x265   :  { %5215 = vmatpush2.bf16.msra.mxu0 %v6974_v30  ;;  %v629_v30 = vrot.slane %v7767_v49, %v628_v38 }
 0x266   :  { %5258 = vmatpush2.bf16.msra.mxu1 %v6977_v47  ;;  %5216 = vmatprep.subr.bf16.mxu0 %v6982_v33  ;;  %v7025_v47 = vld [vmem:[#allocation8 + $0x400] ss:$16 sps:$4 sm:$0xff]   ;;  %v3304_v33 = vpop.f32.mrf.mxu0 }
 0x267   :  { %5259 = vmatprep.subr.bf16.mxu1 %v6985_v35  ;;  %v3349_v35 = vpop.f32.mrf.mxu1 }
 0x269   :  { %5217 = vmatpush2.bf16.msra.mxu0 %v6980_v37  ;;  %v7030_v37 = vld [vmem:[#allocation8 + $0x5e4] ss:$16 sps:$4 sm:$0xff]  }
 0x26a   :  { %5260 = vmatpush2.bf16.msra.mxu1 %v6983_v6  ;;  %5218 = vmatprep.subr.bf16.mxu0 %v6988_v50  ;;  %v7106_v6 = vld [vmem:[#allocation8 + $0x600] ss:$16 sps:$4 sm:$0xff]   ;;  %v7114_v50 = vld [vmem:[#allocation8 + $0x7e4] ss:$16 sps:$4 sm:$0xff]  }
 0x26b   :  { %5261 = vmatprep.subr.bf16.mxu1 %v6991_v39 }
 0x26d   :  { %5219 = vmatpush2.bf16.msra.mxu0 %v6986_v57  ;;  %v3303_v57 = vadd.f32 %v3302_v1, %v629_v30 }
 0x26e   :  { %5262 = vmatpush2.bf16.msra.mxu1 %v6989_v42  ;;  %5220 = vmatprep.subr.bf16.mxu0 %v6994_v43  ;;  %v7028_v42 = vld [vmem:[#allocation8 + $0x5e0] ss:$16 sps:$4 sm:$0xff]   ;;  %v3306_v43 = vpop.f32.mrf.mxu0 }
 0x26f   :  { %5263 = vmatprep.subr.bf16.mxu1 %v6997_v46  ;;  %v7033_v46 = vld [vmem:[#allocation8 + $0x5c4] ss:$16 sps:$4 sm:$0xff]  }
 0x271   :  { %5221 = vmatpush2.bf16.msra.mxu0 %v6992_v12  ;;  %v7112_v12 = vld [vmem:[#allocation8 + $0x7e0] ss:$16 sps:$4 sm:$0xff]  }
 0x272   :  { %5264 = vmatpush2.bf16.msra.mxu1 %v6995_v14  ;;  %5222 = vmatprep.subr.bf16.mxu0 %v7000_v0  ;;  %v7120_v14 = vld [vmem:[#allocation8 + $0x7c4] ss:$16 sps:$4 sm:$0xff]  }
 0x273   :  { %5265 = vmatprep.subr.bf16.mxu1 %v7003_v53 }
 0x275   :  { %5223 = vmatpush2.bf16.msra.mxu0 %v6998_v54  ;;  %v3346_v54 = vadd.f32 %v3345_v20, %v3303_v57  ;;  %v7046_v57 = vld [vmem:[#allocation8 + $0x520] ss:$16 sps:$4 sm:$0xff]  }
 0x276   :  { %5266 = vmatpush2.bf16.msra.mxu1 %v7001_v55  ;;  %5278 = vmatprep.subr.bf16.mxu0 %v7006_v24  ;;  %v3307_v55 = vadd.f32 %v3306_v43, %v629_v30  ;;  %v7031_v24 = vld [vmem:[#allocation8 + $0x5c0] ss:$16 sps:$4 sm:$0xff]   ;;  %v7051_v43 = vld [vmem:[#allocation8 + $0x504] ss:$16 sps:$4 sm:$0xff]  }
 0x277   :  { %5321 = vmatprep.subr.bf16.mxu1 %v7066_v28 }
 0x278   :  { %5225 = vmatmul.mubr.bf16.vlgmr.msra.gmra.mxu0 %v7732_v8 }
 0x279   :  { %5268 = vmatmul.mubr.bf16.vlgmr.msra.gmra.mxu1 %v7772_v15  ;;  %5279 = vmatpush1.bf16.msra.mxu0 %v7004_v58  ;;  %v7807_v39 = vpop.f32.mrf.mxu1  ;;  %v7036_v58 = vld [vmem:[#allocation8 + $0x5a4] ss:$16 sps:$4 sm:$0xff]  }
 0x27a   :  { %5280 = vmatprep.subr.bf16.mxu0 %v7009_v62  ;;  %5322 = vmatpush1.bf16.msra.mxu1 %v7064_v63  ;;  %v7118_v62 = vld [vmem:[#allocation8 + $0x7c0] ss:$16 sps:$4 sm:$0xff]  }
 0x27b   :  { %5323 = vmatprep.subr.bf16.mxu1 %v7072_v2  ;;  %v3431_v0 = vpop.f32.mrf.mxu1  ;;  %v7126_v2 = vld [vmem:[#allocation8 + $0x7a4] ss:$16 sps:$4 sm:$0xff]  }
 0x27d   :  { %5281 = vmatpush1.bf16.msra.mxu0 %v7007_v3  ;;  %v3433_v3 = vpop.f32.mrf.mxu1 }
 0x27e   :  { %5282 = vmatprep.subr.bf16.mxu0 %v7012_v4  ;;  %5324 = vmatpush1.bf16.msra.mxu1 %v7070_v56  ;;  %v3350_v56 = vadd.f32 %v3349_v35, %v3307_v55 }
 0x27f   :  { %5325 = vmatprep.subr.bf16.mxu1 %v7078_v41  ;;  %v7034_v41 = vld [vmem:[#allocation8 + $0x5a0] ss:$16 sps:$4 sm:$0xff]  }
 0x281   :  { %5283 = vmatpush1.bf16.msra.mxu0 %v7010_v5  ;;  %v624_v5 = vsub.s32 4, %v7696_v26 }
 0x282   :  { %5284 = vmatprep.subr.bf16.mxu0 %v7015_v7  ;;  %5326 = vmatpush1.bf16.msra.mxu1 %v7076_v9  ;;  %v7039_v9 = vld [vmem:[#allocation8 + $0x584] ss:$16 sps:$4 sm:$0xff]  }
 0x283   :  { %5327 = vmatprep.subr.bf16.mxu1 %v7084_v10  ;;  %v7124_v10 = vld [vmem:[#allocation8 + $0x7a0] ss:$16 sps:$4 sm:$0xff]  }
 0x285   :  { %5285 = vmatpush1.bf16.msra.mxu0 %v7013_v11 }
 0x286   :  { %5286 = vmatprep.subr.bf16.mxu0 %v7018_v16  ;;  %5328 = vmatpush1.bf16.msra.mxu1 %v7082_v45  ;;  %v7132_v45 = vld [vmem:[#allocation8 + $0x784] ss:$16 sps:$4 sm:$0xff]  }
 0x287   :  { %5329 = vmatprep.subr.bf16.mxu1 %v7090_v61  ;;  %v3435_v61 = vpop.f32.mrf.mxu1 }
 0x289   :  { %5287 = vmatpush1.bf16.msra.mxu0 %v7016_v17 }
 0x28a   :  { %5288 = vmatprep.subr.bf16.mxu0 %v7021_v44  ;;  %5330 = vmatpush1.bf16.msra.mxu1 %v7088_v32  ;;  %v7037_v44 = vld [vmem:[#allocation8 + $0x580] ss:$16 sps:$4 sm:$0xff]   ;;  %v625_v32 = vrot.slane %v7767_v49, %v624_v5  ;;  %v7073_v5 = vld [vmem:[#allocation8 + $0x48] ss:$16 sps:$4 sm:$0xff]  }
 0x28b   :  { %5331 = vmatprep.subr.bf16.mxu1 %v7096_v19  ;;  %v7042_v19 = vld [vmem:[#allocation8 + $0x564] ss:$16 sps:$4 sm:$0xff]  }
 0x28c   :  { %v3301_v1 = vadd.f32 %v7801_v52, %v625_v32  ;;  %v7150_v52 = vld [vmem:[#allocation8 + $0x724] ss:$16 sps:$4 sm:$0xff]  }
 0x28d   :  { %5289 = vmatpush1.bf16.msra.mxu0 %v7019_v22  ;;  %v7130_v22 = vld [vmem:[#allocation8 + $0x780] ss:$16 sps:$4 sm:$0xff]  }
 0x28e   :  { %5290 = vmatprep.subr.bf16.mxu0 %v7024_v21  ;;  %5332 = vmatpush1.bf16.msra.mxu1 %v7094_v13  ;;  %v7138_v13 = vld [vmem:[#allocation8 + $0x764] ss:$16 sps:$4 sm:$0xff]  }
 0x28f   :  { %5333 = vmatprep.subr.bf16.mxu1 %v7102_v51  ;;  %v3305_v51 = vadd.f32 %v3304_v33, %v625_v32  ;;  %v3344_v33 = vadd.f32 %v7799_v31, %v3301_v1  ;;  %v7111_v32 = vld [vmem:[#allocation8 + $0x18c] ss:$16 sps:$4 sm:$0xff]  }
 0x291   :  { %5291 = vmatpush1.bf16.msra.mxu0 %v7022_v23  ;;  %v7040_v23 = vld [vmem:[#allocation8 + $0x560] ss:$16 sps:$4 sm:$0xff]   ;;  %v3348_v30 = vadd.f32 %v7804_v18, %v3305_v51 }
 0x292   :  { %5292 = vmatprep.subr.bf16.mxu0 %v7027_v27  ;;  %5334 = vmatpush1.bf16.msra.mxu1 %v7100_v29  ;;  %v7045_v27 = vld [vmem:[#allocation8 + $0x544] ss:$16 sps:$4 sm:$0xff]   ;;  %v7136_v29 = vld [vmem:[#allocation8 + $0x760] ss:$16 sps:$4 sm:$0xff]  }
 0x293   :  { %5335 = vmatprep.subr.bf16.mxu1 %v7108_v34  ;;  %v7144_v34 = vld [vmem:[#allocation8 + $0x744] ss:$16 sps:$4 sm:$0xff]   ;;  %v7148_v18 = vld [vmem:[#allocation8 + $0x720] ss:$16 sps:$4 sm:$0xff]  }
 0x295   :  { %5293 = vmatpush1.bf16.msra.mxu0 %v7025_v47  ;;  %v7043_v47 = vld [vmem:[#allocation8 + $0x540] ss:$16 sps:$4 sm:$0xff]  }
 0x296   :  { %5294 = vmatprep.subr.bf16.mxu0 %v7030_v37  ;;  %5336 = vmatpush1.bf16.msra.mxu1 %v7106_v6  ;;  %v7048_v37 = vld [vmem:[#allocation8 + $0x524] ss:$16 sps:$4 sm:$0xff]   ;;  %v7142_v6 = vld [vmem:[#allocation8 + $0x740] ss:$16 sps:$4 sm:$0xff]  }
 0x297   :  { %5337 = vmatprep.subr.bf16.mxu1 %v7114_v50 }
 0x298   :  { %v7809_v53 = vpop.f32.mrf.mxu0 }
 0x299   :  { %5295 = vmatpush2.bf16.msra.mxu0 %v7028_v42  ;;  %v3387_v50 = vadd.f32 %v7809_v53, %v3344_v33  ;;  %v7162_v53 = vld [vmem:[#allocation8 + $0x2ec] ss:$16 sps:$4 sm:$0xff]   ;;  %v632_v33 = vsub.s32 6, %v7696_v26 }
 0x29a   :  { %v3388_v28 = vpop.f32.mrf.mxu0  ;;  %5296 = vmatprep.subr.bf16.mxu0 %v7033_v46  ;;  %5338 = vmatpush2.bf16.msra.mxu1 %v7112_v12  ;;  %v7156_v46 = vld [vmem:[#allocation8 + $0x704] ss:$16 sps:$4 sm:$0xff]   ;;  %v7049_v12 = vld [vmem:[#allocation8 + $0x500] ss:$16 sps:$4 sm:$0xff]  }
 0x29b   :  { %v3389_v63 = vadd.f32 %v3388_v28, %v3346_v54  ;;  %5339 = vmatprep.subr.bf16.mxu1 %v7120_v14  ;;  %v3430_v31 = vadd.f32 %v7807_v39, %v3387_v50  ;;  %v7154_v54 = vld [vmem:[#allocation8 + $0x700] ss:$16 sps:$4 sm:$0xff]   ;;  %v7055_v39 = vld [vmem:[#allocation8 + $0xc8] ss:$16 sps:$4 sm:$0xff]  }
 0x29c   :  { %v3390_v4 = vpop.f32.mrf.mxu0 }
 0x29d   :  { %5297 = vmatpush2.bf16.msra.mxu0 %v7031_v24  ;;  %v3432_v11 = vadd.f32 %v3431_v0, %v3389_v63  ;;  %v3391_v35 = vadd.f32 %v3390_v4, %v3348_v30  ;;  %v7054_v0 = vld [vmem:[#allocation8 + $0xec] ss:$16 sps:$4 sm:$0xff]   ;;  %v3614_v55 = vmax.f32 %v3430_v31, 0.0  ;;  %v7052_v24 = vld [vmem:[#allocation8 + $0xe8] ss:$16 sps:$4 sm:$0xff]  }
 0x29e   :  { %v3392_v7 = vpop.f32.mrf.mxu0  ;;  %5298 = vmatprep.subr.bf16.mxu0 %v7036_v58  ;;  %5340 = vmatpush2.bf16.msra.mxu1 %v7118_v62  ;;  %v7057_v58 = vld [vmem:[#allocation8 + $0xcc] ss:$16 sps:$4 sm:$0xff]   ;;  %v7058_v63 = vld [vmem:[#allocation8 + $0xa8] ss:$16 sps:$4 sm:$0xff]  }
 0x29f   :  { %v3393_v16 = vadd.f32 %v3392_v7, %v3350_v56  ;;  %5341 = vmatprep.subr.bf16.mxu1 %v7126_v2  ;;  %v3615_v20 = vmax.f32 %v3432_v11, 0.0  ;;  %v3434_v42 = vadd.f32 %v3433_v3, %v3391_v35  ;;  %v7060_v62 = vld [vmem:[#allocation8 + $0xac] ss:$16 sps:$4 sm:$0xff]   ;;  %v7061_v3 = vld [vmem:[#allocation8 + $0x88] ss:$16 sps:$4 sm:$0xff]  }
 0x2a0   :  { %v7063_v2 = vld [vmem:[#allocation8 + $0x8c] ss:$16 sps:$4 sm:$0xff]   ;;  %v7067_v56 = vld [vmem:[#allocation8 + $0x68] ss:$16 sps:$4 sm:$0xff]  }
 0x2a1   :  { %v3436_v17 = vadd.f32 %v3435_v61, %v3393_v16  ;;  %5299 = vmatpush2.bf16.msra.mxu0 %v7034_v41  ;;  %v3622_v14 = vmax.f32 %v3434_v42, 0.0  ;;  %v7069_v4 = vld [vmem:[#allocation8 + $0x6c] ss:$16 sps:$4 sm:$0xff]   ;;  %v7091_v16 = vld [vmem:[#allocation8 + $0x1e8] ss:$16 sps:$4 sm:$0xff]  }
 0x2a2   :  { %5300 = vmatprep.subr.bf16.mxu0 %v7039_v9  ;;  %5342 = vmatpush2.bf16.msra.mxu1 %v7124_v10  ;;  %v7075_v41 = vld [vmem:[#allocation8 + $0x4c] ss:$16 sps:$4 sm:$0xff]   ;;  %v7085_v10 = vld [vmem:[#allocation8 + $0x8] ss:$16 sps:$4 sm:$0xff]  }
 0x2a3   :  { %v3623_v21 = vmax.f32 %v3436_v17, 0.0  ;;  %5343 = vmatprep.subr.bf16.mxu1 %v7132_v45  ;;  %v7821_v28 = vpack.c.bf16 %v3622_v14, %v3614_v55  ;;  %v7081_v7 = vld [vmem:[#allocation8 + $0x2c] ss:$16 sps:$4 sm:$0xff]   ;;  %v7097_v61 = vld [vmem:[#allocation8 + $0x1c8] ss:$16 sps:$4 sm:$0xff]  }
 0x2a4   :  { %v7087_v9 = vld [vmem:[#allocation8 + $0xc] ss:$16 sps:$4 sm:$0xff]   ;;  %v7133_v35 = vld [vmem:[#allocation8 + $0x108] ss:$16 sps:$4 sm:$0xff]  }
 0x2a5   :  { %5301 = vmatpush2.bf16.msra.mxu0 %v7037_v44  ;;  %v7813_v38 = vpack.c.bf16 %v3623_v21, %v3615_v20  ;;  %v7093_v11 = vld [vmem:[#allocation8 + $0x1ec] ss:$16 sps:$4 sm:$0xff]   ;;  %v7103_v44 = vld [vmem:[#allocation8 + $0x1a8] ss:$16 sps:$4 sm:$0xff]  }
 0x2a6   :  { %5302 = vmatprep.subr.bf16.mxu0 %v7042_v19  ;;  %5344 = vmatpush2.bf16.msra.mxu1 %v7130_v22  ;;  %v7099_v45 = vld [vmem:[#allocation8 + $0x1cc] ss:$16 sps:$4 sm:$0xff]   ;;  %v7109_v19 = vld [vmem:[#allocation8 + $0x188] ss:$16 sps:$4 sm:$0xff]  }
 0x2a7   :  { %5310 = vmatprep.mubr.bf16.mxu0 %v7813_v38  ;;  %5345 = vmatprep.subr.bf16.mxu1 %v7138_v13  ;;  %v7105_v17 = vld [vmem:[#allocation8 + $0x1ac] ss:$16 sps:$4 sm:$0xff]   ;;  %v7115_v20 = vld [vmem:[#allocation8 + $0x168] ss:$16 sps:$4 sm:$0xff]  }
 0x2a8   :  { %v7117_v22 = vld [vmem:[#allocation8 + $0x16c] ss:$16 sps:$4 sm:$0xff]   ;;  %v7121_v13 = vld [vmem:[#allocation8 + $0x148] ss:$16 sps:$4 sm:$0xff]  }
 0x2a9   :  { %5303 = vmatpush2.bf16.msra.mxu0 %v7040_v23  ;;  %v7123_v21 = vld [vmem:[#allocation8 + $0x14c] ss:$16 sps:$4 sm:$0xff]   ;;  %v7139_v42 = vld [vmem:[#allocation8 + $0x4e8] ss:$16 sps:$4 sm:$0xff]  }
 0x2aa   :  { %5304 = vmatprep.subr.bf16.mxu0 %v7045_v27  ;;  %5346 = vmatpush2.bf16.msra.mxu1 %v7136_v29  ;;  %v7129_v23 = vld [vmem:[#allocation8 + $0x12c] ss:$16 sps:$4 sm:$0xff]   ;;  %v7127_v27 = vld [vmem:[#allocation8 + $0x128] ss:$16 sps:$4 sm:$0xff]  }
 0x2ab   :  { %5347 = vmatprep.subr.bf16.mxu1 %v7144_v34  ;;  %v7135_v34 = vld [vmem:[#allocation8 + $0x10c] ss:$16 sps:$4 sm:$0xff]  }
 0x2ad   :  { %5305 = vmatpush2.bf16.msra.mxu0 %v7043_v47  ;;  %v636_v47 = vsub.s32 7, %v7696_v26 }
 0x2ae   :  { %5306 = vmatprep.subr.bf16.mxu0 %v7048_v37  ;;  %5348 = vmatpush2.bf16.msra.mxu1 %v7142_v6  ;;  %v7141_v6 = vld [vmem:[#allocation8 + $0x4ec] ss:$16 sps:$4 sm:$0xff]  }
 0x2af   :  { %5349 = vmatprep.subr.bf16.mxu1 %v7150_v52  ;;  %v637_v50 = vrot.slane %v7767_v49, %v636_v47  ;;  %v7175_v47 = vld [vmem:[#allocation8 + $0x428] ss:$16 sps:$4 sm:$0xff]  }
 0x2b1   :  { %5307 = vmatpush2.bf16.msra.mxu0 %v7046_v57  ;;  %v633_v57 = vrot.slane %v7767_v49, %v632_v33  ;;  %v7153_v49 = vld [vmem:[#allocation8 + $0x4ac] ss:$16 sps:$4 sm:$0xff]   ;;  %v7172_v33 = vld [vmem:[#allocation8 + $0x2a8] ss:$16 sps:$4 sm:$0xff]  }
 0x2b2   :  { %5308 = vmatprep.subr.bf16.mxu0 %v7051_v43  ;;  %5350 = vmatpush2.bf16.msra.mxu1 %v7148_v18  ;;  %v7147_v18 = vld [vmem:[#allocation8 + $0x4cc] ss:$16 sps:$4 sm:$0xff]  }
 0x2b3   :  { %5351 = vmatprep.subr.bf16.mxu1 %v7156_v46 }
 0x2b5   :  { %5309 = vmatpush2.bf16.msra.mxu0 %v7049_v12 }
 0x2b6   :  { %5364 = vmatprep.subr.bf16.mxu0 %v7054_v0  ;;  %5352 = vmatpush2.bf16.msra.mxu1 %v7154_v54  ;;  %v7145_v54 = vld [vmem:[#allocation8 + $0x4c8] ss:$16 sps:$4 sm:$0xff]  }
 0x2b7   :  { %5407 = vmatprep.subr.bf16.mxu1 %v7162_v53 }
 0x2b8   :  { %5311 = vmatmul.mubr.bf16.vlgmr.msra.gmra.mxu0 %v7821_v28 }
 0x2b9   :  { %5365 = vmatpush1.bf16.msra.mxu0 %v7052_v24  ;;  %5396 = vmatprep.mubr.bf16.mxu0 %v7791_v48  ;;  %v7079_v48 = vld [vmem:[#allocation8 + $0x28] ss:$16 sps:$4 sm:$0xff]   ;;  %v3472_v1 = vpop.f32.mrf.mxu1 }
 0x2ba   :  { %5366 = vmatprep.subr.bf16.mxu0 %v7057_v58  ;;  %v3473_v14 = vadd.f32 %v3472_v1, %v633_v57  ;;  %v7171_v1 = vld [vmem:[#allocation8 + $0x44c] ss:$16 sps:$4 sm:$0xff]  }
 0x2bb   :  { %v3474_v30 = vpop.f32.mrf.mxu1 }
 0x2bc   :  { %v3475_v31 = vadd.f32 %v3474_v30, %v637_v50  ;;  %v7174_v30 = vld [vmem:[#allocation8 + $0x2ac] ss:$16 sps:$4 sm:$0xff]  }
 0x2bd   :  { %5367 = vmatpush1.bf16.msra.mxu0 %v7055_v39  ;;  %v3476_v52 = vpop.f32.mrf.mxu1 }
 0x2be   :  { %5368 = vmatprep.subr.bf16.mxu0 %v7060_v62  ;;  %v3477_v53 = vadd.f32 %v3476_v52, %v633_v57  ;;  %v7178_v52 = vld [vmem:[#allocation8 + $0x288] ss:$16 sps:$4 sm:$0xff]  }
 0x2bf   :  { %v3478_v46 = vpop.f32.mrf.mxu1  ;;  %v7187_v57 = vld [vmem:[#allocation8 + $0x5e8] ss:$16 sps:$4 sm:$0xff]  }
 0x2c0   :  { %v3479_v62 = vadd.f32 %v3478_v46, %v637_v50  ;;  %v7189_v50 = vld [vmem:[#allocation8 + $0x5ec] ss:$16 sps:$4 sm:$0xff]   ;;  %v7193_v46 = vld [vmem:[#allocation8 + $0x5c8] ss:$16 sps:$4 sm:$0xff]  }
 0x2c1   :  { %5369 = vmatpush1.bf16.msra.mxu0 %v7058_v63 }
 0x2c2   :  { %5370 = vmatprep.subr.bf16.mxu0 %v7063_v2 }
 0x2c5   :  { %5371 = vmatpush1.bf16.msra.mxu0 %v7061_v3 }
 0x2c6   :  { %5372 = vmatprep.subr.bf16.mxu0 %v7069_v4 }
 0x2c9   :  { %5373 = vmatpush1.bf16.msra.mxu0 %v7067_v56 }
 0x2ca   :  { %5374 = vmatprep.subr.bf16.mxu0 %v7075_v41 }
 0x2cd   :  { %5375 = vmatpush1.bf16.msra.mxu0 %v7073_v5 }
 0x2ce   :  { %5376 = vmatprep.subr.bf16.mxu0 %v7081_v7 }
 0x2d1   :  { %5377 = vmatpush1.bf16.msra.mxu0 %v7079_v48 }
 0x2d2   :  { %5378 = vmatprep.subr.bf16.mxu0 %v7087_v9 }
 0x2d5   :  { %5379 = vmatpush1.bf16.msra.mxu0 %v7085_v10 }
 0x2d6   :  { %5380 = vmatprep.subr.bf16.mxu0 %v7093_v11 }
 0x2d8   :  { %v3515_v51 = vpop.f32.mrf.mxu0 }
 0x2d9   :  { %5381 = vmatpush2.bf16.msra.mxu0 %v7091_v16  ;;  %v3516_v58 = vadd.f32 %v3515_v51, %v3473_v14  ;;  %v7198_v14 = vld [vmem:[#allocation8 + $0x22c] ss:$16 sps:$4 sm:$0xff]  }
 0x2da   :  { %5382 = vmatprep.subr.bf16.mxu0 %v7099_v45  ;;  %v3517_v29 = vpop.f32.mrf.mxu0  ;;  %v7157_v45 = vld [vmem:[#allocation8 + $0x488] ss:$16 sps:$4 sm:$0xff]  }
 0x2db   :  { %v3518_v55 = vadd.f32 %v3517_v29, %v3475_v31  ;;  %v7166_v29 = vld [vmem:[#allocation8 + $0x2c8] ss:$16 sps:$4 sm:$0xff]  }
 0x2dc   :  { %v3519_v37 = vpop.f32.mrf.mxu0  ;;  %v7190_v31 = vld [vmem:[#allocation8 + $0x248] ss:$16 sps:$4 sm:$0xff]  }
 0x2dd   :  { %5383 = vmatpush2.bf16.msra.mxu0 %v7097_v61  ;;  %v3520_v63 = vadd.f32 %v3519_v37, %v3477_v53  ;;  %v7180_v37 = vld [vmem:[#allocation8 + $0x28c] ss:$16 sps:$4 sm:$0xff]  }
 0x2de   :  { %5384 = vmatprep.subr.bf16.mxu0 %v7105_v17  ;;  %v3521_v43 = vpop.f32.mrf.mxu0  ;;  %v7165_v17 = vld [vmem:[#allocation8 + $0x46c] ss:$16 sps:$4 sm:$0xff]  }
 0x2df   :  { %v3522_v41 = vadd.f32 %v3521_v43, %v3479_v62  ;;  %v7195_v43 = vld [vmem:[#allocation8 + $0x5cc] ss:$16 sps:$4 sm:$0xff]   ;;  %v7211_v62 = vld [vmem:[#allocation8 + $0x568] ss:$16 sps:$4 sm:$0xff]  }
 0x2e0   :  { %v7207_v53 = vld [vmem:[#allocation8 + $0x58c] ss:$16 sps:$4 sm:$0xff]  }
 0x2e1   :  { %5385 = vmatpush2.bf16.msra.mxu0 %v7103_v44 }
 0x2e2   :  { %5386 = vmatprep.subr.bf16.mxu0 %v7111_v32 }
 0x2e5   :  { %5387 = vmatpush2.bf16.msra.mxu0 %v7109_v19 }
 0x2e6   :  { %5388 = vmatprep.subr.bf16.mxu0 %v7117_v22 }
 0x2e9   :  { %5389 = vmatpush2.bf16.msra.mxu0 %v7115_v20  ;;  %v7163_v20 = vld [vmem:[#allocation8 + $0x468] ss:$16 sps:$4 sm:$0xff]  }
 0x2ea   :  { %5390 = vmatprep.subr.bf16.mxu0 %v7123_v21 }
 0x2ed   :  { %5391 = vmatpush2.bf16.msra.mxu0 %v7121_v13  ;;  %v7160_v13 = vld [vmem:[#allocation8 + $0x2e8] ss:$16 sps:$4 sm:$0xff]  }
 0x2ee   :  { %5392 = vmatprep.subr.bf16.mxu0 %v7129_v23  ;;  %v7168_v23 = vld [vmem:[#allocation8 + $0x2cc] ss:$16 sps:$4 sm:$0xff]  }
 0x2f1   :  { %5393 = vmatpush2.bf16.msra.mxu0 %v7127_v27  ;;  %v7169_v27 = vld [vmem:[#allocation8 + $0x448] ss:$16 sps:$4 sm:$0xff]  }
 0x2f2   :  { %5394 = vmatprep.subr.bf16.mxu0 %v7135_v34  ;;  %v7177_v34 = vld [vmem:[#allocation8 + $0x42c] ss:$16 sps:$4 sm:$0xff]  }
 0x2f5   :  { %5395 = vmatpush2.bf16.msra.mxu0 %v7133_v35  ;;  %v7183_v35 = vld [vmem:[#allocation8 + $0x40c] ss:$16 sps:$4 sm:$0xff]  }
 0x2f6   :  { %5450 = vmatprep.subr.bf16.mxu0 %v7141_v6  ;;  %v7181_v6 = vld [vmem:[#allocation8 + $0x408] ss:$16 sps:$4 sm:$0xff]  }
 0x2f8   :  { %v3601_v12 = vpop.f32.mrf.mxu0  ;;  %5397 = vmatmul.mubr.bf16.vlgmr.msra.gmra.mxu0 %v7732_v8  ;;  %v7151_v8 = vld [vmem:[#allocation8 + $0x4a8] ss:$16 sps:$4 sm:$0xff]  }
 0x2f9   :  { %v3558_v0 = vpop.f32.mrf.mxu1  ;;  %5451 = vmatpush1.bf16.msra.mxu0 %v7139_v42  ;;  %5482 = vmatprep.mubr.bf16.mxu0 %v7813_v38  ;;  %v7159_v38 = vld [vmem:[#allocation8 + $0x48c] ss:$16 sps:$4 sm:$0xff]   ;;  %v7184_v42 = vld [vmem:[#allocation8 + $0x268] ss:$16 sps:$4 sm:$0xff]  }
 0x2fa   :  { %v3603_v24 = vpop.f32.mrf.mxu0  ;;  %5452 = vmatprep.subr.bf16.mxu0 %v7147_v18  ;;  %v3559_v3 = vadd.f32 %v3558_v0, %v3516_v58  ;;  %v7192_v18 = vld [vmem:[#allocation8 + $0x24c] ss:$16 sps:$4 sm:$0xff]   ;;  %v7199_v0 = vld [vmem:[#allocation8 + $0x5a8] ss:$16 sps:$4 sm:$0xff]  }
 0x2fb   :  { %v3560_v39 = vpop.f32.mrf.mxu1  ;;  %v7213_v58 = vld [vmem:[#allocation8 + $0x56c] ss:$16 sps:$4 sm:$0xff]  }
 0x2fc   :  { %v3561_v2 = vadd.f32 %v3560_v39, %v3518_v55  ;;  %v3605_v56 = vpop.f32.mrf.mxu0  ;;  %v3602_v11 = vadd.f32 %v3601_v12, %v3559_v3  ;;  %v7201_v12 = vld [vmem:[#allocation8 + $0x5ac] ss:$16 sps:$4 sm:$0xff]  }
 0x2fd   :  { %v3562_v4 = vpop.f32.mrf.mxu1  ;;  %5453 = vmatpush1.bf16.msra.mxu0 %v7145_v54  ;;  %v7196_v54 = vld [vmem:[#allocation8 + $0x228] ss:$16 sps:$4 sm:$0xff]   ;;  %v7204_v55 = vld [vmem:[#allocation8 + $0x20c] ss:$16 sps:$4 sm:$0xff]  }
 0x2fe   :  { %v3563_v5 = vadd.f32 %v3562_v4, %v3520_v63  ;;  %5454 = vmatprep.subr.bf16.mxu0 %v7153_v49  ;;  %v3604_v48 = vadd.f32 %v3603_v24, %v3561_v2  ;;  %v3607_v16 = vpop.f32.mrf.mxu0  ;;  %v3616_v22 = vmax.f32 %v3602_v11, 0.0  ;;  %v7205_v24 = vld [vmem:[#allocation8 + $0x588] ss:$16 sps:$4 sm:$0xff]   ;;  %v7210_v39 = vld [vmem:[#allocation8 + $0x3ec] ss:$16 sps:$4 sm:$0xff]  }
 0x2ff   :  { %v3564_v7 = vpop.f32.mrf.mxu1  ;;  %v7202_v49 = vld [vmem:[#allocation8 + $0x208] ss:$16 sps:$4 sm:$0xff]   ;;  %v7219_v2 = vld [vmem:[#allocation8 + $0x54c] ss:$16 sps:$4 sm:$0xff]  }
 0x300   :  { %v3606_v9 = vadd.f32 %v3605_v56, %v3563_v5  ;;  %v3565_v10 = vadd.f32 %v3564_v7, %v3522_v41  ;;  %v3617_v32 = vmax.f32 %v3604_v48, 0.0  ;;  %v7208_v63 = vld [vmem:[#allocation8 + $0x3e8] ss:$16 sps:$4 sm:$0xff]   ;;  %v7216_v3 = vld [vmem:[#allocation8 + $0x3cc] ss:$16 sps:$4 sm:$0xff]  }
 0x301   :  { %5455 = vmatpush1.bf16.msra.mxu0 %v7151_v8  ;;  %v7217_v4 = vld [vmem:[#allocation8 + $0x548] ss:$16 sps:$4 sm:$0xff]   ;;  %v7225_v8 = vld [vmem:[#allocation8 + $0x52c] ss:$16 sps:$4 sm:$0xff]  }
 0x302   :  { %v3608_v61 = vadd.f32 %v3607_v16, %v3565_v10  ;;  %5456 = vmatprep.subr.bf16.mxu0 %v7159_v38  ;;  %v3624_v44 = vmax.f32 %v3606_v9, 0.0  ;;  %v7214_v56 = vld [vmem:[#allocation8 + $0x3c8] ss:$16 sps:$4 sm:$0xff]   ;;  %v7222_v41 = vld [vmem:[#allocation8 + $0x3ac] ss:$16 sps:$4 sm:$0xff]  }
 0x303   :  { %v7223_v5 = vld [vmem:[#allocation8 + $0x528] ss:$16 sps:$4 sm:$0xff]   ;;  %v7231_v7 = vld [vmem:[#allocation8 + $0x50c] ss:$16 sps:$4 sm:$0xff]  }
 0x304   :  { %v3625_v19 = vmax.f32 %v3608_v61, 0.0  ;;  %v7833_v51 = vpack.c.bf16 %v3624_v44, %v3616_v22  ;;  %v7220_v38 = vld [vmem:[#allocation8 + $0x3a8] ss:$16 sps:$4 sm:$0xff]   ;;  %v7228_v48 = vld [vmem:[#allocation8 + $0x38c] ss:$16 sps:$4 sm:$0xff]  }
 0x305   :  { %5457 = vmatpush1.bf16.msra.mxu0 %v7157_v45  ;;  %v7229_v9 = vld [vmem:[#allocation8 + $0x508] ss:$16 sps:$4 sm:$0xff]   ;;  %v7292_v11 = vld [vmem:[#allocation11 + $0x78] sm:$0xff]  }
 0x306   :  { %v7831_v21 = vpack.c.bf16 %v3625_v19, %v3617_v32  ;;  %5458 = vmatprep.subr.bf16.mxu0 %v7165_v17  ;;  %v7226_v10 = vld [vmem:[#allocation8 + $0x388] ss:$16 sps:$4 sm:$0xff]   ;;  %v7234_v16 = vld [vmem:[#allocation8 + $0x36c] ss:$16 sps:$4 sm:$0xff]  }
 0x307   :  { %v7293_v45 = vld [vmem:[#allocation11 + $0x38] sm:$0xff]   ;;  %v7232_v61 = vld [vmem:[#allocation8 + $0x368] ss:$16 sps:$4 sm:$0xff]  }
 0x308   :  { %5353 = vmatprep.mubr.bf16.mxu1 %v7831_v21  ;;  %v7237_v17 = vld [vmem:[#allocation8 + $0x34c] ss:$16 sps:$4 sm:$0xff]   ;;  %v7235_v44 = vld [vmem:[#allocation8 + $0x348] ss:$16 sps:$4 sm:$0xff]  }
 0x309   :  { %5354 = vmatmul.mubr.bf16.vlgmr.msra.gmra.mxu1 %v7833_v51  ;;  %5459 = vmatpush1.bf16.msra.mxu0 %v7163_v20  ;;  %v7294_v32 = vld [vmem:[#allocation11 + $0x70] sm:$0xff]   ;;  %v7240_v19 = vld [vmem:[#allocation8 + $0x32c] ss:$16 sps:$4 sm:$0xff]  }
 0x30a   :  { %5408 = vmatpush1.bf16.msra.mxu1 %v7160_v13  ;;  %5439 = vmatprep.mubr.bf16.mxu1 %v7793_v59  ;;  %v7186_v59 = vld [vmem:[#allocation8 + $0x26c] ss:$16 sps:$4 sm:$0xff]   ;;  %v7295_v22 = vld [vmem:[#allocation11 + $0x30] sm:$0xff]  }
 0x30b   :  { %5409 = vmatprep.subr.bf16.mxu1 %v7168_v23  ;;  %5460 = vmatprep.subr.bf16.mxu0 %v7171_v1  ;;  %v7238_v20 = vld [vmem:[#allocation8 + $0x328] ss:$16 sps:$4 sm:$0xff]   ;;  %v7296_v13 = vld [vmem:[#allocation11 + $0x68] sm:$0xff]  }
 0x30c   :  { %v7243_v23 = vld [vmem:[#allocation8 + $0x30c] ss:$16 sps:$4 sm:$0xff]  }
 0x30d   :  { %5461 = vmatpush1.bf16.msra.mxu0 %v7169_v27  ;;  %v7297_v1 = vld [vmem:[#allocation11 + $0x28] sm:$0xff]   ;;  %v7298_v27 = vld [vmem:[#allocation11 + $0x60] sm:$0xff]  }
 0x30e   :  { %5410 = vmatpush1.bf16.msra.mxu1 %v7166_v29  ;;  %5462 = vmatprep.subr.bf16.mxu0 %v7177_v34  ;;  %v7299_v29 = vld [vmem:[#allocation11 + $0x20] sm:$0xff]   ;;  %v7300_v34 = vld [vmem:[#allocation11 + $0x58] sm:$0xff]  }
 0x30f   :  { %5411 = vmatprep.subr.bf16.mxu1 %v7174_v30  ;;  %v7246_v30 = vld [vmem:[#allocation8 + $0x6ec] ss:$16 sps:$4 sm:$0xff]  }
 0x311   :  { %5463 = vmatpush1.bf16.msra.mxu0 %v7175_v47  ;;  %v7301_v47 = vld [vmem:[#allocation11 + $0x18] sm:$0xff]  }
 0x312   :  { %5412 = vmatpush1.bf16.msra.mxu1 %v7172_v33  ;;  %5464 = vmatprep.subr.bf16.mxu0 %v7183_v35  ;;  %v7244_v33 = vld [vmem:[#allocation8 + $0x6e8] ss:$16 sps:$4 sm:$0xff]   ;;  %v7249_v35 = vld [vmem:[#allocation8 + $0x6cc] ss:$16 sps:$4 sm:$0xff]  }
 0x313   :  { %5413 = vmatprep.subr.bf16.mxu1 %v7180_v37  ;;  %v7247_v37 = vld [vmem:[#allocation8 + $0x6c8] ss:$16 sps:$4 sm:$0xff]  }
 0x315   :  { %5465 = vmatpush1.bf16.msra.mxu0 %v7181_v6  ;;  %v7302_v6 = vld [vmem:[#allocation11 + $0x50] sm:$0xff]  }
 0x316   :  { %5414 = vmatpush1.bf16.msra.mxu1 %v7178_v52  ;;  %5466 = vmatprep.subr.bf16.mxu0 %v7189_v50  ;;  %v7252_v52 = vld [vmem:[#allocation8 + $0x6ac] ss:$16 sps:$4 sm:$0xff]   ;;  %v7303_v50 = vld [vmem:[#allocation11 + $0x10] sm:$0xff]  }
 0x317   :  { %5415 = vmatprep.subr.bf16.mxu1 %v7186_v59  ;;  %v7250_v59 = vld [vmem:[#allocation8 + $0x6a8] ss:$16 sps:$4 sm:$0xff]  }
 0x319   :  { %5467 = vmatpush2.bf16.msra.mxu0 %v7187_v57  ;;  %v7304_v57 = vld [vmem:[#allocation11 + $0x48] sm:$0xff]  }
 0x31a   :  { %5416 = vmatpush1.bf16.msra.mxu1 %v7184_v42  ;;  %5468 = vmatprep.subr.bf16.mxu0 %v7195_v43  ;;  %v7255_v42 = vld [vmem:[#allocation8 + $0x68c] ss:$16 sps:$4 sm:$0xff]  }
 0x31b   :  { %5417 = vmatprep.subr.bf16.mxu1 %v7192_v18  ;;  %v7305_v43 = vld [vmem:[#allocation11 + $0x8] sm:$0xff]   ;;  %v7306_v18 = vld [vmem:[#allocation11 + $0x40] sm:$0xff]  }
 0x31d   :  { %5469 = vmatpush2.bf16.msra.mxu0 %v7193_v46  ;;  %v7307_v46 = vld [vmem:[#allocation11] sm:$0xff]  }
 0x31e   :  { %5418 = vmatpush1.bf16.msra.mxu1 %v7190_v31  ;;  %5470 = vmatprep.subr.bf16.mxu0 %v7201_v12  ;;  %v7256_v31 = vld [vmem:[#allocation8 + $0x668] ss:$16 sps:$4 sm:$0xff]   ;;  %v7261_v12 = vld [vmem:[#allocation8 + $0x64c] ss:$16 sps:$4 sm:$0xff]  }
 0x31f   :  { %5419 = vmatprep.subr.bf16.mxu1 %v7198_v14  ;;  %v7259_v14 = vld [vmem:[#allocation8 + $0x648] ss:$16 sps:$4 sm:$0xff]  }
 0x321   :  { %5471 = vmatpush2.bf16.msra.mxu0 %v7199_v0  ;;  %v7264_v0 = vld [vmem:[#allocation8 + $0x62c] ss:$16 sps:$4 sm:$0xff]  }
 0x322   :  { %5420 = vmatpush1.bf16.msra.mxu1 %v7196_v54  ;;  %5472 = vmatprep.subr.bf16.mxu0 %v7207_v53  ;;  %v7262_v54 = vld [vmem:[#allocation8 + $0x628] ss:$16 sps:$4 sm:$0xff]   ;;  %v7267_v53 = vld [vmem:[#allocation8 + $0x60c] ss:$16 sps:$4 sm:$0xff]  }
 0x323   :  { %5421 = vmatprep.subr.bf16.mxu1 %v7204_v55  ;;  %v7265_v55 = vld [vmem:[#allocation8 + $0x608] ss:$16 sps:$4 sm:$0xff]  }
 0x325   :  { %5473 = vmatpush2.bf16.msra.mxu0 %v7205_v24  ;;  %v7270_v24 = vld [vmem:[#allocation8 + $0x7ec] ss:$16 sps:$4 sm:$0xff]  }
 0x326   :  { %5422 = vmatpush1.bf16.msra.mxu1 %v7202_v49  ;;  %5474 = vmatprep.subr.bf16.mxu0 %v7213_v58  ;;  %v7268_v49 = vld [vmem:[#allocation8 + $0x7e8] ss:$16 sps:$4 sm:$0xff]   ;;  %v7273_v58 = vld [vmem:[#allocation8 + $0x7cc] ss:$16 sps:$4 sm:$0xff]  }
 0x327   :  { %5423 = vmatprep.subr.bf16.mxu1 %v7210_v39  ;;  %v7271_v39 = vld [vmem:[#allocation8 + $0x7c8] ss:$16 sps:$4 sm:$0xff]  }
 0x329   :  { %5475 = vmatpush2.bf16.msra.mxu0 %v7211_v62  ;;  %v7276_v62 = vld [vmem:[#allocation8 + $0x7ac] ss:$16 sps:$4 sm:$0xff]  }
 0x32a   :  { %5424 = vmatpush2.bf16.msra.mxu1 %v7208_v63  ;;  %5476 = vmatprep.subr.bf16.mxu0 %v7219_v2  ;;  %v7274_v63 = vld [vmem:[#allocation8 + $0x7a8] ss:$16 sps:$4 sm:$0xff]   ;;  %v7279_v2 = vld [vmem:[#allocation8 + $0x78c] ss:$16 sps:$4 sm:$0xff]  }
 0x32b   :  { %5425 = vmatprep.subr.bf16.mxu1 %v7216_v3  ;;  %v7277_v3 = vld [vmem:[#allocation8 + $0x788] ss:$16 sps:$4 sm:$0xff]  }
 0x32d   :  { %5477 = vmatpush2.bf16.msra.mxu0 %v7217_v4  ;;  %v7282_v4 = vld [vmem:[#allocation8 + $0x76c] ss:$16 sps:$4 sm:$0xff]  }
 0x32e   :  { %5426 = vmatpush2.bf16.msra.mxu1 %v7214_v56  ;;  %5478 = vmatprep.subr.bf16.mxu0 %v7225_v8  ;;  %v7280_v56 = vld [vmem:[#allocation8 + $0x768] ss:$16 sps:$4 sm:$0xff]   ;;  %v7285_v8 = vld [vmem:[#allocation8 + $0x74c] ss:$16 sps:$4 sm:$0xff]  }
 0x32f   :  { %5427 = vmatprep.subr.bf16.mxu1 %v7222_v41  ;;  %v7283_v41 = vld [vmem:[#allocation8 + $0x748] ss:$16 sps:$4 sm:$0xff]  }
 0x331   :  { %5479 = vmatpush2.bf16.msra.mxu0 %v7223_v5  ;;  %v7288_v5 = vld [vmem:[#allocation8 + $0x72c] ss:$16 sps:$4 sm:$0xff]  }
 0x332   :  { %5428 = vmatpush2.bf16.msra.mxu1 %v7220_v38  ;;  %5480 = vmatprep.subr.bf16.mxu0 %v7231_v7  ;;  %v7286_v38 = vld [vmem:[#allocation8 + $0x728] ss:$16 sps:$4 sm:$0xff]   ;;  %v7291_v7 = vld [vmem:[#allocation8 + $0x70c] ss:$16 sps:$4 sm:$0xff]  }
 0x333   :  { %5429 = vmatprep.subr.bf16.mxu1 %v7228_v48  ;;  %v7289_v48 = vld [vmem:[#allocation8 + $0x708] ss:$16 sps:$4 sm:$0xff]  }
 0x335   :  { %5481 = vmatpush2.bf16.msra.mxu0 %v7229_v9  ;;  %v7308_v9 = vld [vmem:[#allocation11 + $0xf8] sm:$0xff]  }
 0x336   :  { %5430 = vmatpush2.bf16.msra.mxu1 %v7226_v10  ;;  %6802 = vmatprep.subr.bf16.mxu0 %v7292_v11  ;;  %v7309_v10 = vld [vmem:[#allocation11 + $0xb8] sm:$0xff]   ;;  %v7310_v11 = vld [vmem:[#allocation11 + $0xf0] sm:$0xff]  }
 0x337   :  { %5431 = vmatprep.subr.bf16.mxu1 %v7234_v16  ;;  %v7311_v16 = vld [vmem:[#allocation11 + $0xb0] sm:$0xff]  }
 0x338   :  { %5483 = vmatmul.mubr.bf16.vlgmr.msra.gmra.mxu0 %v7821_v28  ;;  %v7241_v28 = vld [vmem:[#allocation8 + $0x308] ss:$16 sps:$4 sm:$0xff]  }
 0x339   :  { %6803 = vmatpush3.bf16.msra.mxu0 %v7293_v45  ;;  %v7312_v45 = vld [vmem:[#allocation11 + $0xe8] sm:$0xff]  }
 0x33a   :  { %5432 = vmatpush2.bf16.msra.mxu1 %v7232_v61  ;;  %6804 = vmatprep.subr.bf16.mxu0 %v7294_v32  ;;  %v7313_v61 = vld [vmem:[#allocation11 + $0xa8] sm:$0xff]   ;;  %v7316_v32 = vld [vmem:[#allocation11 + $0xd8] sm:$0xff]  }
 0x33b   :  { %5433 = vmatprep.subr.bf16.mxu1 %v7237_v17  ;;  %v7314_v17 = vld [vmem:[#allocation11 + $0xe0] sm:$0xff]  }
 0x33d   :  { %6805 = vmatpush3.bf16.msra.mxu0 %v7295_v22 }
 0x33e   :  { %5434 = vmatpush2.bf16.msra.mxu1 %v7235_v44  ;;  %6806 = vmatprep.subr.bf16.mxu0 %v7296_v13  ;;  %v7315_v44 = vld [vmem:[#allocation11 + $0xa0] sm:$0xff]   ;;  %v5269_v13 = vpop.f32.mrf.mxu1 }
 0x33f   :  { %5435 = vmatprep.subr.bf16.mxu1 %v7240_v19  ;;  %v7317_v19 = vld [vmem:[#allocation11 + $0x98] sm:$0xff]  }
 0x341   :  { %6807 = vmatpush3.bf16.msra.mxu0 %v7297_v1  ;;  %v5271_v1 = vpop.f32.mrf.mxu1 }
 0x342   :  { %5436 = vmatpush2.bf16.msra.mxu1 %v7238_v20  ;;  %6808 = vmatprep.subr.bf16.mxu0 %v7298_v27 }
 0x343   :  { %5437 = vmatprep.subr.bf16.mxu1 %v7243_v23 }
 0x345   :  { %6809 = vmatpush3.bf16.msra.mxu0 %v7299_v29  ;;  %v7842_v29 = vld [vmem:[#allocation10] sm:$0xf] }
 0x346   :  { %5438 = vmatpush2.bf16.msra.mxu1 %v7241_v28  ;;  %6810 = vmatprep.subr.bf16.mxu0 %v7300_v34  ;;  %v3899_v28 = vrot.slane %v7842_v29, %v612_v25  ;;  %v3895_v34 = vrot.slane %v7842_v29, %v608_v36 }
 0x347   :  { %5493 = vmatprep.subr.bf16.mxu1 %v7246_v30  ;;  %v5273_v30 = vpop.f32.mrf.mxu1 }
 0x349   :  { %5440 = vmatmul.mubr.bf16.vlgmr.msra.gmra.mxu1 %v7772_v15  ;;  %6811 = vmatpush3.bf16.msra.mxu0 %v7301_v47  ;;  %v7253_v15 = vld [vmem:[#allocation8 + $0x688] ss:$16 sps:$4 sm:$0xff]  }
 0x34a   :  { %5494 = vmatpush1.bf16.msra.mxu1 %v7244_v33  ;;  %5525 = vmatprep.mubr.bf16.mxu1 %v7831_v21  ;;  %v7258_v21 = vld [vmem:[#allocation8 + $0x66c] ss:$16 sps:$4 sm:$0xff]  }
 0x34b   :  { %5495 = vmatprep.subr.bf16.mxu1 %v7249_v35  ;;  %6812 = vmatprep.subr.bf16.mxu0 %v7302_v6  ;;  %v5275_v6 = vpop.f32.mrf.mxu1 }
 0x34d   :  { %6813 = vmatpush3.bf16.msra.mxu0 %v7303_v50 }
 0x34e   :  { %5496 = vmatpush1.bf16.msra.mxu1 %v7247_v37  ;;  %6814 = vmatprep.subr.bf16.mxu0 %v7304_v57  ;;  %v7318_v57 = vld [vmem:[#allocation11 + $0xd0] sm:$0xff]  }
 0x34f   :  { %5497 = vmatprep.subr.bf16.mxu1 %v7252_v52 }
 0x351   :  { %6815 = vmatpush3.bf16.msra.mxu0 %v7305_v43 }
 0x352   :  { %5498 = vmatpush1.bf16.msra.mxu1 %v7250_v59  ;;  %6816 = vmatprep.subr.bf16.mxu0 %v7306_v18 }
 0x353   :  { %5499 = vmatprep.subr.bf16.mxu1 %v7255_v42 }
 0x355   :  { %6817 = vmatpush3.bf16.msra.mxu0 %v7307_v46 }
 0x356   :  { %5500 = vmatpush1.bf16.msra.mxu1 %v7253_v15  ;;  %v7319_v15 = vld [vmem:[#allocation11 + $0x90] sm:$0xff]  }
 0x357   :  { %5501 = vmatprep.subr.bf16.mxu1 %v7258_v21 }
 0x35a   :  { %5502 = vmatpush1.bf16.msra.mxu1 %v7256_v31 }
 0x35b   :  { %5503 = vmatprep.subr.bf16.mxu1 %v7261_v12 }
 0x35e   :  { %5504 = vmatpush1.bf16.msra.mxu1 %v7259_v14 }
 0x35f   :  { %5505 = vmatprep.subr.bf16.mxu1 %v7264_v0  ;;  %v7320_v0 = vld [vmem:[#allocation11 + $0xc8] sm:$0xff]  }
 0x362   :  { %5506 = vmatpush1.bf16.msra.mxu1 %v7262_v54 }
 0x363   :  { %5507 = vmatprep.subr.bf16.mxu1 %v7267_v53 }
 0x366   :  { %5508 = vmatpush1.bf16.msra.mxu1 %v7265_v55 }
 0x367   :  { %5509 = vmatprep.subr.bf16.mxu1 %v7270_v24  ;;  %v7321_v24 = vld [vmem:[#allocation11 + $0x88] sm:$0xff]  }
 0x36a   :  { %5510 = vmatpush2.bf16.msra.mxu1 %v7268_v49 }
 0x36b   :  { %5511 = vmatprep.subr.bf16.mxu1 %v7273_v58 }
 0x36e   :  { %5512 = vmatpush2.bf16.msra.mxu1 %v7271_v39 }
 0x36f   :  { %5513 = vmatprep.subr.bf16.mxu1 %v7276_v62 }
 0x372   :  { %5514 = vmatpush2.bf16.msra.mxu1 %v7274_v63  ;;  %v7322_v63 = vld [vmem:[#allocation11 + $0xc0] sm:$0xff]  }
 0x373   :  { %5515 = vmatprep.subr.bf16.mxu1 %v7279_v2 }
 0x376   :  { %5516 = vmatpush2.bf16.msra.mxu1 %v7277_v3 }
 0x377   :  { %5517 = vmatprep.subr.bf16.mxu1 %v7282_v4  ;;  %v7323_v4 = vld [vmem:[#allocation11 + $0x80] sm:$0xff]  }
 0x37a   :  { %5518 = vmatpush2.bf16.msra.mxu1 %v7280_v56 }
 0x37b   :  { %5519 = vmatprep.subr.bf16.mxu1 %v7285_v8 }
 0x37e   :  { %5520 = vmatpush2.bf16.msra.mxu1 %v7283_v41 }
 0x37f   :  { %5521 = vmatprep.subr.bf16.mxu1 %v7288_v5  ;;  %v7324_v5 = vld [vmem:[#allocation14 + $0x38] sm:$0xff]  }
 0x382   :  { %5522 = vmatpush2.bf16.msra.mxu1 %v7286_v38  ;;  %v7581_v38 = vmov 0.0  }
 0x383   :  { %5523 = vmatprep.subr.bf16.mxu1 %v7291_v7  ;;  %6855 = vmatprep.subr.bf16.mxu0 %v7581_v38  ;;  %v7325_v7 = vld [vmem:[#allocation14 + $0x30] sm:$0xff]  }
 0x386   :  { %5524 = vmatpush2.bf16.msra.mxu1 %v7289_v48  ;;  %v7326_v48 = vld [vmem:[#allocation14 + $0x28] sm:$0xff]  }
 0x387   :  { %6824 = vmatprep.subr.bf16.mxu1 %v7308_v9  ;;  %v7327_v9 = vld [vmem:[#allocation14 + $0x20] sm:$0xff]  }
 0x389   :  { %5526 = vmatmul.mubr.bf16.vlgmr.msra.gmra.mxu1 %v7833_v51  ;;  %v5226_v51 = vpop.f32.mrf.mxu0 }
 0x38a   :  { %6825 = vmatpush3.bf16.msra.mxu1 %v7309_v10  ;;  %v5227_v37 = vadd.f32 %v5226_v51, %v3895_v34 }
 0x38b   :  { %6826 = vmatprep.subr.bf16.mxu1 %v7310_v11  ;;  %v5228_v22 = vpop.f32.mrf.mxu0 }
 0x38c   :  { %v5229_v33 = vadd.f32 %v5228_v22, %v3899_v28  ;;  %v5270_v18 = vadd.f32 %v5269_v13, %v5227_v37 }
 0x38d   :  { %v5230_v20 = vpop.f32.mrf.mxu0 }
 0x38e   :  { %6827 = vmatpush3.bf16.msra.mxu1 %v7311_v16  ;;  %v5231_v35 = vadd.f32 %v5230_v20, %v3895_v34  ;;  %v5272_v42 = vadd.f32 %v5271_v1, %v5229_v33 }
 0x38f   :  { %6828 = vmatprep.subr.bf16.mxu1 %v7312_v45  ;;  %v5232_v23 = vpop.f32.mrf.mxu0 }
 0x390   :  { %v5233_v50 = vadd.f32 %v5232_v23, %v3899_v28  ;;  %v5274_v43 = vadd.f32 %v5273_v30, %v5231_v35 }
 0x391   :  { %v5312_v27 = vpop.f32.mrf.mxu0 }
 0x392   :  { %6829 = vmatpush3.bf16.msra.mxu1 %v7313_v61  ;;  %v5276_v46 = vadd.f32 %v5275_v6, %v5233_v50  ;;  %v5313_v12 = vadd.f32 %v5312_v27, %v5270_v18 }
 0x393   :  { %6830 = vmatprep.subr.bf16.mxu1 %v7314_v17  ;;  %v5314_v47 = vpop.f32.mrf.mxu0 }
 0x394   :  { %v5315_v31 = vadd.f32 %v5314_v47, %v5272_v42 }
 0x395   :  { %v5316_v52 = vpop.f32.mrf.mxu0 }
 0x396   :  { %6831 = vmatpush3.bf16.msra.mxu1 %v7315_v44  ;;  %v5317_v36 = vadd.f32 %v5316_v52, %v5274_v43 }
 0x397   :  { %6832 = vmatprep.subr.bf16.mxu1 %v7316_v32  ;;  %v5318_v21 = vpop.f32.mrf.mxu0  ;;  %v3907_v32 = vrot.slane %v7842_v29, %v620_v40 }
 0x398   :  { %v5319_v54 = vadd.f32 %v5318_v21, %v5276_v46 }
 0x39a   :  { %6833 = vmatpush3.bf16.msra.mxu1 %v7317_v19  ;;  %v3903_v19 = vrot.slane %v7842_v29, %v616_v60 }
 0x39b   :  { %6834 = vmatprep.subr.bf16.mxu1 %v7318_v57 }
 0x39e   :  { %6835 = vmatpush3.bf16.msra.mxu1 %v7319_v15 }
 0x39f   :  { %6836 = vmatprep.subr.bf16.mxu1 %v7320_v0  ;;  %v7331_v0 = vld [vmem:[#allocation14] sm:$0xff]  }
 0x3a2   :  { %6837 = vmatpush3.bf16.msra.mxu1 %v7321_v24 }
 0x3a3   :  { %6838 = vmatprep.subr.bf16.mxu1 %v7322_v63 }
 0x3a6   :  { %6839 = vmatpush3.bf16.msra.mxu1 %v7323_v4 }
 0x3b8   :  { %v5398_v10 = vpop.f32.mrf.mxu0 }
 0x3b9   :  { %v5399_v23 = vadd.f32 %v5398_v10, %v3903_v19  ;;  %v6793_v10 = vld [vmem:[#allocation16] ss:$0 sm:$0xff] }
 0x3ba   :  { %v5400_v11 = vpop.f32.mrf.mxu0 }
 0x3bb   :  { %v5401_v20 = vadd.f32 %v5400_v11, %v3907_v32 }
 0x3bc   :  { %v5402_v16 = vpop.f32.mrf.mxu0 }
 0x3bd   :  { %v5403_v13 = vadd.f32 %v5402_v16, %v3903_v19 }
 0x3be   :  { %v5404_v61 = vpop.f32.mrf.mxu0 }
 0x3bf   :  { %v5405_v27 = vadd.f32 %v5404_v61, %v3907_v32 }
 0x3c9   :  { %v5355_v59 = vpop.f32.mrf.mxu1 }
 0x3ca   :  { %v5356_v49 = vadd.f32 %v5355_v59, %v5313_v12  ;;  %v7329_v12 = vld [vmem:[#allocation14 + $0x10] sm:$0xff]  }
 0x3cb   :  { %v5357_v25 = vpop.f32.mrf.mxu1 }
 0x3cc   :  { %v5358_v53 = vadd.f32 %v5357_v25, %v5315_v31  ;;  %v5536_v56 = vmax.f32 %v5356_v49, 0.0 }
 0x3cd   :  { %v5359_v14 = vpop.f32.mrf.mxu1 }
 0x3ce   :  { %v5360_v55 = vadd.f32 %v5359_v14, %v5317_v36  ;;  %v5537_v2 = vmax.f32 %v5358_v53, 0.0  ;;  %v7328_v36 = vld [vmem:[#allocation14 + $0x18] sm:$0xff]   ;;  %v7330_v14 = vld [vmem:[#allocation14 + $0x8] sm:$0xff]  }
 0x3cf   :  { %v5361_v58 = vpop.f32.mrf.mxu1 }
 0x3d0   :  { %v5362_v39 = vadd.f32 %v5361_v58, %v5319_v54  ;;  %v5540_v62 = vmax.f32 %v5360_v55, 0.0 }
 0x3d2   :  { %v5541_v3 = vmax.f32 %v5362_v39, 0.0  ;;  %v5544_v41 = vpack.c.bf16 %v5540_v62, %v5536_v56  ;;  %v6760_v39 = vld [vmem:[#allocation13] ss:$0 sm:$0xff] }
 0x3d4   :  { %v5545_v8 = vpack.c.bf16 %v5541_v3, %v5537_v2 }
 0x3d6   :  { %5843 = vmatprep.mubr.bf16.mxu0 %v5545_v8 }
 0x3d7   :  { %5844 = vmatmul.mubr.bf16.vlgmr.msra.gmra.mxu0 %v5544_v41 }
 0x3d8   :  { %6856 = vmatpush3.bf16.msra.mxu0 %v7324_v5  ;;  %6871 = vmatprep.mubr.msk.bf16.mxu0 %vm7582_vm0, %v7581_v38 }
 0x3d9   :  { %6857 = vmatprep.subr.bf16.mxu0 %v7581_v38 }
 0x3dc   :  { %6858 = vmatpush3.bf16.msra.mxu0 %v7325_v7 }
 0x3dd   :  { %6859 = vmatprep.subr.bf16.mxu0 %v7581_v38 }
 0x3e0   :  { %6860 = vmatpush3.bf16.msra.mxu0 %v7326_v48 }
 0x3e1   :  { %6861 = vmatprep.subr.bf16.mxu0 %v7581_v38 }
 0x3e4   :  { %6862 = vmatpush3.bf16.msra.mxu0 %v7327_v9 }
 0x3e5   :  { %6863 = vmatprep.subr.bf16.mxu0 %v7581_v38 }
 0x3e8   :  { %6864 = vmatpush3.bf16.msra.mxu0 %v7328_v36 }
 0x3e9   :  { %6865 = vmatprep.subr.bf16.mxu0 %v7581_v38 }
 0x3ec   :  { %6866 = vmatpush3.bf16.msra.mxu0 %v7329_v12 }
 0x3ed   :  { %6867 = vmatprep.subr.bf16.mxu0 %v7581_v38 }
 0x3f0   :  { %6868 = vmatpush3.bf16.msra.mxu0 %v7330_v14 }
 0x3f1   :  { %6869 = vmatprep.subr.bf16.mxu0 %v7581_v38 }
 0x3f4   :  { %6870 = vmatpush3.bf16.msra.mxu0 %v7331_v0 }
 0x3f8   :  { %v5484_v44 = vpop.f32.mrf.mxu0 }
 0x3fa   :  { %v5486_v22 = vpop.f32.mrf.mxu0 }
 0x3fc   :  { %v5488_v30 = vpop.f32.mrf.mxu0 }
 0x3fe   :  { %v5490_v52 = vpop.f32.mrf.mxu0 }
 0x409   :  { %v5441_v45 = vpop.f32.mrf.mxu1 }
 0x40a   :  { %v5442_v47 = vadd.f32 %v5441_v45, %v5399_v23 }
 0x40b   :  { %v5443_v17 = vpop.f32.mrf.mxu1 }
 0x40c   :  { %v5444_v28 = vadd.f32 %v5443_v17, %v5401_v20  ;;  %v5485_v26 = vadd.f32 %v5484_v44, %v5442_v47 }
 0x40d   :  { %v5445_v51 = vpop.f32.mrf.mxu1 }
 0x40e   :  { %v5446_v34 = vadd.f32 %v5445_v51, %v5403_v13  ;;  %v5487_v6 = vadd.f32 %v5486_v22, %v5444_v28 }
 0x40f   :  { %v5447_v1 = vpop.f32.mrf.mxu1 }
 0x410   :  { %v5448_v35 = vadd.f32 %v5447_v1, %v5405_v27  ;;  %v5489_v40 = vadd.f32 %v5488_v30, %v5446_v34 }
 0x412   :  { %v5491_v59 = vadd.f32 %v5490_v52, %v5448_v35 }
 0x449   :  { %v5527_v33 = vpop.f32.mrf.mxu1 }
 0x44a   :  { %v5528_v57 = vadd.f32 %v5527_v33, %v5485_v26 }
 0x44b   :  { %v5529_v37 = vpop.f32.mrf.mxu1 }
 0x44c   :  { %v5530_v60 = vadd.f32 %v5529_v37, %v5487_v6  ;;  %v5538_v25 = vmax.f32 %v5528_v57, 0.0 }
 0x44d   :  { %v5531_v50 = vpop.f32.mrf.mxu1 }
 0x44e   :  { %v5532_v29 = vadd.f32 %v5531_v50, %v5489_v40  ;;  %v5539_v18 = vmax.f32 %v5530_v60, 0.0 }
 0x44f   :  { %v5533_v42 = vpop.f32.mrf.mxu1 }
 0x450   :  { %v5534_v43 = vadd.f32 %v5533_v42, %v5491_v59  ;;  %v5542_v15 = vmax.f32 %v5532_v29, 0.0 }
 0x452   :  { %v5543_v21 = vmax.f32 %v5534_v43, 0.0  ;;  %v5546_v31 = vpack.c.bf16 %v5542_v15, %v5538_v25 }
 0x454   :  { %v5547_v46 = vpack.c.bf16 %v5543_v21, %v5539_v18 }
 0x456   :  { %5884 = vmatprep.mubr.bf16.mxu1 %v5547_v46 }
 0x457   :  { %5885 = vmatmul.mubr.bf16.vlgmr.msra.gmra.mxu1 %v5546_v31 }
 0x497   :  { %v6818_v54 = vpop.f32.mrf.mxu0 }
 0x499   :  { %v6819_v53 = vpop.f32.mrf.mxu0 }
 0x49a   :  { %v6820_v58 = vadd.f32 %v6819_v53, %v6818_v54 }
 0x49b   :  { %v6821_v55 = vpop.f32.mrf.mxu0 }
 0x49c   :  { %v5846_v4 = vadd.f32 %v6820_v58, %v6760_v39 }
 0x49d   :  { %v6822_v24 = vpop.f32.mrf.mxu0 }
 0x49e   :  { %v6823_v63 = vadd.f32 %v6822_v24, %v6821_v55 }
 0x4a0   :  { %v5849_v8 = vadd.f32 %v6823_v63, %v6760_v39 }
 0x517   :  { %v6840_v49 = vpop.f32.mrf.mxu1 }
 0x519   :  { %v6841_v62 = vpop.f32.mrf.mxu1 }
 0x51a   :  { %v6842_v2 = vadd.f32 %v6841_v62, %v6840_v49 }
 0x51b   :  { %v6843_v3 = vpop.f32.mrf.mxu1 }
 0x51c   :  { %v5887_v41 = vadd.f32 %v6842_v2, %v5846_v4 }
 0x51d   :  { %v6844_v56 = vpop.f32.mrf.mxu1 }
 0x51e   :  { %v6845_v5 = vadd.f32 %v6844_v56, %v6843_v3  ;;  %v5893_v48 = vmax.f32 %v5887_v41, 0.0 }
 0x520   :  { %v5890_v7 = vadd.f32 %v6845_v5, %v5849_v8 }
 0x522   :  { %v5894_v9 = vmax.f32 %v5890_v7, 0.0 }
 0x524   :  { %v5895_v38 = vpack.c.bf16 %v5894_v9, %v5893_v48 }
 0x526   :  { %6872 = vmatmul.mubr.bf16.vlgmr.msra.gmra.mxu0 %v5895_v38 }
 0x5e6   :  { %v6001_v11 = vpop.f32.mrf.mxu0 }
 0x5e7   :  { %v6002_v16 = vadd.f32 %v6793_v10, %v6001_v11 }
 0x5e8   :  { %v6873_v45 = vpop.f32.mrf.mxu0 }
 0x5e9   :  { %6008 = vmax.xlane.f32.xlu0 %v6002_v16 }
 0x5ea   :  { %v6004_v61 = vpop.f32.mrf.mxu0 }
 0x5eb   :  { %v6005_v17 = vadd.f32 %v6793_v10, %v6004_v61 }
 0x5ec   :  { %v6874_v44 = vpop.f32.mrf.mxu0 }
 0x5ed   :  { %6010 = vmax.xlane.f32.xlu0 %v6005_v17 }
 0x672   :  { %v6009_v32 = vpop.xlane.xlu0 %6008 }
 0x673   :  { %v6012_v19 = vsub.f32 %v6002_v16, %v6009_v32 }
 0x675   :  { %v6014_v51 = vmul.f32 1.442695, %v6012_v19 }
 0x676   :  { %v6011_v22 = vpop.xlane.xlu0 %6010 }
 0x677   :  { %7332 = vpow2.f32 %v6014_v51  ;;  %v6013_v20 = vsub.f32 %v6005_v17, %v6011_v22 }
 0x679   :  { %v6016_v13 = vmul.f32 1.442695, %v6013_v20 }
 0x67b   :  { %7334 = vpow2.f32 %v6016_v13 }
 0x684   :  { %v7333_v23 = vpop.eup %7332 }
 0x685   :  { %6018 = vadd.xlane.f32.xlu1 %v7333_v23 }
 0x688   :  { %v7335_v1 = vpop.eup %7334 }
 0x689   :  { %6020 = vadd.xlane.f32.xlu1 %v7335_v1 }
 0x70e   :  { %v6019_v27 = vpop.xlane.xlu1 %6018 }
 0x70f   :  { %7336 = vrcp.f32 %v6019_v27 }
 0x712   :  { %v6021_v28 = vpop.xlane.xlu1 %6020 }
 0x713   :  { %7338 = vrcp.f32 %v6021_v28 }
 0x71c   :  { %v7337_v34 = vpop.eup %7336 }
 0x71d   :  { %v6023_v30 = vmul.f32 %v7337_v34, %v7333_v23 }
 0x71f   :  { %6026 = vst [vmem:[#allocation17] sm:$0xff] %v6023_v30 }
 0x720   :  { %v7339_v47 = vpop.eup %7338 }
 0x721   :  { %v6025_v33 = vmul.f32 %v7339_v47, %v7335_v1 }
 0x723   :  { %6027 = vst [vmem:[#allocation17 + $0x8] sm:$0xff] %v6025_v33 }
 0x724   :  { %7542 = shalt.err (!%p7539_p7)
}
 0x725   :  { %s7584_s14 = smov 128   ;;  %s7585_s5 = smov 8  }
 0x726   :  { %6039 = dma.vmem_to_hbm [thread:$0]  %s6034_s8, 256, %s7877_s9, [#allocation4], %s7584_s14, %s7584_s14, %s7585_s5  }
 0x727   :  { %7561 = dma.done.wait [#allocation4], 256  }
 0x728   :  { %7562 = vsyncadd [#allocation4], 4294967040 }
 0x729   :  { %6043 = vsyncpa [#allocation3], 1 }
 0x72a   :  { %6044 = vsyncpa [#allocation6], 1 }
 0x72b   :  { %6045 = vsyncpa [#allocation9], 1 }
 0x72c   :  { %6046 = vsyncpa [#allocation12], 1 }
 0x72d   :  { %6047 = vsyncpa [#allocation15], 1 }
 0x72e   :  { %6048 = vsyncpa [#allocation4], 1 }

</bundles_post_ra>
